<compile_context>
chip_gen: v5e
topology: v5e:2x2
jax: 0.10.0
libtpu: 0.0.40
codegen_flags: <defaults>
</compile_context>

<pallas_src>
import functools

import jax
import jax.numpy as jnp
from jax.experimental import pallas as pl
from jax.experimental.pallas import tpu as pltpu


# ----------------------------- in-kernel math ------------------------------

_ERF_P = 0.3275911
_ERF_A = (0.254829592, -0.284496736, 1.421413741, -1.453152027, 1.061405429)


def _erf(x):
    # Abramowitz & Stegun 7.1.26 rational approximation, |err| <= 1.5e-7.
    a1, a2, a3, a4, a5 = _ERF_A
    ax = jnp.abs(x)
    t = 1.0 / (1.0 + _ERF_P * ax)
    poly = ((((a5 * t + a4) * t + a3) * t + a2) * t + a1) * t
    y = 1.0 - poly * jnp.exp(-ax * ax)
    return jnp.where(x >= 0.0, y, -y)


def _gelu_exact(x):
    # Matches torch.nn.GELU() (erf-based) to ~1e-7.
    return 0.5 * x * (1.0 + _erf(x * 0.7071067811865476))


# ------------------------------- the kernel --------------------------------

def _resblock_kernel(x_top_ref, x_main_ref, x_bot_ref,
                     w1_ref, b1_ref, w2_ref, b2_ref,
                     o_ref,
                     xpad_ref, s1_ref, y1pad_ref, s2_ref, acc_ref):
    # x_top/x_bot: (1, 2, W, C) row halos; x_main/o: (1, TH, W, C)
    # w*: (3, 3C, C) folded weights (tap = ky, K folds kx-major, Cin-minor)
    # b*: (1, C)
    TH = o_ref.shape[1]
    W = o_ref.shape[2]
    C = o_ref.shape[3]
    cdt = xpad_ref.dtype
    r = pl.program_id(1)
    nr = pl.num_programs(1)
    m1 = TH + 2          # conv1 output rows (1-row halo each side for conv2)

    # ---- Stage 0: assemble the zero-padded input tile (TH+4, W+2, C) -------
    xpad_ref[...] = jnp.zeros_like(xpad_ref)
    xpad_ref[2:TH + 2, 1:W + 1, :] = x_main_ref[0].astype(cdt)

    @pl.when(r > 0)
    def _():
        xpad_ref[0:2, 1:W + 1, :] = x_top_ref[0].astype(cdt)

    @pl.when(r < nr - 1)
    def _():
        xpad_ref[TH + 2:TH + 4, 1:W + 1, :] = x_bot_ref[0].astype(cdt)

    # ---- Stage 1: conv1 = 3 ky-matmuls over a kx-unrolled tile -------------
    # s1[h, w, kx*C + c] = xpad[h, w + kx, c]
    for kx in range(3):
        s1_ref[:, :, kx * C:(kx + 1) * C] = xpad_ref[:, kx:kx + W, :]

    acc_ref[...] = jnp.dot(s1_ref[0:m1].reshape(m1 * W, 3 * C), w1_ref[0],
                           preferred_element_type=jnp.float32)
    for ky in range(1, 3):
        acc_ref[...] += jnp.dot(s1_ref[ky:ky + m1].reshape(m1 * W, 3 * C),
                                w1_ref[ky], preferred_element_type=jnp.float32)

    y1 = _gelu_exact(acc_ref[...] + b1_ref[...].astype(jnp.float32))

    # ---- Stage 2: zero-padded conv1 activation tile (TH+2, W+2, C) ---------
    y1pad_ref[...] = jnp.zeros_like(y1pad_ref)
    y1pad_ref[:, 1:W + 1, :] = y1.reshape(m1, W, C).astype(cdt)

    @pl.when(r == 0)              # conv2 zero padding above the image top
    def _():
        y1pad_ref[0, :, :] = jnp.zeros((W + 2, C), cdt)

    @pl.when(r == nr - 1)         # conv2 zero padding below the image bottom
    def _():
        y1pad_ref[m1 - 1, :, :] = jnp.zeros((W + 2, C), cdt)

    # ---- Stage 3: conv2 + bias + residual ----------------------------------
    for kx in range(3):
        s2_ref[:, :, kx * C:(kx + 1) * C] = y1pad_ref[:, kx:kx + W, :]

    m2 = TH * W
    acc_ref[0:m2, :] = jnp.dot(s2_ref[0:TH].reshape(m2, 3 * C), w2_ref[0],
                               preferred_element_type=jnp.float32)
    for ky in range(1, 3):
        acc_ref[0:m2, :] += jnp.dot(s2_ref[ky:ky + TH].reshape(m2, 3 * C),
                                    w2_ref[ky], preferred_element_type=jnp.float32)

    out = (acc_ref[0:m2, :] + b2_ref[...].astype(jnp.float32)
           + x_main_ref[0].astype(jnp.float32).reshape(m2, C))
    o_ref[...] = out.reshape(1, TH, W, C).astype(o_ref.dtype)


# ------------------------------ host wrappers -------------------------------

def _fold_weight(w, cdt):
    # OIHW (Cout, Cin, 3, 3) -> (3, 3*Cin, Cout); K folds (kx, Cin), kx-major.
    c_out, c_in, _, _ = w.shape
    return jnp.transpose(w, (2, 3, 1, 0)).reshape(3, 3 * c_in, c_out).astype(cdt)


def _pick_row_tile(H, W, C, compute_bytes, budget_bytes=16 * 1024 * 1024):
    # Largest even divisor of H whose VMEM working set fits the budget
    # (keeps total usage well under v7x's 64 MiB even with double buffering).
    best = None
    for th in range(2, H + 1, 2):
        if H % th:
            continue
        scratch = ((th + 4) * (W + 2) * C + (th + 4) * W * 3 * C
                   + (th + 2) * (W + 2) * C + (th + 2) * W * 3 * C) * compute_bytes
        scratch += (th + 2) * W * C * 4                  # f32 accumulator
        pipeline = 4 * th * W * C * 4 + 8 * W * C * 4    # dbl-buffered in/out + halos
        if scratch + pipeline <= budget_bytes:
            best = th
    return best if best is not None else 2


def _resblock_nhwc(x, w1, b1, w2, b2, row_tile, compute_dtype):
    N, H, W, C = x.shape
    TH = row_tile
    nr = H // TH
    hb = H // 2                      # number of 2-row halo blocks along H

    w1f = _fold_weight(w1, compute_dtype)
    w2f = _fold_weight(w2, compute_dtype)
    b1r = b1.reshape(1, C).astype(jnp.float32)
    b2r = b2.reshape(1, C).astype(jnp.float32)

    return pl.pallas_call(
        _resblock_kernel,
        out_shape=jax.ShapeDtypeStruct((N, H, W, C), x.dtype),
        grid_spec=pltpu.PrefetchScalarGridSpec(
            num_scalar_prefetch=0,
            grid=(N, nr),
            in_specs=[
                # 2-row top halo (clamped at the image top; masked in-kernel).
                pl.BlockSpec((1, 2, W, C),
                             lambda n, r: (n, jnp.maximum(r * (TH // 2) - 1, 0), 0, 0)),
                # main row tile
                pl.BlockSpec((1, TH, W, C), lambda n, r: (n, r, 0, 0)),
                # 2-row bottom halo (clamped at the image bottom).
                pl.BlockSpec((1, 2, W, C),
                             lambda n, r: (n, jnp.minimum(r * (TH // 2) + TH // 2,
                                                          hb - 1), 0, 0)),
                pl.BlockSpec((3, 3 * C, C), lambda n, r: (0, 0, 0)),
                pl.BlockSpec((1, C), lambda n, r: (0, 0)),
                pl.BlockSpec((3, 3 * C, C), lambda n, r: (0, 0, 0)),
                pl.BlockSpec((1, C), lambda n, r: (0, 0)),
            ],
            out_specs=pl.BlockSpec((1, TH, W, C), lambda n, r: (n, r, 0, 0)),
            scratch_shapes=[
                pltpu.VMEM((TH + 4, W + 2, C), compute_dtype),   # padded input tile
                pltpu.VMEM((TH + 4, W, 3 * C), compute_dtype),   # kx-unrolled conv1 lhs
                pltpu.VMEM((TH + 2, W + 2, C), compute_dtype),   # padded conv1 output
                pltpu.VMEM((TH + 2, W, 3 * C), compute_dtype),   # kx-unrolled conv2 lhs
                pltpu.VMEM(((TH + 2) * W, C), jnp.float32),      # f32 accumulator
            ],
        ),
        compiler_params=pltpu.CompilerParams(
            dimension_semantics=("parallel", "parallel"),
            vmem_limit_bytes=48 * 1024 * 1024,
        ),
    )(x, x, x, w1f, b1r, w2f, b2r)


def dblock_forward(x, params, row_tile=None):
    """DBlock forward.

    x:      (N, C, H, W) float32 (PyTorch NCHW convention)
    params: sequence of (w1, b1, w2, b2) per ResBlock; w*: (C, C, 3, 3) OIHW, b*: (C,)
    returns (N, C, H, W)
    """
    N, C, H, W = x.shape
    if H % 2 != 0:
        raise ValueError("DBlock Pallas kernel requires even H")  # TODO(synk): odd-H halos
    compute_dtype = jnp.bfloat16 if C >= 64 else jnp.float32       # bf16 MXU for big C
    if row_tile is None:
        row_tile = _pick_row_tile(H, W, C, jnp.dtype(compute_dtype).itemsize)
    assert H % row_tile == 0 and row_tile % 2 == 0

    y = jnp.transpose(x, (0, 2, 3, 1))         # NCHW -> NHWC once for the whole DBlock
    for (w1, b1, w2, b2) in params:
        y = _resblock_nhwc(y, w1, b1, w2, b2, row_tile, compute_dtype)
    return jnp.transpose(y, (0, 3, 1, 2))      # back to NCHW


# ------------------------------- reference ---------------------------------

def _reference_dblock(x, params):
    def conv(h, w, b):
        out = jax.lax.conv_general_dilated(
            h, w, window_strides=(1, 1), padding=((1, 1), (1, 1)),
            dimension_numbers=("NCHW", "OIHW", "NCHW"),
            precision=jax.lax.Precision.HIGHEST)
        return out + b.reshape(1, -1, 1, 1)

    y = x
    for (w1, b1, w2, b2) in params:
        h = jax.nn.gelu(conv(y, w1, b1), approximate=False)
        y = conv(h, w2, b2) + y
    return y


if __name__ == "__main__":
    key = jax.random.PRNGKey(0)
    N, C, H, W = 2, 4, 16, 16
    num_res = 8
    keys = jax.random.split(key, 1 + 4 * num_res)
    x = jax.random.normal(keys[0], (N, C, H, W), dtype=jnp.float32)

    fan_in = C * 3 * 3
    bound = 1.0 / (fan_in ** 0.5)
    params = []
    for i in range(num_res):
        kw1, kb1, kw2, kb2 = keys[1 + 4 * i: 5 + 4 * i]
        params.append((
            jax.random.uniform(kw1, (C, C, 3, 3), jnp.float32, -bound, bound),
            jax.random.uniform(kb1, (C,), jnp.float32, -bound, bound),
            jax.random.uniform(kw2, (C, C, 3, 3), jnp.float32, -bound, bound),
            jax.random.uniform(kb2, (C,), jnp.float32, -bound, bound),
        ))
    params = tuple(params)

    # row_tile=8 -> 2 row tiles per image, exercising the halo/boundary logic.
    fwd = jax.jit(functools.partial(dblock_forward, row_tile=8))
    out = jax.block_until_ready(fwd(x, params))

    ref = _reference_dblock(x, params)
    assert out.shape == (N, C, H, W)
    max_err = float(jnp.max(jnp.abs(out - ref)))
    assert jnp.allclose(out, ref, atol=2e-3, rtol=2e-3), (
        f"mismatch vs reference DBlock, max abs err {max_err}")
    print("KERNEL_OK")
</pallas_src>

<mosaic_0001>
module attributes {stable_mosaic.version = 11 : i64} {
  func.func @_resblock_kernel(%arg0: i32, %arg1: i32, %arg2: memref<1x2x16x4xf32, #tpu.memory_space<vmem>>, %arg3: memref<1x8x16x4xf32, #tpu.memory_space<vmem>>, %arg4: memref<1x2x16x4xf32, #tpu.memory_space<vmem>>, %arg5: memref<3x12x4xf32, #tpu.memory_space<vmem>>, %arg6: memref<1x4xf32, #tpu.memory_space<vmem>>, %arg7: memref<3x12x4xf32, #tpu.memory_space<vmem>>, %arg8: memref<1x4xf32, #tpu.memory_space<vmem>>, %arg9: memref<1x8x16x4xf32, #tpu.memory_space<vmem>>, %arg10: memref<12x18x4xf32, #tpu.memory_space<vmem>>, %arg11: memref<12x16x12xf32, #tpu.memory_space<vmem>>, %arg12: memref<10x18x4xf32, #tpu.memory_space<vmem>>, %arg13: memref<10x16x12xf32, #tpu.memory_space<vmem>>, %arg14: memref<160x4xf32, #tpu.memory_space<vmem>>) attributes {dimension_semantics = [#tpu.dimension_semantics<parallel>, #tpu.dimension_semantics<parallel>], iteration_bounds = array<i64: 2, 2>, scalar_prefetch = 0 : i64, scratch_operands = 5 : i64, tpu.core_type = #tpu.core_type<tc>, window_params = [{transform_indices = @transform_0, window_bounds = array<i64: 1, 2, 16, 4>}, {transform_indices = @transform_1, window_bounds = array<i64: 1, 8, 16, 4>}, {transform_indices = @transform_2, window_bounds = array<i64: 1, 2, 16, 4>}, {pipeline_mode = #tpu.pipeline_mode<synchronous>, transform_indices = @transform_3, window_bounds = array<i64: 3, 12, 4>}, {pipeline_mode = #tpu.pipeline_mode<synchronous>, transform_indices = @transform_4, window_bounds = array<i64: 1, 4>}, {pipeline_mode = #tpu.pipeline_mode<synchronous>, transform_indices = @transform_5, window_bounds = array<i64: 3, 12, 4>}, {pipeline_mode = #tpu.pipeline_mode<synchronous>, transform_indices = @transform_6, window_bounds = array<i64: 1, 4>}, {transform_indices = @transform_7, window_bounds = array<i64: 1, 8, 16, 4>}]} {
    %cst = arith.constant 0.000000e+00 : f32
    %0 = vector.broadcast %cst : f32 to vector<12x18x4xf32>
    %c0 = arith.constant 0 : index
    %c0_0 = arith.constant 0 : index
    %c0_1 = arith.constant 0 : index
    %1 = vector.load %arg10[%c0, %c0_0, %c0_1] : memref<12x18x4xf32, #tpu.memory_space<vmem>>, vector<12x18x4xf32>
    tpu.vector_store %arg10[%c0, %c0_0, %c0_1], %0 {strides = array<i32>} : memref<12x18x4xf32, #tpu.memory_space<vmem>>, vector<12x18x4xf32>,
    %c0_2 = arith.constant 0 : index
    %c0_3 = arith.constant 0 : index
    %c0_4 = arith.constant 0 : index
    %c0_5 = arith.constant 0 : index
    %2 = vector.load %arg3[%c0_2, %c0_3, %c0_4, %c0_5] : memref<1x8x16x4xf32, #tpu.memory_space<vmem>>, vector<1x8x16x4xf32>
    %3 = vector.shape_cast %2 : vector<1x8x16x4xf32> to vector<8x16x4xf32>
    %c2 = arith.constant 2 : index
    %c1 = arith.constant 1 : index
    %c0_6 = arith.constant 0 : index
    %4 = vector.load %arg10[%c2, %c1, %c0_6] : memref<12x18x4xf32, #tpu.memory_space<vmem>>, vector<8x16x4xf32>
    tpu.vector_store %arg10[%c2, %c1, %c0_6], %3 {strides = array<i32>} : memref<12x18x4xf32, #tpu.memory_space<vmem>>, vector<8x16x4xf32>,
    %c0_i32 = arith.constant 0 : i32
    %5 = arith.cmpi sgt, %arg1, %c0_i32 : i32
    %6 = arith.extui %5 : i1 to i32
    %c0_i32_7 = arith.constant 0 : i32
    %7 = arith.cmpi ne, %6, %c0_i32_7 : i32
    scf.if %7 {
      %c0_147 = arith.constant 0 : index
      %c0_148 = arith.constant 0 : index
      %c0_149 = arith.constant 0 : index
      %c0_150 = arith.constant 0 : index
      %131 = vector.load %arg2[%c0_147, %c0_148, %c0_149, %c0_150] : memref<1x2x16x4xf32, #tpu.memory_space<vmem>>, vector<1x2x16x4xf32>
      %132 = vector.shape_cast %131 : vector<1x2x16x4xf32> to vector<2x16x4xf32>
      %c0_151 = arith.constant 0 : index
      %c1_152 = arith.constant 1 : index
      %c0_153 = arith.constant 0 : index
      %133 = vector.load %arg10[%c0_151, %c1_152, %c0_153] : memref<12x18x4xf32, #tpu.memory_space<vmem>>, vector<2x16x4xf32>
      tpu.vector_store %arg10[%c0_151, %c1_152, %c0_153], %132 {strides = array<i32>} : memref<12x18x4xf32, #tpu.memory_space<vmem>>, vector<2x16x4xf32>,
    } else {
    }
    %c1_i32 = arith.constant 1 : i32
    %8 = arith.cmpi slt, %arg1, %c1_i32 : i32
    %9 = arith.extui %8 : i1 to i32
    %c0_i32_8 = arith.constant 0 : i32
    %10 = arith.cmpi ne, %9, %c0_i32_8 : i32
    scf.if %10 {
      %c0_147 = arith.constant 0 : index
      %c0_148 = arith.constant 0 : index
      %c0_149 = arith.constant 0 : index
      %c0_150 = arith.constant 0 : index
      %131 = vector.load %arg4[%c0_147, %c0_148, %c0_149, %c0_150] : memref<1x2x16x4xf32, #tpu.memory_space<vmem>>, vector<1x2x16x4xf32>
      %132 = vector.shape_cast %131 : vector<1x2x16x4xf32> to vector<2x16x4xf32>
      %c10 = arith.constant 10 : index
      %c1_151 = arith.constant 1 : index
      %c0_152 = arith.constant 0 : index
      %133 = vector.load %arg10[%c10, %c1_151, %c0_152] : memref<12x18x4xf32, #tpu.memory_space<vmem>>, vector<2x16x4xf32>
      tpu.vector_store %arg10[%c10, %c1_151, %c0_152], %132 {strides = array<i32>} : memref<12x18x4xf32, #tpu.memory_space<vmem>>, vector<2x16x4xf32>,
    } else {
    }
    %c0_9 = arith.constant 0 : index
    %c0_10 = arith.constant 0 : index
    %c0_11 = arith.constant 0 : index
    %11 = vector.load %arg10[%c0_9, %c0_10, %c0_11] : memref<12x18x4xf32, #tpu.memory_space<vmem>>, vector<12x16x4xf32>
    %c0_12 = arith.constant 0 : index
    %c0_13 = arith.constant 0 : index
    %c0_14 = arith.constant 0 : index
    %12 = vector.load %arg11[%c0_12, %c0_13, %c0_14] : memref<12x16x12xf32, #tpu.memory_space<vmem>>, vector<12x16x4xf32>
    tpu.vector_store %arg11[%c0_12, %c0_13, %c0_14], %11 {strides = array<i32>} : memref<12x16x12xf32, #tpu.memory_space<vmem>>, vector<12x16x4xf32>,
    %c0_15 = arith.constant 0 : index
    %c1_16 = arith.constant 1 : index
    %c0_17 = arith.constant 0 : index
    %13 = vector.load %arg10[%c0_15, %c1_16, %c0_17] : memref<12x18x4xf32, #tpu.memory_space<vmem>>, vector<12x16x4xf32>
    %c0_18 = arith.constant 0 : index
    %c0_19 = arith.constant 0 : index
    %c4 = arith.constant 4 : index
    %14 = vector.load %arg11[%c0_18, %c0_19, %c4] : memref<12x16x12xf32, #tpu.memory_space<vmem>>, vector<12x16x4xf32>
    tpu.vector_store %arg11[%c0_18, %c0_19, %c4], %13 {strides = array<i32>} : memref<12x16x12xf32, #tpu.memory_space<vmem>>, vector<12x16x4xf32>,
    %c0_20 = arith.constant 0 : index
    %c2_21 = arith.constant 2 : index
    %c0_22 = arith.constant 0 : index
    %15 = vector.load %arg10[%c0_20, %c2_21, %c0_22] : memref<12x18x4xf32, #tpu.memory_space<vmem>>, vector<12x16x4xf32>
    %c0_23 = arith.constant 0 : index
    %c0_24 = arith.constant 0 : index
    %c8 = arith.constant 8 : index
    %16 = vector.load %arg11[%c0_23, %c0_24, %c8] : memref<12x16x12xf32, #tpu.memory_space<vmem>>, vector<12x16x4xf32>
    tpu.vector_store %arg11[%c0_23, %c0_24, %c8], %15 {strides = array<i32>} : memref<12x16x12xf32, #tpu.memory_space<vmem>>, vector<12x16x4xf32>,
    %c0_25 = arith.constant 0 : index
    %c0_26 = arith.constant 0 : index
    %c0_27 = arith.constant 0 : index
    %17 = vector.load %arg11[%c0_25, %c0_26, %c0_27] : memref<12x16x12xf32, #tpu.memory_space<vmem>>, vector<10x16x12xf32>
    %18 = vector.shape_cast %17 : vector<10x16x12xf32> to vector<160x12xf32>
    %c0_28 = arith.constant 0 : index
    %c0_29 = arith.constant 0 : index
    %c0_30 = arith.constant 0 : index
    %19 = vector.load %arg5[%c0_28, %c0_29, %c0_30] : memref<3x12x4xf32, #tpu.memory_space<vmem>>, vector<1x12x4xf32>
    %20 = vector.shape_cast %19 : vector<1x12x4xf32> to vector<12x4xf32>
    %cst_31 = arith.constant dense<0.000000e+00> : vector<160x4xf32>
    %21 = tpu.matmul %18, %20, %cst_31 {dimension_numbers = #tpu.dot_dimension_numbers<[1], [0], [0], [1], [0, 0, 1, 1], [], []>} : vector<160x12xf32>, vector<12x4xf32>, vector<160x4xf32> -> vector<160x4xf32>
    %c0_32 = arith.constant 0 : index
    %c0_33 = arith.constant 0 : index
    %22 = vector.load %arg14[%c0_32, %c0_33] : memref<160x4xf32, #tpu.memory_space<vmem>>, vector<160x4xf32>
    tpu.vector_store %arg14[%c0_32, %c0_33], %21 {strides = array<i32>} : memref<160x4xf32, #tpu.memory_space<vmem>>, vector<160x4xf32>,
    %c0_34 = arith.constant 0 : index
    %c0_35 = arith.constant 0 : index
    %23 = vector.load %arg14[%c0_34, %c0_35] : memref<160x4xf32, #tpu.memory_space<vmem>>, vector<160x4xf32>
    %c1_36 = arith.constant 1 : index
    %c0_37 = arith.constant 0 : index
    %c0_38 = arith.constant 0 : index
    %24 = vector.load %arg11[%c1_36, %c0_37, %c0_38] : memref<12x16x12xf32, #tpu.memory_space<vmem>>, vector<10x16x12xf32>
    %25 = vector.shape_cast %24 : vector<10x16x12xf32> to vector<160x12xf32>
    %c1_39 = arith.constant 1 : index
    %c0_40 = arith.constant 0 : index
    %c0_41 = arith.constant 0 : index
    %26 = vector.load %arg5[%c1_39, %c0_40, %c0_41] : memref<3x12x4xf32, #tpu.memory_space<vmem>>, vector<1x12x4xf32>
    %27 = vector.shape_cast %26 : vector<1x12x4xf32> to vector<12x4xf32>
    %cst_42 = arith.constant dense<0.000000e+00> : vector<160x4xf32>
    %28 = tpu.matmul %25, %27, %cst_42 {dimension_numbers = #tpu.dot_dimension_numbers<[1], [0], [0], [1], [0, 0, 1, 1], [], []>} : vector<160x12xf32>, vector<12x4xf32>, vector<160x4xf32> -> vector<160x4xf32>
    %29 = arith.addf %23, %28 : vector<160x4xf32>
    %c0_43 = arith.constant 0 : index
    %c0_44 = arith.constant 0 : index
    %30 = vector.load %arg14[%c0_43, %c0_44] : memref<160x4xf32, #tpu.memory_space<vmem>>, vector<160x4xf32>
    tpu.vector_store %arg14[%c0_43, %c0_44], %29 {strides = array<i32>} : memref<160x4xf32, #tpu.memory_space<vmem>>, vector<160x4xf32>,
    %c0_45 = arith.constant 0 : index
    %c0_46 = arith.constant 0 : index
    %31 = vector.load %arg14[%c0_45, %c0_46] : memref<160x4xf32, #tpu.memory_space<vmem>>, vector<160x4xf32>
    %c2_47 = arith.constant 2 : index
    %c0_48 = arith.constant 0 : index
    %c0_49 = arith.constant 0 : index
    %32 = vector.load %arg11[%c2_47, %c0_48, %c0_49] : memref<12x16x12xf32, #tpu.memory_space<vmem>>, vector<10x16x12xf32>
    %33 = vector.shape_cast %32 : vector<10x16x12xf32> to vector<160x12xf32>
    %c2_50 = arith.constant 2 : index
    %c0_51 = arith.constant 0 : index
    %c0_52 = arith.constant 0 : index
    %34 = vector.load %arg5[%c2_50, %c0_51, %c0_52] : memref<3x12x4xf32, #tpu.memory_space<vmem>>, vector<1x12x4xf32>
    %35 = vector.shape_cast %34 : vector<1x12x4xf32> to vector<12x4xf32>
    %cst_53 = arith.constant dense<0.000000e+00> : vector<160x4xf32>
    %36 = tpu.matmul %33, %35, %cst_53 {dimension_numbers = #tpu.dot_dimension_numbers<[1], [0], [0], [1], [0, 0, 1, 1], [], []>} : vector<160x12xf32>, vector<12x4xf32>, vector<160x4xf32> -> vector<160x4xf32>
    %37 = arith.addf %31, %36 : vector<160x4xf32>
    %c0_54 = arith.constant 0 : index
    %c0_55 = arith.constant 0 : index
    %38 = vector.load %arg14[%c0_54, %c0_55] : memref<160x4xf32, #tpu.memory_space<vmem>>, vector<160x4xf32>
    tpu.vector_store %arg14[%c0_54, %c0_55], %37 {strides = array<i32>} : memref<160x4xf32, #tpu.memory_space<vmem>>, vector<160x4xf32>,
    %c0_56 = arith.constant 0 : index
    %c0_57 = arith.constant 0 : index
    %39 = vector.load %arg14[%c0_56, %c0_57] : memref<160x4xf32, #tpu.memory_space<vmem>>, vector<160x4xf32>
    %c0_58 = arith.constant 0 : index
    %c0_59 = arith.constant 0 : index
    %40 = vector.load %arg6[%c0_58, %c0_59] : memref<1x4xf32, #tpu.memory_space<vmem>>, vector<1x4xf32>
    %41 = vector.broadcast %40 : vector<1x4xf32> to vector<160x4xf32>
    %42 = arith.addf %39, %41 : vector<160x4xf32>
    %cst_60 = arith.constant 5.000000e-01 : f32
    %43 = vector.broadcast %cst_60 : f32 to vector<160x4xf32>
    %44 = arith.mulf %43, %42 : vector<160x4xf32>
    %cst_61 = arith.constant 0.707106769 : f32
    %45 = vector.broadcast %cst_61 : f32 to vector<160x4xf32>
    %46 = arith.mulf %42, %45 : vector<160x4xf32>
    %47 = math.absf %46 : vector<160x4xf32>
    %cst_62 = arith.constant 0.327591091 : f32
    %48 = vector.broadcast %cst_62 : f32 to vector<160x4xf32>
    %49 = arith.mulf %48, %47 : vector<160x4xf32>
    %cst_63 = arith.constant 1.000000e+00 : f32
    %50 = vector.broadcast %cst_63 : f32 to vector<160x4xf32>
    %51 = arith.addf %50, %49 : vector<160x4xf32>
    %cst_64 = arith.constant 1.000000e+00 : f32
    %52 = vector.broadcast %cst_64 : f32 to vector<160x4xf32>
    %53 = arith.divf %52, %51 : vector<160x4xf32>
    %cst_65 = arith.constant 1.06140542 : f32
    %54 = vector.broadcast %cst_65 : f32 to vector<160x4xf32>
    %55 = arith.mulf %54, %53 : vector<160x4xf32>
    %cst_66 = arith.constant -1.45315206 : f32
    %56 = vector.broadcast %cst_66 : f32 to vector<160x4xf32>
    %57 = arith.addf %55, %56 : vector<160x4xf32>
    %58 = arith.mulf %57, %53 : vector<160x4xf32>
    %cst_67 = arith.constant 1.42141378 : f32
    %59 = vector.broadcast %cst_67 : f32 to vector<160x4xf32>
    %60 = arith.addf %58, %59 : vector<160x4xf32>
    %61 = arith.mulf %60, %53 : vector<160x4xf32>
    %cst_68 = arith.constant -0.284496725 : f32
    %62 = vector.broadcast %cst_68 : f32 to vector<160x4xf32>
    %63 = arith.addf %61, %62 : vector<160x4xf32>
    %64 = arith.mulf %63, %53 : vector<160x4xf32>
    %cst_69 = arith.constant 0.254829586 : f32
    %65 = vector.broadcast %cst_69 : f32 to vector<160x4xf32>
    %66 = arith.addf %64, %65 : vector<160x4xf32>
    %67 = arith.mulf %66, %53 : vector<160x4xf32>
    %cst_70 = arith.constant 0.000000e+00 : f32
    %68 = vector.broadcast %cst_70 : f32 to vector<160x4xf32>
    %69 = arith.subf %68, %47 : vector<160x4xf32>
    %70 = arith.mulf %69, %47 : vector<160x4xf32>
    %71 = math.exp %70 : vector<160x4xf32>
    %72 = arith.mulf %67, %71 : vector<160x4xf32>
    %cst_71 = arith.constant 1.000000e+00 : f32
    %73 = vector.broadcast %cst_71 : f32 to vector<160x4xf32>
    %74 = arith.subf %73, %72 : vector<160x4xf32>
    %cst_72 = arith.constant 0.000000e+00 : f32
    %75 = vector.broadcast %cst_72 : f32 to vector<160x4xf32>
    %76 = arith.cmpf oge, %46, %75 : vector<160x4xf32>
    %cst_73 = arith.constant 0.000000e+00 : f32
    %77 = vector.broadcast %cst_73 : f32 to vector<160x4xf32>
    %78 = arith.subf %77, %74 : vector<160x4xf32>
    %79 = arith.select %76, %74, %78 : vector<160x4xi1>, vector<160x4xf32>
    %cst_74 = arith.constant 1.000000e+00 : f32
    %80 = vector.broadcast %cst_74 : f32 to vector<160x4xf32>
    %81 = arith.addf %80, %79 : vector<160x4xf32>
    %82 = arith.mulf %44, %81 : vector<160x4xf32>
    %cst_75 = arith.constant 0.000000e+00 : f32
    %83 = vector.broadcast %cst_75 : f32 to vector<10x18x4xf32>
    %c0_76 = arith.constant 0 : index
    %c0_77 = arith.constant 0 : index
    %c0_78 = arith.constant 0 : index
    %84 = vector.load %arg12[%c0_76, %c0_77, %c0_78] : memref<10x18x4xf32, #tpu.memory_space<vmem>>, vector<10x18x4xf32>
    tpu.vector_store %arg12[%c0_76, %c0_77, %c0_78], %83 {strides = array<i32>} : memref<10x18x4xf32, #tpu.memory_space<vmem>>, vector<10x18x4xf32>,
    %85 = vector.shape_cast %82 : vector<160x4xf32> to vector<10x16x4xf32>
    %c0_79 = arith.constant 0 : index
    %c1_80 = arith.constant 1 : index
    %c0_81 = arith.constant 0 : index
    %86 = vector.load %arg12[%c0_79, %c1_80, %c0_81] : memref<10x18x4xf32, #tpu.memory_space<vmem>>, vector<10x16x4xf32>
    tpu.vector_store %arg12[%c0_79, %c1_80, %c0_81], %85 {strides = array<i32>} : memref<10x18x4xf32, #tpu.memory_space<vmem>>, vector<10x16x4xf32>,
    %c0_i32_82 = arith.constant 0 : i32
    %87 = arith.cmpi eq, %arg1, %c0_i32_82 : i32
    %88 = arith.extui %87 : i1 to i32
    %c0_i32_83 = arith.constant 0 : i32
    %89 = arith.cmpi ne, %88, %c0_i32_83 : i32
    scf.if %89 {
      %cst_147 = arith.constant 0.000000e+00 : f32
      %131 = vector.broadcast %cst_147 : f32 to vector<18x4xf32>
      %c0_148 = arith.constant 0 : index
      %c0_149 = arith.constant 0 : index
      %c0_150 = arith.constant 0 : index
      %132 = vector.load %arg12[%c0_148, %c0_149, %c0_150] : memref<10x18x4xf32, #tpu.memory_space<vmem>>, vector<1x18x4xf32>
      %133 = vector.shape_cast %132 : vector<1x18x4xf32> to vector<18x4xf32>
      %134 = vector.shape_cast %131 : vector<18x4xf32> to vector<1x18x4xf32>
      tpu.vector_store %arg12[%c0_148, %c0_149, %c0_150], %134 {strides = array<i32>} : memref<10x18x4xf32, #tpu.memory_space<vmem>>, vector<1x18x4xf32>,
    } else {
    }
    %c1_i32_84 = arith.constant 1 : i32
    %90 = arith.cmpi eq, %arg1, %c1_i32_84 : i32
    %91 = arith.extui %90 : i1 to i32
    %c0_i32_85 = arith.constant 0 : i32
    %92 = arith.cmpi ne, %91, %c0_i32_85 : i32
    scf.if %92 {
      %cst_147 = arith.constant 0.000000e+00 : f32
      %131 = vector.broadcast %cst_147 : f32 to vector<18x4xf32>
      %c9 = arith.constant 9 : index
      %c0_148 = arith.constant 0 : index
      %c0_149 = arith.constant 0 : index
      %132 = vector.load %arg12[%c9, %c0_148, %c0_149] : memref<10x18x4xf32, #tpu.memory_space<vmem>>, vector<1x18x4xf32>
      %133 = vector.shape_cast %132 : vector<1x18x4xf32> to vector<18x4xf32>
      %134 = vector.shape_cast %131 : vector<18x4xf32> to vector<1x18x4xf32>
      tpu.vector_store %arg12[%c9, %c0_148, %c0_149], %134 {strides = array<i32>} : memref<10x18x4xf32, #tpu.memory_space<vmem>>, vector<1x18x4xf32>,
    } else {
    }
    %c0_86 = arith.constant 0 : index
    %c0_87 = arith.constant 0 : index
    %c0_88 = arith.constant 0 : index
    %93 = vector.load %arg12[%c0_86, %c0_87, %c0_88] : memref<10x18x4xf32, #tpu.memory_space<vmem>>, vector<10x16x4xf32>
    %c0_89 = arith.constant 0 : index
    %c0_90 = arith.constant 0 : index
    %c0_91 = arith.constant 0 : index
    %94 = vector.load %arg13[%c0_89, %c0_90, %c0_91] : memref<10x16x12xf32, #tpu.memory_space<vmem>>, vector<10x16x4xf32>
    tpu.vector_store %arg13[%c0_89, %c0_90, %c0_91], %93 {strides = array<i32>} : memref<10x16x12xf32, #tpu.memory_space<vmem>>, vector<10x16x4xf32>,
    %c0_92 = arith.constant 0 : index
    %c1_93 = arith.constant 1 : index
    %c0_94 = arith.constant 0 : index
    %95 = vector.load %arg12[%c0_92, %c1_93, %c0_94] : memref<10x18x4xf32, #tpu.memory_space<vmem>>, vector<10x16x4xf32>
    %c0_95 = arith.constant 0 : index
    %c0_96 = arith.constant 0 : index
    %c4_97 = arith.constant 4 : index
    %96 = vector.load %arg13[%c0_95, %c0_96, %c4_97] : memref<10x16x12xf32, #tpu.memory_space<vmem>>, vector<10x16x4xf32>
    tpu.vector_store %arg13[%c0_95, %c0_96, %c4_97], %95 {strides = array<i32>} : memref<10x16x12xf32, #tpu.memory_space<vmem>>, vector<10x16x4xf32>,
    %c0_98 = arith.constant 0 : index
    %c2_99 = arith.constant 2 : index
    %c0_100 = arith.constant 0 : index
    %97 = vector.load %arg12[%c0_98, %c2_99, %c0_100] : memref<10x18x4xf32, #tpu.memory_space<vmem>>, vector<10x16x4xf32>
    %c0_101 = arith.constant 0 : index
    %c0_102 = arith.constant 0 : index
    %c8_103 = arith.constant 8 : index
    %98 = vector.load %arg13[%c0_101, %c0_102, %c8_103] : memref<10x16x12xf32, #tpu.memory_space<vmem>>, vector<10x16x4xf32>
    tpu.vector_store %arg13[%c0_101, %c0_102, %c8_103], %97 {strides = array<i32>} : memref<10x16x12xf32, #tpu.memory_space<vmem>>, vector<10x16x4xf32>,
    %c0_104 = arith.constant 0 : index
    %c0_105 = arith.constant 0 : index
    %c0_106 = arith.constant 0 : index
    %99 = vector.load %arg13[%c0_104, %c0_105, %c0_106] : memref<10x16x12xf32, #tpu.memory_space<vmem>>, vector<8x16x12xf32>
    %100 = vector.shape_cast %99 : vector<8x16x12xf32> to vector<128x12xf32>
    %c0_107 = arith.constant 0 : index
    %c0_108 = arith.constant 0 : index
    %c0_109 = arith.constant 0 : index
    %101 = vector.load %arg7[%c0_107, %c0_108, %c0_109] : memref<3x12x4xf32, #tpu.memory_space<vmem>>, vector<1x12x4xf32>
    %102 = vector.shape_cast %101 : vector<1x12x4xf32> to vector<12x4xf32>
    %cst_110 = arith.constant dense<0.000000e+00> : vector<128x4xf32>
    %103 = tpu.matmul %100, %102, %cst_110 {dimension_numbers = #tpu.dot_dimension_numbers<[1], [0], [0], [1], [0, 0, 1, 1], [], []>} : vector<128x12xf32>, vector<12x4xf32>, vector<128x4xf32> -> vector<128x4xf32>
    %c0_111 = arith.constant 0 : index
    %c0_112 = arith.constant 0 : index
    %104 = vector.load %arg14[%c0_111, %c0_112] : memref<160x4xf32, #tpu.memory_space<vmem>>, vector<128x4xf32>
    tpu.vector_store %arg14[%c0_111, %c0_112], %103 {strides = array<i32>} : memref<160x4xf32, #tpu.memory_space<vmem>>, vector<128x4xf32>,
    %c0_113 = arith.constant 0 : index
    %c0_114 = arith.constant 0 : index
    %105 = vector.load %arg14[%c0_113, %c0_114] : memref<160x4xf32, #tpu.memory_space<vmem>>, vector<128x4xf32>
    %c1_115 = arith.constant 1 : index
    %c0_116 = arith.constant 0 : index
    %c0_117 = arith.constant 0 : index
    %106 = vector.load %arg13[%c1_115, %c0_116, %c0_117] : memref<10x16x12xf32, #tpu.memory_space<vmem>>, vector<8x16x12xf32>
    %107 = vector.shape_cast %106 : vector<8x16x12xf32> to vector<128x12xf32>
    %c1_118 = arith.constant 1 : index
    %c0_119 = arith.constant 0 : index
    %c0_120 = arith.constant 0 : index
    %108 = vector.load %arg7[%c1_118, %c0_119, %c0_120] : memref<3x12x4xf32, #tpu.memory_space<vmem>>, vector<1x12x4xf32>
    %109 = vector.shape_cast %108 : vector<1x12x4xf32> to vector<12x4xf32>
    %cst_121 = arith.constant dense<0.000000e+00> : vector<128x4xf32>
    %110 = tpu.matmul %107, %109, %cst_121 {dimension_numbers = #tpu.dot_dimension_numbers<[1], [0], [0], [1], [0, 0, 1, 1], [], []>} : vector<128x12xf32>, vector<12x4xf32>, vector<128x4xf32> -> vector<128x4xf32>
    %111 = arith.addf %105, %110 : vector<128x4xf32>
    %c0_122 = arith.constant 0 : index
    %c0_123 = arith.constant 0 : index
    %112 = vector.load %arg14[%c0_122, %c0_123] : memref<160x4xf32, #tpu.memory_space<vmem>>, vector<128x4xf32>
    tpu.vector_store %arg14[%c0_122, %c0_123], %111 {strides = array<i32>} : memref<160x4xf32, #tpu.memory_space<vmem>>, vector<128x4xf32>,
    %c0_124 = arith.constant 0 : index
    %c0_125 = arith.constant 0 : index
    %113 = vector.load %arg14[%c0_124, %c0_125] : memref<160x4xf32, #tpu.memory_space<vmem>>, vector<128x4xf32>
    %c2_126 = arith.constant 2 : index
    %c0_127 = arith.constant 0 : index
    %c0_128 = arith.constant 0 : index
    %114 = vector.load %arg13[%c2_126, %c0_127, %c0_128] : memref<10x16x12xf32, #tpu.memory_space<vmem>>, vector<8x16x12xf32>
    %115 = vector.shape_cast %114 : vector<8x16x12xf32> to vector<128x12xf32>
    %c2_129 = arith.constant 2 : index
    %c0_130 = arith.constant 0 : index
    %c0_131 = arith.constant 0 : index
    %116 = vector.load %arg7[%c2_129, %c0_130, %c0_131] : memref<3x12x4xf32, #tpu.memory_space<vmem>>, vector<1x12x4xf32>
    %117 = vector.shape_cast %116 : vector<1x12x4xf32> to vector<12x4xf32>
    %cst_132 = arith.constant dense<0.000000e+00> : vector<128x4xf32>
    %118 = tpu.matmul %115, %117, %cst_132 {dimension_numbers = #tpu.dot_dimension_numbers<[1], [0], [0], [1], [0, 0, 1, 1], [], []>} : vector<128x12xf32>, vector<12x4xf32>, vector<128x4xf32> -> vector<128x4xf32>
    %119 = arith.addf %113, %118 : vector<128x4xf32>
    %c0_133 = arith.constant 0 : index
    %c0_134 = arith.constant 0 : index
    %120 = vector.load %arg14[%c0_133, %c0_134] : memref<160x4xf32, #tpu.memory_space<vmem>>, vector<128x4xf32>
    tpu.vector_store %arg14[%c0_133, %c0_134], %119 {strides = array<i32>} : memref<160x4xf32, #tpu.memory_space<vmem>>, vector<128x4xf32>,
    %c0_135 = arith.constant 0 : index
    %c0_136 = arith.constant 0 : index
    %121 = vector.load %arg14[%c0_135, %c0_136] : memref<160x4xf32, #tpu.memory_space<vmem>>, vector<128x4xf32>
    %c0_137 = arith.constant 0 : index
    %c0_138 = arith.constant 0 : index
    %122 = vector.load %arg8[%c0_137, %c0_138] : memref<1x4xf32, #tpu.memory_space<vmem>>, vector<1x4xf32>
    %123 = vector.broadcast %122 : vector<1x4xf32> to vector<128x4xf32>
    %124 = arith.addf %121, %123 : vector<128x4xf32>
    %c0_139 = arith.constant 0 : index
    %c0_140 = arith.constant 0 : index
    %c0_141 = arith.constant 0 : index
    %c0_142 = arith.constant 0 : index
    %125 = vector.load %arg3[%c0_139, %c0_140, %c0_141, %c0_142] : memref<1x8x16x4xf32, #tpu.memory_space<vmem>>, vector<1x8x16x4xf32>
    %126 = vector.shape_cast %125 : vector<1x8x16x4xf32> to vector<8x16x4xf32>
    %127 = vector.shape_cast %126 : vector<8x16x4xf32> to vector<128x4xf32>
    %128 = arith.addf %124, %127 : vector<128x4xf32>
    %129 = vector.shape_cast %128 : vector<128x4xf32> to vector<1x8x16x4xf32>
    %c0_143 = arith.constant 0 : index
    %c0_144 = arith.constant 0 : index
    %c0_145 = arith.constant 0 : index
    %c0_146 = arith.constant 0 : index
    %130 = vector.load %arg9[%c0_143, %c0_144, %c0_145, %c0_146] : memref<1x8x16x4xf32, #tpu.memory_space<vmem>>, vector<1x8x16x4xf32>
    tpu.vector_store %arg9[%c0_143, %c0_144, %c0_145, %c0_146], %129 {strides = array<i32>} : memref<1x8x16x4xf32, #tpu.memory_space<vmem>>, vector<1x8x16x4xf32>,
    return
  }
  func.func @transform_0(%arg0: i32, %arg1: i32) -> (i32, i32, i32, i32) {
    %c4_i32 = arith.constant 4 : i32
    %0 = arith.muli %arg1, %c4_i32 : i32
    %c1_i32 = arith.constant 1 : i32
    %1 = arith.subi %0, %c1_i32 : i32
    %c0_i32 = arith.constant 0 : i32
    %2 = arith.maxsi %1, %c0_i32 : i32
    %c0_i32_0 = arith.constant 0 : i32
    %c0_i32_1 = arith.constant 0 : i32
    %c0_i32_2 = arith.constant 0 : i32
    return %arg0, %2, %c0_i32_0, %c0_i32_1 : i32, i32, i32, i32
  }
  func.func @transform_1(%arg0: i32, %arg1: i32) -> (i32, i32, i32, i32) {
    %c0_i32 = arith.constant 0 : i32
    %c0_i32_0 = arith.constant 0 : i32
    %c0_i32_1 = arith.constant 0 : i32
    return %arg0, %arg1, %c0_i32, %c0_i32_0 : i32, i32, i32, i32
  }
  func.func @transform_2(%arg0: i32, %arg1: i32) -> (i32, i32, i32, i32) {
    %c4_i32 = arith.constant 4 : i32
    %0 = arith.muli %arg1, %c4_i32 : i32
    %c4_i32_0 = arith.constant 4 : i32
    %1 = arith.addi %0, %c4_i32_0 : i32
    %c7_i32 = arith.constant 7 : i32
    %2 = arith.minsi %1, %c7_i32 : i32
    %c0_i32 = arith.constant 0 : i32
    %c0_i32_1 = arith.constant 0 : i32
    %c0_i32_2 = arith.constant 0 : i32
    return %arg0, %2, %c0_i32, %c0_i32_1 : i32, i32, i32, i32
  }
  func.func @transform_3(%arg0: i32, %arg1: i32) -> (i32, i32, i32) {
    %c0_i32 = arith.constant 0 : i32
    %c0_i32_0 = arith.constant 0 : i32
    %c0_i32_1 = arith.constant 0 : i32
    %c0_i32_2 = arith.constant 0 : i32
    return %c0_i32, %c0_i32_0, %c0_i32_1 : i32, i32, i32
  }
  func.func @transform_4(%arg0: i32, %arg1: i32) -> (i32, i32) {
    %c0_i32 = arith.constant 0 : i32
    %c0_i32_0 = arith.constant 0 : i32
    %c0_i32_1 = arith.constant 0 : i32
    return %c0_i32, %c0_i32_0 : i32, i32
  }
  func.func @transform_5(%arg0: i32, %arg1: i32) -> (i32, i32, i32) {
    %c0_i32 = arith.constant 0 : i32
    %c0_i32_0 = arith.constant 0 : i32
    %c0_i32_1 = arith.constant 0 : i32
    %c0_i32_2 = arith.constant 0 : i32
    return %c0_i32, %c0_i32_0, %c0_i32_1 : i32, i32, i32
  }
  func.func @transform_6(%arg0: i32, %arg1: i32) -> (i32, i32) {
    %c0_i32 = arith.constant 0 : i32
    %c0_i32_0 = arith.constant 0 : i32
    %c0_i32_1 = arith.constant 0 : i32
    return %c0_i32, %c0_i32_0 : i32, i32
  }
  func.func @transform_7(%arg0: i32, %arg1: i32) -> (i32, i32, i32, i32) {
    %c0_i32 = arith.constant 0 : i32
    %c0_i32_0 = arith.constant 0 : i32
    %c0_i32_1 = arith.constant 0 : i32
    return %arg0, %arg1, %c0_i32, %c0_i32_0 : i32, i32, i32, i32
  }
}

</mosaic_0001>

<bundles_post_ra>
// kernel: dblock_forward.8
= control target key start
LH: loop header
LB: loop body
LE: loop exit
PB: predicated region body
PF: predicated region fallthrough
CT: control target
= control target key end

     0   :  { %s3832_s24 = smov 0   ;;  %s3834_s25 = smov 0   ;;  %s5488_s0 = inlined_call_operand.vmem [shape: f32[2,16,16,4], index: 0, kind: input, shape index: {}, may-alias: {0,1,2}]   ;;  %s5489_s1 = inlined_call_operand.vmem [shape: f32[2,16,16,4], index: 1, kind: input, shape index: {}, may-alias: {0,1,2}]   ;;  %s5490_s2 = inlined_call_operand.vmem [shape: f32[2,16,16,4], index: 2, kind: input, shape index: {}, may-alias: {0,1,2}]   ;;  %s5491_s3 = inlined_call_operand.vmem [shape: f32[3,12,4], index: 3, kind: input, shape index: {}]   ;;  %s5492_s4 = inlined_call_operand.vmem [shape: f32[1,4], index: 4, kind: input, shape index: {}]   ;;  %s5493_s5 = inlined_call_operand.vmem [shape: f32[3,12,4], index: 5, kind: input, shape index: {}]   ;;  %s5494_s6 = inlined_call_operand.vmem [shape: f32[1,4], index: 6, kind: input, shape index: {}]   ;;  %s5495_s7 = inlined_call_operand.vmem [shape: f32[2,16,16,4], index: 7, kind: output, shape index: {}]  }
   0x1   :  { %s3836_s26 = smov 0   ;;  %s3838_s27 = smov 0  }
   0x2   :  { %s3840_s28 = smov 0  }
   0x3 LB: > { %s26_s29 = sadd.s32 1, %s3777_s26  ;;  %s29_s30 = sadd.s32 1, %s3781_s27  ;;  %s3785_s28 = sphi %s3840_s28, %s17_s28   ;;  %s3781_s27 = sphi %s3838_s27, %s5513_s27   ;;  %s3777_s26 = sphi %s3836_s26, %s5512_s26   ;;  %s3773_s25 = sphi %s3834_s25, %s5511_s25   ;;  %s3769_s24 = sphi %s3832_s24, %s5510_s24  }
   0x4   : > { %p27_p0 = scmp.ge.s32.totalorder %s26_s29, 2  ;;  %p3465_p1 = scmp.ge.s32.totalorder %s3785_s28, 1 }
   0x5   : > { %p327_p2 = scmp.lt.s32.totalorder %s3785_s28, 5 }
   0x6   : > { %s5515_s29 = smov (%p27_p0, %s26_s29), 0  ;;  %s5517_s30 = smov (!%p27_p0, %s29_s30), %s3781_s27 }
   0x7   : > { %p328_p3 = pnand %p3465_p1, %p327_p2  ;;  %p31_p4 = scmp.ge.s32.totalorder %s5517_s30, 2 }
   0x8   : > { %s3466_s8 = sshll.u32 (!%p328_p3), %s3769_s24, 2  ;;  %p402_p5 = scmp.lt.s32.totalorder (!%p328_p3), %s3773_s25, 1 }
   0x9   : > { %s5519_s30 = smov (%p31_p4, %s5517_s30), 0  ;;  %331 = sbr.rel (%p328_p3) target bundleno = 1207 (0x4b7), region = 48 }
   0xa   : > { %s3467_s9 = sadd.s32 (!%p328_p3), 4294967295, %s3466_s8  ;;  %s3472_s10 = sshll.u32 (!%p328_p3), %s3769_s24, 3 }
   0xb   : > { %p399_p6 = scmp.gt.s32.totalorder (!%p328_p3), %s3467_s9, 0  ;;  %p419_p7 = scmp.lt.s32.totalorder (!%p328_p3), %s3472_s10, 15 }
   0xc   : > { %s428_s13 = sadd.s32 (!%p328_p3), 4, %s3466_s8  ;;  %p3485_p11 = scmp.le.s32.totalorder (!%p328_p3), %s3769_s24, 0 }
   0xd   : > { %p429_p9 = scmp.lt.s32.totalorder (!%p328_p3), %s428_s13, 7 }
   0xe   : > { %vm457_vm0 = vcmask 31744   ;;  %v3787_v0 = vmov 0.0   ;;  %s5521_s25 = smov (!%p402_p5, %s3773_s25), 1  ;;  %s5523_s9 = smov (!%p399_p6, %s3467_s9), 0  ;;  %vm460_vm1 = vcmask 25600  }
   0xf   : > { %465 = vst.msk [vmem:[#allocation2 + $0x30] sm:$0xff] %vm457_vm0, %v3787_v0  ;;  %s3468_s11 = sshll.u32 %s5523_s9, 1  ;;  %s3878_s12 = sshll.u32 %s5521_s25, 5 }
  0x10   : > { %458 = vst.msk [vmem:[#allocation2] sm:$0xff] %vm457_vm0, %v3787_v0  ;;  %p404_p8 = scmp.lt.s32.totalorder %s3468_s11, 15  ;;  %s5525_s10 = smov (!%p419_p7, %s3472_s10), 15 }
  0x11   : > { %459 = vst.msk [vmem:[#allocation2 + $0x8] sm:$0xff] %vm457_vm0, %v3787_v0  ;;  %s3473_s14 = sshll.u32 %s5525_s10, 1  ;;  %s5529_s13 = smov (!%p429_p9, %s428_s13), 7 }
  0x12   : > { %462 = vst.msk [vmem:[#allocation2 + $0x18] sm:$0xff] %vm457_vm0, %v3787_v0  ;;  %s5527_s11 = smov (!%p404_p8, %s3468_s11), 15  ;;  %s3891_s16 = sadd.s32 %s3473_s14, %s3878_s12 }
  0x13   : > { %463 = vst.msk [vmem:[#allocation2 + $0x20] sm:$0xff] %vm457_vm0, %v3787_v0  ;;  %s3469_s15 = sshll.u32 %s5527_s11, 1  ;;  %s3475_s19 = sshll.u32 %s3891_s16, 3 }
  0x14   : > { %466 = vst.msk [vmem:[#allocation2 + $0x38] sm:$0xff] %vm457_vm0, %v3787_v0  ;;  %s408_s17 = sadd.s32 %s3878_s12, %s3469_s15  ;;  %s3911_s8 = scalar_lea.vmem %s5495_s7, %s3475_s19 }
  0x15   : > { %468 = vst.msk [vmem:[#allocation2 + $0x48] sm:$0xff] %vm457_vm0, %v3787_v0  ;;  %s3471_s18 = sshll.u32 %s408_s17, 3  ;;  %s3477_s9 = sshll.u32 %s5529_s13, 1 }
  0x16   : > { %469 = vst.msk [vmem:[#allocation2 + $0x50] sm:$0xff] %vm457_vm0, %v3787_v0  ;;  %s3904_s22 = scalar_lea.vmem %s5488_s0, %s3471_s18  ;;  %p434_p10 = scmp.lt.s32.totalorder %s3477_s9, 15 }
  0x17   : > { %471 = vst.msk [vmem:[#allocation2 + $0x60] sm:$0xff] %vm457_vm0, %v3787_v0  ;;  %s3958_s20 = scalar_lea.vmem %s5489_s1, %s3475_s19 }
  0x18   : > { %472 = vst.msk [vmem:[#allocation2 + $0x68] sm:$0xff] %vm457_vm0, %v3787_v0  ;;  %s5531_s9 = smov (!%p434_p10, %s3477_s9), 15  ;;  %v495_v1 = vld [vmem:[%s3958_s20] sm:$0xff]  ;;  %v496_v2 = vld [vmem:[%s3958_s20 + $0x8] sm:$0xff]  ;;  %v497_v3 = vld [vmem:[%s3958_s20 + $0x10] sm:$0xff] }
  0x19   : > { %474 = vst.msk [vmem:[#allocation2 + $0x78] sm:$0xff] %vm457_vm0, %v3787_v0  ;;  %s3478_s10 = sshll.u32 %s5531_s9, 1  ;;  %v498_v4 = vld [vmem:[%s3958_s20 + $0x18] sm:$0xff]  ;;  %v499_v5 = vld [vmem:[%s3958_s20 + $0x20] sm:$0xff]  ;;  %v500_v6 = vld [vmem:[%s3958_s20 + $0x28] sm:$0xff] }
  0x1a   : > { %475 = vst.msk [vmem:[#allocation2 + $0x80] sm:$0xff] %vm457_vm0, %v3787_v0  ;;  %s438_s11 = sadd.s32 %s3478_s10, %s3878_s12  ;;  %v501_v7 = vld [vmem:[%s3958_s20 + $0x30] sm:$0xff]  ;;  %v502_v8 = vld [vmem:[%s3958_s20 + $0x38] sm:$0xff]  ;;  %v503_v9 = vld [vmem:[%s3958_s20 + $0x40] sm:$0xff] }
  0x1b   : > { %477 = vst.msk [vmem:[#allocation2 + $0x90] sm:$0xff] %vm457_vm0, %v3787_v0  ;;  %s3480_s13 = sshll.u32 %s438_s11, 3  ;;  %v504_v10 = vld [vmem:[%s3958_s20 + $0x48] sm:$0xff]  ;;  %v505_v11 = vld [vmem:[%s3958_s20 + $0x50] sm:$0xff]  ;;  %v506_v12 = vld [vmem:[%s3958_s20 + $0x58] sm:$0xff] }
  0x1c   : > { %478 = vst.msk [vmem:[#allocation2 + $0x98] sm:$0xff] %vm457_vm0, %v3787_v0  ;;  %s3939_s17 = scalar_lea.vmem %s5490_s2, %s3480_s13  ;;  %v507_v13 = vld [vmem:[%s3958_s20 + $0x60] sm:$0xff]  ;;  %v508_v14 = vld [vmem:[%s3958_s20 + $0x68] sm:$0xff]  ;;  %v509_v15 = vld [vmem:[%s3958_s20 + $0x70] sm:$0xff] }
  0x1d   : > { %480 = vst.msk [vmem:[#allocation2 + $0xa8] sm:$0xff] %vm457_vm0, %v3787_v0  ;;  %v510_v16 = vld [vmem:[%s3958_s20 + $0x78] sm:$0xff] }
  0x1e   : > { %481 = vst.msk [vmem:[#allocation2 + $0xb0] sm:$0xff] %vm457_vm0, %v3787_v0 }
  0x1f   : > { %483 = vst.msk [vmem:[#allocation2 + $0xc0] sm:$0xff] %vm457_vm0, %v3787_v0 }
  0x20   : > { %484 = vst.msk [vmem:[#allocation2 + $0xc8] sm:$0xff] %vm457_vm0, %v3787_v0 }
  0x21   : > { %486 = vst.msk [vmem:[#allocation2 + $0xd8] sm:$0xff] %vm457_vm0, %v3787_v0 }
  0x22   : > { %487 = vst.msk [vmem:[#allocation2 + $0xe0] sm:$0xff] %vm457_vm0, %v3787_v0 }
  0x23   : > { %489 = vst.msk [vmem:[#allocation2 + $0xf0] sm:$0xff] %vm457_vm0, %v3787_v0 }
  0x24   : > { %490 = vst.msk [vmem:[#allocation2 + $0xf8] sm:$0xff] %vm457_vm0, %v3787_v0 }
  0x25   : > { %492 = vst.msk [vmem:[#allocation2 + $0x108] sm:$0xff] %vm457_vm0, %v3787_v0 }
  0x26   : > { %493 = vst.msk [vmem:[#allocation2 + $0x110] sm:$0xff] %vm457_vm0, %v3787_v0 }
  0x27   : > { %467 = vst.msk [vmem:[#allocation2 + $0x40] sm:$0x3] %vm460_vm1, %v3787_v0 }
  0x28   : > { %461 = vst.msk [vmem:[#allocation2 + $0x10] sm:$0x3] %vm460_vm1, %v3787_v0 }
  0x29   : > { %464 = vst.msk [vmem:[#allocation2 + $0x28] sm:$0x3] %vm460_vm1, %v3787_v0 }
  0x2a   : > { %470 = vst.msk [vmem:[#allocation2 + $0x58] sm:$0x3] %vm460_vm1, %v3787_v0 }
  0x2b   : > { %473 = vst.msk [vmem:[#allocation2 + $0x70] sm:$0x3] %vm460_vm1, %v3787_v0 }
  0x2c   : > { %476 = vst.msk [vmem:[#allocation2 + $0x88] sm:$0x3] %vm460_vm1, %v3787_v0 }
  0x2d   : > { %479 = vst.msk [vmem:[#allocation2 + $0xa0] sm:$0x3] %vm460_vm1, %v3787_v0 }
  0x2e   : > { %482 = vst.msk [vmem:[#allocation2 + $0xb8] sm:$0x3] %vm460_vm1, %v3787_v0 }
  0x2f   : > { %485 = vst.msk [vmem:[#allocation2 + $0xd0] sm:$0x3] %vm460_vm1, %v3787_v0 }
  0x30   : > { %488 = vst.msk [vmem:[#allocation2 + $0xe8] sm:$0x3] %vm460_vm1, %v3787_v0 }
  0x31   : > { %491 = vst.msk [vmem:[#allocation2 + $0x100] sm:$0x3] %vm460_vm1, %v3787_v0 }
  0x32   : > { %494 = vst.msk [vmem:[#allocation2 + $0x118] sm:$0x3] %vm460_vm1, %v3787_v0 }
  0x33   : > { %512 = vst.msk [vmem:[#allocation2 + $0x31] sm:$0xff] %vm457_vm0, %v495_v1 }
  0x34   : > { %513 = vst.msk [vmem:[#allocation2 + $0x39] sm:$0xff] %vm457_vm0, %v496_v2 }
  0x35   : > { %514 = vst.msk [vmem:[#allocation2 + $0x49] sm:$0xff] %vm457_vm0, %v497_v3 }
  0x36   : > { %515 = vst.msk [vmem:[#allocation2 + $0x51] sm:$0xff] %vm457_vm0, %v498_v4 }
  0x37   : > { %516 = vst.msk [vmem:[#allocation2 + $0x61] sm:$0xff] %vm457_vm0, %v499_v5 }
  0x38   : > { %517 = vst.msk [vmem:[#allocation2 + $0x69] sm:$0xff] %vm457_vm0, %v500_v6 }
  0x39   : > { %518 = vst.msk [vmem:[#allocation2 + $0x79] sm:$0xff] %vm457_vm0, %v501_v7 }
  0x3a   : > { %519 = vst.msk [vmem:[#allocation2 + $0x81] sm:$0xff] %vm457_vm0, %v502_v8 }
  0x3b   : > { %520 = vst.msk [vmem:[#allocation2 + $0x91] sm:$0xff] %vm457_vm0, %v503_v9 }
  0x3c   : > { %521 = vst.msk [vmem:[#allocation2 + $0x99] sm:$0xff] %vm457_vm0, %v504_v10 }
  0x3d   : > { %522 = vst.msk [vmem:[#allocation2 + $0xa9] sm:$0xff] %vm457_vm0, %v505_v11 }
  0x3e   : > { %523 = vst.msk [vmem:[#allocation2 + $0xb1] sm:$0xff] %vm457_vm0, %v506_v12  ;;  %531 = sbr.rel (%p3485_p11) target bundleno = 72 (0x48), region = 52 }
  0x3f   : > { %524 = vst.msk [vmem:[#allocation2 + $0xc1] sm:$0xff] %vm457_vm0, %v507_v13 }
  0x40   : > { %525 = vst.msk [vmem:[#allocation2 + $0xc9] sm:$0xff] %vm457_vm0, %v508_v14 }
  0x41   : > { %526 = vst.msk [vmem:[#allocation2 + $0xd9] sm:$0xff] %vm457_vm0, %v509_v15 }
  0x42   : > { %527 = vst.msk [vmem:[#allocation2 + $0xe1] sm:$0xff] %vm457_vm0, %v510_v16 }
  0x43   : > { %v532_v17 = vld [vmem:[%s3904_s22] sm:$0xff]  ;;  %v533_v18 = vld [vmem:[%s3904_s22 + $0x8] sm:$0xff]  ;;  %v534_v19 = vld [vmem:[%s3904_s22 + $0x10] sm:$0xff] }
  0x44   : > { %536 = vst.msk [vmem:[#allocation2 + $0x1] sm:$0xff] %vm457_vm0, %v532_v17  ;;  %v535_v20 = vld [vmem:[%s3904_s22 + $0x18] sm:$0xff] }
  0x45   : > { %537 = vst.msk [vmem:[#allocation2 + $0x9] sm:$0xff] %vm457_vm0, %v533_v18 }
  0x46   : > { %538 = vst.msk [vmem:[#allocation2 + $0x19] sm:$0xff] %vm457_vm0, %v534_v19 }
  0x47   : > { %539 = vst.msk [vmem:[#allocation2 + $0x21] sm:$0xff] %vm457_vm0, %v535_v20 }
  0x48 PF: > { %p3486_p12 = scmp.ge.s32.totalorder %s3769_s24, 1 }
  0x4a   : > { %543 = sbr.rel (%p3486_p12) target bundleno = 84 (0x54), region = 56 }
  0x4f   : > { %v544_v21 = vld [vmem:[%s3939_s17] sm:$0xff]  ;;  %v545_v22 = vld [vmem:[%s3939_s17 + $0x8] sm:$0xff]  ;;  %v546_v23 = vld [vmem:[%s3939_s17 + $0x10] sm:$0xff] }
  0x50   : > { %549 = vst.msk [vmem:[#allocation2 + $0xf1] sm:$0xff] %vm457_vm0, %v544_v21  ;;  %v547_v24 = vld [vmem:[%s3939_s17 + $0x18] sm:$0xff] }
  0x51   : > { %550 = vst.msk [vmem:[#allocation2 + $0xf9] sm:$0xff] %vm457_vm0, %v545_v22 }
  0x52   : > { %551 = vst.msk [vmem:[#allocation2 + $0x109] sm:$0xff] %vm457_vm0, %v546_v23 }
  0x53   : > { %552 = vst.msk [vmem:[#allocation2 + $0x111] sm:$0xff] %vm457_vm0, %v547_v24 }
  0x54 PF: > { %v612_v25 = vld [vmem:[#allocation2 + $0x81] sm:$0xff]  ;;  %v613_v26 = vld [vmem:[#allocation2 + $0x91] sm:$0xff]  ;;  %2367 = vst.msk [vmem:[#allocation4] sm:$0xff] %vm457_vm0, %v3787_v0  ;;  %s3788_s16 = smov 4   ;;  %v614_v27 = vld [vmem:[#allocation2 + $0x99] sm:$0xff]  ;;  %s3789_s19 = smov 8  }
  0x55   : > { %671 = vrot.lane.b32.xlu0 %v612_v25, %s3788_s16  ;;  %673 = vrot.lane.b32.xlu1 %v613_v26, %s3788_s16  ;;  %2368 = vst.msk [vmem:[#allocation4 + $0x8] sm:$0xff] %vm457_vm0, %v3787_v0  ;;  %v757_v28 = vld [vmem:[#allocation2 + $0x82] sm:$0xff]  ;;  %v758_v29 = vld [vmem:[#allocation2 + $0x92] sm:$0xff]  ;;  %v759_v30 = vld [vmem:[#allocation2 + $0x9a] sm:$0xff]  ;;  %vm721_vm2 = vcmask 64544   ;;  %vm974_vm3 = vcmask 1043456  }
  0x56   : > { %2369 = vst.msk [vmem:[#allocation4 + $0x10] sm:$0x3] %vm460_vm1, %v3787_v0  ;;  %675 = vrot.lane.b32.xlu2 %v614_v27, %s3788_s16  ;;  %v615_v31 = vld [vmem:[#allocation2 + $0xa9] sm:$0xff]  ;;  %v616_v33 = vld [vmem:[#allocation2 + $0xb1] sm:$0xff]  ;;  %v617_v35 = vld [vmem:[#allocation2 + $0xc1] sm:$0xff]  ;;  %vm866_vm4 = vcmask 97344  }
  0x57   : > { %2370 = vst.msk [vmem:[#allocation4 + $0x18] sm:$0xff] %vm457_vm0, %v3787_v0  ;;  %v760_v32 = vld [vmem:[#allocation2 + $0xaa] sm:$0xff]  ;;  %v761_v34 = vld [vmem:[#allocation2 + $0xb2] sm:$0xff]  ;;  %v762_v36 = vld [vmem:[#allocation2 + $0xc2] sm:$0xff]  ;;  %vm913_vm5 = vcmask 97280   ;;  %p3554_p13 = scmp.ne.s32.totalorder %s3769_s24, 0 }
  0x58   : > { %2371 = vst.msk [vmem:[#allocation4 + $0x20] sm:$0xff] %vm457_vm0, %v3787_v0  ;;  %v619_v37 = vld [vmem:[#allocation2 + $0xd9] sm:$0xff]  ;;  %v618_v39 = vld [vmem:[#allocation2 + $0xc9] sm:$0xff]  ;;  %v620_v41 = vld [vmem:[#allocation2 + $0xe1] sm:$0xff] }
  0x59   : > { %2372 = vst.msk [vmem:[#allocation4 + $0x28] sm:$0x3] %vm460_vm1, %v3787_v0  ;;  %v764_v38 = vld [vmem:[#allocation2 + $0xda] sm:$0xff]  ;;  %v763_v40 = vld [vmem:[#allocation2 + $0xca] sm:$0xff]  ;;  %v765_v42 = vld [vmem:[#allocation2 + $0xe2] sm:$0xff] }
  0x5a   : > { %2373 = vst.msk [vmem:[#allocation4 + $0x30] sm:$0xff] %vm457_vm0, %v3787_v0  ;;  %v603_v43 = vld [vmem:[#allocation2 + $0x19] sm:$0xff]  ;;  %v605_v45 = vld [vmem:[#allocation2 + $0x31] sm:$0xff]  ;;  %v604_v47 = vld [vmem:[#allocation2 + $0x21] sm:$0xff] }
  0x5b   : > { %2374 = vst.msk [vmem:[#allocation4 + $0x38] sm:$0xff] %vm457_vm0, %v3787_v0  ;;  %v748_v44 = vld [vmem:[#allocation2 + $0x1a] sm:$0xff]  ;;  %v750_v46 = vld [vmem:[#allocation2 + $0x32] sm:$0xff]  ;;  %v749_v48 = vld [vmem:[#allocation2 + $0x22] sm:$0xff] }
  0x5c   : > { %2375 = vst.msk [vmem:[#allocation4 + $0x40] sm:$0x3] %vm460_vm1, %v3787_v0  ;;  %v606_v49 = vld [vmem:[#allocation2 + $0x39] sm:$0xff]  ;;  %v607_v51 = vld [vmem:[#allocation2 + $0x49] sm:$0xff]  ;;  %v608_v53 = vld [vmem:[#allocation2 + $0x51] sm:$0xff] }
  0x5d   : > { %816 = vrot.lane.b32.xlu0 %v757_v28, %s3789_s19  ;;  %818 = vrot.lane.b32.xlu1 %v758_v29, %s3789_s19  ;;  %2376 = vst.msk [vmem:[#allocation4 + $0x48] sm:$0xff] %vm457_vm0, %v3787_v0  ;;  %v751_v50 = vld [vmem:[#allocation2 + $0x3a] sm:$0xff]  ;;  %v752_v52 = vld [vmem:[#allocation2 + $0x4a] sm:$0xff]  ;;  %v753_v54 = vld [vmem:[#allocation2 + $0x52] sm:$0xff] }
  0x5e   : > { %2377 = vst.msk [vmem:[#allocation4 + $0x50] sm:$0xff] %vm457_vm0, %v3787_v0  ;;  %820 = vrot.lane.b32.xlu2 %v759_v30, %s3789_s19  ;;  %v609_v55 = vld [vmem:[#allocation2 + $0x61] sm:$0xff]  ;;  %v610_v57 = vld [vmem:[#allocation2 + $0x69] sm:$0xff]  ;;  %v566_v60 = vld [vmem:[#allocation2 + $0x98] sm:$0xff] }
  0x5f   : > { %2383 = vst.msk [vmem:[#allocation4 + $0x80] sm:$0xff] %vm457_vm0, %v3787_v0  ;;  %v754_v56 = vld [vmem:[#allocation2 + $0x62] sm:$0xff]  ;;  %v565_v59 = vld [vmem:[#allocation2 + $0x90] sm:$0xff]  ;;  %v611_v62 = vld [vmem:[#allocation2 + $0x79] sm:$0xff] }
  0x60   : > { %2384 = vst.msk [vmem:[#allocation4 + $0x88] sm:$0x3] %vm460_vm1, %v3787_v0  ;;  %v564_v58 = vld [vmem:[#allocation2 + $0x80] sm:$0xff]  ;;  %v755_v61 = vld [vmem:[#allocation2 + $0x6a] sm:$0xff]  ;;  %v3509_v7 = vld [vmem:[%s5491_s3 + $0x18] sm:$0xf] }
  0x61   : > { %2378 = vst.msk [vmem:[#allocation4 + $0x58] sm:$0x3] %vm460_vm1, %v3787_v0  ;;  %v756_v63 = vld [vmem:[#allocation2 + $0x7a] sm:$0xff]  ;;  %v912_v1 = vld [vmem:[%s5491_s3 + $0x8] sm:$0xf]  ;;  %v568_v9 = vld [vmem:[#allocation2 + $0xb0] sm:$0xff] }
  0x62   : > { %2385 = vst.msk [vmem:[#allocation4 + $0x90] sm:$0xff] %vm457_vm0, %v3787_v0  ;;  %v911_v2 = vld [vmem:[%s5491_s3] sm:$0xff]  ;;  %3613 = vmatpush.msk.msra.mxu1 %vm974_vm3, %v912_v1  ;;  %3614 = vmatpush.msk.msra.mxu2 %vm974_vm3, %v912_v1  ;;  %v602_v5 = vld [vmem:[#allocation2 + $0x9] sm:$0xff]  ;;  %v571_v15 = vld [vmem:[#allocation2 + $0xd8] sm:$0xff] }
  0x63   : > { %2386 = vst.msk [vmem:[#allocation4 + $0x98] sm:$0xff] %vm457_vm0, %v3787_v0  ;;  %v601_v3 = vld [vmem:[#allocation2 + $0x1] sm:$0xff]  ;;  %3487 = vmatpush.msk.msra.mxu0 %vm974_vm3, %v912_v1  ;;  %v747_v10 = vld [vmem:[#allocation2 + $0xa] sm:$0xff]  ;;  %v555_v26 = vld [vmem:[#allocation2 + $0x18] sm:$0xff] }
  0x64   : > { %2379 = vst.msk [vmem:[#allocation4 + $0x60] sm:$0xff] %vm457_vm0, %v3787_v0  ;;  %v746_v4 = vld [vmem:[#allocation2 + $0x2] sm:$0xff]  ;;  %3615 = vmatpush.msra.mxu1 %v911_v2  ;;  %3616 = vmatpush.msra.mxu2 %v911_v2  ;;  %v3508_v22 = vld [vmem:[%s5491_s3 + $0x10] sm:$0xff] }
  0x65   : > { %677 = vrot.lane.b32.xlu0 %v615_v31, %s3788_s16  ;;  %822 = vrot.lane.b32.xlu1 %v760_v32, %s3789_s19  ;;  %2380 = vst.msk [vmem:[#allocation4 + $0x68] sm:$0xff] %vm457_vm0, %v3787_v0  ;;  %v567_v6 = vld [vmem:[#allocation2 + $0xa8] sm:$0xff]  ;;  %v569_v11 = vld [vmem:[#allocation2 + $0xc0] sm:$0xff]  ;;  %v557_v28 = vld [vmem:[#allocation2 + $0x30] sm:$0xff] }
  0x66   : > { %2387 = vst.msk [vmem:[#allocation4 + $0xa0] sm:$0x3] %vm460_vm1, %v3787_v0  ;;  %679 = vrot.lane.b32.xlu2 %v616_v33, %s3788_s16  ;;  %993 = vmatpush.msra.mxu0 %v911_v2  ;;  %v570_v17 = vld [vmem:[#allocation2 + $0xc8] sm:$0xff]  ;;  %v572_v20 = vld [vmem:[#allocation2 + $0xe0] sm:$0xff] }
  0x67   : > { %2381 = vst.msk [vmem:[#allocation4 + $0x70] sm:$0x3] %vm460_vm1, %v3787_v0  ;;  %3510 = vmatpush.msk.msrb.mxu1 %vm974_vm3, %v3509_v7  ;;  %v556_v33 = vld [vmem:[#allocation2 + $0x20] sm:$0xff]  ;;  %v624_v7 = vld [vmem:[#allocation2 + $0x111] sm:$0xff] }
  0x68   : > { %2388 = vst.msk [vmem:[#allocation4 + $0xa8] sm:$0xff] %vm457_vm0, %v3787_v0 }
  0x69   : > { %2389 = vst.msk [vmem:[#allocation4 + $0xb0] sm:$0xff] %vm457_vm0, %v3787_v0  ;;  %1197 = vmatpush.msrb.mxu1 %v3508_v22 }
  0x6a   : > { %2382 = vst.msk [vmem:[#allocation4 + $0x78] sm:$0xff] %vm457_vm0, %v3787_v0 }
  0x6b   : > { %2390 = vst.msk [vmem:[#allocation4 + $0xb8] sm:$0x3] %vm460_vm1, %v3787_v0 }
  0x6c   : > { %2391 = vst.msk [vmem:[#allocation4 + $0xc0] sm:$0xff] %vm457_vm0, %v3787_v0 }
  0x6d   : > { %824 = vrot.lane.b32.xlu0 %v761_v34, %s3789_s19  ;;  %681 = vrot.lane.b32.xlu1 %v617_v35, %s3788_s16  ;;  %2392 = vst.msk [vmem:[#allocation4 + $0xc8] sm:$0xff] %vm457_vm0, %v3787_v0  ;;  %v3532_v34 = vld [vmem:[%s5491_s3 + $0x28] sm:$0xf] }
  0x6e   : > { %2393 = vst.msk [vmem:[#allocation4 + $0xd0] sm:$0x3] %vm460_vm1, %v3787_v0  ;;  %826 = vrot.lane.b32.xlu2 %v762_v36, %s3789_s19  ;;  %3533 = vmatpush.msk.msrb.mxu2 %vm974_vm3, %v3532_v34  ;;  %v558_v36 = vld [vmem:[#allocation2 + $0x38] sm:$0xff] }
  0x6f   : > { %2394 = vst.msk [vmem:[#allocation4 + $0xd8] sm:$0xff] %vm457_vm0, %v3787_v0 }
  0x70   : > { %2395 = vst.msk [vmem:[#allocation4 + $0xe0] sm:$0xff] %vm457_vm0, %v3787_v0 }
  0x71   : > { %2396 = vst.msk [vmem:[#allocation4 + $0xe8] sm:$0x3] %vm460_vm1, %v3787_v0 }
  0x72   : > { %588 = vst.msk [vmem:[#allocation3 + $0x58] sm:$0xff] %vm457_vm0, %v564_v58 }
  0x73   : > { %589 = vst.msk [vmem:[#allocation3 + $0x60] sm:$0xff] %vm457_vm0, %v565_v59  ;;  %v622_v59 = vld [vmem:[#allocation2 + $0xf9] sm:$0xff] }
  0x74   : > { %590 = vst.msk [vmem:[#allocation3 + $0x68] sm:$0xff] %vm457_vm0, %v566_v60  ;;  %v767_v60 = vld [vmem:[#allocation2 + $0xfa] sm:$0xff] }
  0x75   : > { %685 = vrot.lane.b32.xlu0 %v619_v37, %s3788_s16  ;;  %830 = vrot.lane.b32.xlu1 %v764_v38, %s3789_s19  ;;  %591 = vst.msk [vmem:[#allocation3 + $0x70] sm:$0xff] %vm457_vm0, %v567_v6  ;;  %v554_v6 = vld [vmem:[#allocation2 + $0x8] sm:$0xff] }
  0x76   : > { %683 = vrot.lane.b32.xlu2 %v618_v39, %s3788_s16  ;;  %592 = vst.msk [vmem:[#allocation3 + $0x78] sm:$0xff] %vm457_vm0, %v568_v9  ;;  %v3531_v39 = vld [vmem:[%s5491_s3 + $0x20] sm:$0xff] }
  0x77   : > { %593 = vst.msk [vmem:[#allocation3 + $0x80] sm:$0xff] %vm457_vm0, %v569_v11  ;;  %1421 = vmatpush.msrb.mxu2 %v3531_v39 }
  0x78   : > { %595 = vst.msk [vmem:[#allocation3 + $0x90] sm:$0xff] %vm457_vm0, %v571_v15 }
  0x79   : > { %594 = vst.msk [vmem:[#allocation3 + $0x88] sm:$0xff] %vm457_vm0, %v570_v17 }
  0x7a   : > { %596 = vst.msk [vmem:[#allocation3 + $0x98] sm:$0xff] %vm457_vm0, %v572_v20 }
  0x7b   : > { %579 = vst.msk [vmem:[#allocation3 + $0x10] sm:$0xff] %vm457_vm0, %v555_v26  ;;  %v769_v26 = vld [vmem:[#allocation2 + $0x112] sm:$0xff] }
  0x7c   : > { %581 = vst.msk [vmem:[#allocation3 + $0x20] sm:$0xff] %vm457_vm0, %v557_v28 }
  0x7d   : > { %828 = vrot.lane.b32.xlu0 %v763_v40, %s3789_s19  ;;  %687 = vrot.lane.b32.xlu1 %v620_v41, %s3788_s16  ;;  %580 = vst.msk [vmem:[#allocation3 + $0x18] sm:$0xff] %vm457_vm0, %v556_v33  ;;  %v559_v41 = vld [vmem:[#allocation2 + $0x48] sm:$0xff] }
  0x7e   : > { %832 = vrot.lane.b32.xlu2 %v765_v42, %s3789_s19  ;;  %582 = vst.msk [vmem:[#allocation3 + $0x28] sm:$0xff] %vm457_vm0, %v558_v36 }
  0x7f   : > { %583 = vst.msk [vmem:[#allocation3 + $0x30] sm:$0xff] %vm457_vm0, %v559_v41 }
  0x80   : > { %578 = vst.msk [vmem:[#allocation3 + $0x8] sm:$0xff] %vm457_vm0, %v554_v6 }
  0x85   : > { %653 = vrot.lane.b32.xlu0 %v603_v43, %s3788_s16  ;;  %798 = vrot.lane.b32.xlu1 %v748_v44, %s3789_s19 }
  0x86   : > { %657 = vrot.lane.b32.xlu2 %v605_v45, %s3788_s16 }
  0x8d   : > { %802 = vrot.lane.b32.xlu0 %v750_v46, %s3789_s19  ;;  %655 = vrot.lane.b32.xlu1 %v604_v47, %s3788_s16  ;;  %v560_v47 = vld [vmem:[#allocation2 + $0x50] sm:$0xff] }
  0x8e   : > { %800 = vrot.lane.b32.xlu2 %v749_v48, %s3789_s19  ;;  %584 = vst.msk [vmem:[#allocation3 + $0x38] sm:$0xff] %vm457_vm0, %v560_v47 }
  0x95   : > { %659 = vrot.lane.b32.xlu0 %v606_v49, %s3788_s16  ;;  %804 = vrot.lane.b32.xlu1 %v751_v50, %s3789_s19 }
  0x96   : > { %661 = vrot.lane.b32.xlu2 %v607_v51, %s3788_s16  ;;  %v561_v51 = vld [vmem:[#allocation2 + $0x60] sm:$0xff] }
  0x97   : > { %585 = vst.msk [vmem:[#allocation3 + $0x40] sm:$0xff] %vm457_vm0, %v561_v51 }
  0x9d   : > { %806 = vrot.lane.b32.xlu0 %v752_v52, %s3789_s19  ;;  %663 = vrot.lane.b32.xlu1 %v608_v53, %s3788_s16  ;;  %v621_v52 = vld [vmem:[#allocation2 + $0xf1] sm:$0xff] }
  0x9e   : > { %808 = vrot.lane.b32.xlu2 %v753_v54, %s3789_s19 }
  0xa5   : > { %665 = vrot.lane.b32.xlu0 %v609_v55, %s3788_s16  ;;  %810 = vrot.lane.b32.xlu1 %v754_v56, %s3789_s19  ;;  %v562_v55 = vld [vmem:[#allocation2 + $0x68] sm:$0xff] }
  0xa6   : > { %667 = vrot.lane.b32.xlu2 %v610_v57, %s3788_s16  ;;  %586 = vst.msk [vmem:[#allocation3 + $0x48] sm:$0xff] %vm457_vm0, %v562_v55 }
  0xad   : > { %812 = vrot.lane.b32.xlu0 %v755_v61, %s3789_s19  ;;  %669 = vrot.lane.b32.xlu1 %v611_v62, %s3788_s16  ;;  %v563_v62 = vld [vmem:[#allocation2 + $0x78] sm:$0xff] }
  0xae   : > { %814 = vrot.lane.b32.xlu2 %v756_v63, %s3789_s19  ;;  %587 = vst.msk [vmem:[#allocation3 + $0x50] sm:$0xff] %vm457_vm0, %v563_v62  ;;  %v553_v63 = vld [vmem:[#allocation2] sm:$0xff] }
  0xaf   : > { %577 = vst.msk [vmem:[#allocation3] sm:$0xff] %vm457_vm0, %v553_v63 }
  0xb0   : > { %v676_v0 = vpop.permute.xlu2 %675 }
  0xb1   : > { %735 = vst.msk [vmem:[#allocation3 + $0x68] sm:$0xff] %vm721_vm2, %v676_v0 }
  0xb5   : > { %649 = vrot.lane.b32.xlu0 %v601_v3, %s3788_s16  ;;  %794 = vrot.lane.b32.xlu1 %v746_v4, %s3789_s19  ;;  %v768_v4 = vld [vmem:[#allocation2 + $0x10a] sm:$0xff] }
  0xb6   : > { %651 = vrot.lane.b32.xlu2 %v602_v5, %s3788_s16 }
  0xb8   : > { %v821_v8 = vpop.permute.xlu2 %820 }
  0xb9   : > { %880 = vst.msk [vmem:[#allocation3 + $0x68] sm:$0xff] %vm866_vm4, %v821_v8 }
  0xbd   : > { %796 = vrot.lane.b32.xlu0 %v747_v10, %s3789_s19  ;;  %689 = vrot.lane.b32.xlu1 %v621_v52, %s3788_s16 }
  0xc0   : > { %v680_v12 = vpop.permute.xlu2 %679  ;;  %v4174_v35 = vld [vmem:[#allocation3 + $0x68] sm:$0xff] }
  0xc1   : > { %737 = vst.msk [vmem:[#allocation3 + $0x78] sm:$0xff] %vm721_vm2, %v680_v12  ;;  %v766_v12 = vld [vmem:[#allocation2 + $0xf2] sm:$0xff] }
  0xc2   : > { %834 = vrot.lane.b32.xlu2 %v766_v12, %s3789_s19 }
  0xc5   : > { %691 = vrot.lane.b32.xlu0 %v622_v59, %s3788_s16  ;;  %836 = vrot.lane.b32.xlu1 %v767_v60, %s3789_s19 }
  0xc7   : > { %v672_v13 = vpop.permute.xlu0 %671  ;;  %v674_v14 = vpop.permute.xlu1 %673 }
  0xc8   : > { %733 = vst.msk [vmem:[#allocation3 + $0x58] sm:$0xff] %vm721_vm2, %v672_v13  ;;  %v827_v16 = vpop.permute.xlu2 %826 }
  0xc9   : > { %734 = vst.msk [vmem:[#allocation3 + $0x60] sm:$0xff] %vm721_vm2, %v674_v14 }
  0xcd   : > { %838 = vrot.lane.b32.xlu0 %v768_v4, %s3789_s19  ;;  %695 = vrot.lane.b32.xlu1 %v624_v7, %s3788_s16 }
  0xcf   : > { %v817_v18 = vpop.permute.xlu0 %816  ;;  %v819_v19 = vpop.permute.xlu1 %818 }
  0xd0   : > { %878 = vst.msk [vmem:[#allocation3 + $0x58] sm:$0xff] %vm866_vm4, %v817_v18  ;;  %v684_v21 = vpop.permute.xlu2 %683  ;;  %v623_v18 = vld [vmem:[#allocation2 + $0x109] sm:$0xff] }
  0xd1   : > { %879 = vst.msk [vmem:[#allocation3 + $0x60] sm:$0xff] %vm866_vm4, %v819_v19  ;;  %693 = vrot.lane.b32.xlu2 %v623_v18, %s3788_s16  ;;  %v4368_v18 = vld [vmem:[%s5492_s4] ss:$0 sm:$0xff] }
  0xd2   : > { %739 = vst.msk [vmem:[#allocation3 + $0x88] sm:$0xff] %vm721_vm2, %v684_v21 }
  0xd7   : > { %v678_v23 = vpop.permute.xlu0 %677  ;;  %v823_v24 = vpop.permute.xlu1 %822  ;;  %v4153_v25 = vld [vmem:[#allocation3 + $0x58] sm:$0xff] }
  0xd8   : > { %736 = vst.msk [vmem:[#allocation3 + $0x70] sm:$0xff] %vm721_vm2, %v678_v23  ;;  %3499 = vmatmul.msk.f32.vlgmr.msra.gmra.mxu1 %vm913_vm5, %v4153_v25  ;;  %v833_v27 = vpop.permute.xlu2 %832  ;;  %v4161_v29 = vld [vmem:[#allocation3 + $0x60] sm:$0xff] }
  0xd9   : > { %881 = vst.msk [vmem:[#allocation3 + $0x70] sm:$0xff] %vm866_vm4, %v823_v24  ;;  %840 = vrot.lane.b32.xlu2 %v769_v26, %s3789_s19 }
  0xdf   : > { %v825_v30 = vpop.permute.xlu0 %824  ;;  %v682_v31 = vpop.permute.xlu1 %681 }
  0xe0   : > { %882 = vst.msk [vmem:[#allocation3 + $0x78] sm:$0xff] %vm866_vm4, %v825_v30  ;;  %3500 = vmatmul.msk.f32.gmra.mxu1 %vm913_vm5, %v4161_v29  ;;  %v658_v32 = vpop.permute.xlu2 %657  ;;  %v4185_v44 = vld [vmem:[#allocation3 + $0x70] sm:$0xff] }
  0xe1   : > { %738 = vst.msk [vmem:[#allocation3 + $0x80] sm:$0xff] %vm721_vm2, %v682_v31 }
  0xe2   : > { %883 = vst.msk [vmem:[#allocation3 + $0x80] sm:$0xff] %vm866_vm4, %v827_v16 }
  0xe3   : > { %726 = vst.msk [vmem:[#allocation3 + $0x20] sm:$0xff] %vm721_vm2, %v658_v32 }
  0xe7   : > { %v686_v37 = vpop.permute.xlu0 %685  ;;  %v831_v38 = vpop.permute.xlu1 %830  ;;  %v4198_v50 = vld [vmem:[#allocation3 + $0x78] sm:$0xff] }
  0xe8   : > { %740 = vst.msk [vmem:[#allocation3 + $0x90] sm:$0xff] %vm721_vm2, %v686_v37  ;;  %3501 = vmatmul.msk.f32.gmra.mxu1 %vm913_vm5, %v4174_v35  ;;  %v801_v40 = vpop.permute.xlu2 %800 }
  0xe9   : > { %885 = vst.msk [vmem:[#allocation3 + $0x90] sm:$0xff] %vm866_vm4, %v831_v38  ;;  %v4211_v58 = vld [vmem:[#allocation3 + $0x80] sm:$0xff] }
  0xef   : > { %v829_v42 = vpop.permute.xlu0 %828  ;;  %v688_v43 = vpop.permute.xlu1 %687 }
  0xf0   : > { %884 = vst.msk [vmem:[#allocation3 + $0x88] sm:$0xff] %vm866_vm4, %v829_v42  ;;  %3502 = vmatmul.msk.f32.gmra.mxu1 %vm913_vm5, %v4185_v44  ;;  %v4190_v45 = vld [vmem:[#allocation3 + $0x90] sm:$0xff]  ;;  %v662_v46 = vpop.permute.xlu2 %661 }
  0xf1   : > { %741 = vst.msk [vmem:[#allocation3 + $0x98] sm:$0xff] %vm721_vm2, %v688_v43  ;;  %3506 = vmatmul.msk.f32.vlgmr.msra.gmra.mxu2 %vm913_vm5, %v4190_v45 }
  0xf2   : > { %886 = vst.msk [vmem:[#allocation3 + $0x98] sm:$0xff] %vm866_vm4, %v833_v27 }
  0xf3   : > { %728 = vst.msk [vmem:[#allocation3 + $0x30] sm:$0xff] %vm721_vm2, %v662_v46 }
  0xf7   : > { %v654_v48 = vpop.permute.xlu0 %653  ;;  %v799_v49 = vpop.permute.xlu1 %798  ;;  %v4222_v2 = vld [vmem:[#allocation3 + $0x88] sm:$0xff] }
  0xf8   : > { %724 = vst.msk [vmem:[#allocation3 + $0x10] sm:$0xff] %vm721_vm2, %v654_v48  ;;  %3503 = vmatmul.msk.f32.gmra.mxu1 %vm913_vm5, %v4198_v50  ;;  %v809_v54 = vpop.permute.xlu2 %808 }
  0xf9   : > { %869 = vst.msk [vmem:[#allocation3 + $0x10] sm:$0xff] %vm866_vm4, %v799_v49  ;;  %v4205_v53 = vld [vmem:[#allocation3 + $0x98] sm:$0xff] }
  0xfa   : > { %3507 = vmatmul.msk.f32.gmra.mxu2 %vm913_vm5, %v4205_v53 }
  0xff   : > { %v803_v56 = vpop.permute.xlu0 %802  ;;  %v656_v57 = vpop.permute.xlu1 %655 }
 0x100   : > { %871 = vst.msk [vmem:[#allocation3 + $0x20] sm:$0xff] %vm866_vm4, %v803_v56  ;;  %3504 = vmatmul.msk.f32.gmra.mxu1 %vm913_vm5, %v4211_v58  ;;  %v668_v61 = vpop.permute.xlu2 %667  ;;  %v1096_v10 = vld [vmem:[#allocation3 + $0x10] sm:$0xff] }
 0x101   : > { %725 = vst.msk [vmem:[#allocation3 + $0x18] sm:$0xff] %vm721_vm2, %v656_v57 }
 0x102   : > { %870 = vst.msk [vmem:[#allocation3 + $0x18] sm:$0xff] %vm866_vm4, %v801_v40 }
 0x103   : > { %731 = vst.msk [vmem:[#allocation3 + $0x48] sm:$0xff] %vm721_vm2, %v668_v61 }
 0x107   : > { %v660_v0 = vpop.permute.xlu0 %659  ;;  %v805_v1 = vpop.permute.xlu1 %804  ;;  %v4224_v3 = vld [vmem:[#allocation3 + $0x20] sm:$0xff] }
 0x108   : > { %727 = vst.msk [vmem:[#allocation3 + $0x28] sm:$0xff] %vm721_vm2, %v660_v0  ;;  %3505 = vmatmul.msk.f32.gmra.mxu1 %vm913_vm5, %v4222_v2  ;;  %3534 = vmatmul.msk.f32.vlgmr.msrb.gmra.mxu2 %vm913_vm5, %v4224_v3  ;;  %v815_v5 = vpop.permute.xlu2 %814 }
 0x109   : > { %872 = vst.msk [vmem:[#allocation3 + $0x28] sm:$0xff] %vm866_vm4, %v805_v1  ;;  %v1097_v14 = vld [vmem:[#allocation3 + $0x18] sm:$0xff] }
 0x10f   : > { %v807_v8 = vpop.permute.xlu0 %806  ;;  %v664_v9 = vpop.permute.xlu1 %663 }
 0x110   : > { %873 = vst.msk [vmem:[#allocation3 + $0x30] sm:$0xff] %vm866_vm4, %v807_v8  ;;  %3511 = vmatmul.msk.f32.vlgmr.msrb.gmra.mxu1 %vm913_vm5, %v1096_v10  ;;  %v1321_v11 = vld [vmem:[#allocation3 + $0x28] sm:$0xff]  ;;  %v652_v13 = vpop.permute.xlu2 %651 }
 0x111   : > { %729 = vst.msk [vmem:[#allocation3 + $0x38] sm:$0xff] %vm721_vm2, %v664_v9  ;;  %3535 = vmatmul.msk.f32.gmra.mxu2 %vm913_vm5, %v1321_v11 }
 0x112   : > { %874 = vst.msk [vmem:[#allocation3 + $0x38] sm:$0xff] %vm866_vm4, %v809_v54 }
 0x113   : > { %723 = vst.msk [vmem:[#allocation3 + $0x8] sm:$0xff] %vm721_vm2, %v652_v13 }
 0x117   : > { %v666_v15 = vpop.permute.xlu0 %665  ;;  %v811_v16 = vpop.permute.xlu1 %810  ;;  %v1322_v17 = vld [vmem:[#allocation3 + $0x30] sm:$0xff] }
 0x118   : > { %730 = vst.msk [vmem:[#allocation3 + $0x40] sm:$0xff] %vm721_vm2, %v666_v15  ;;  %3512 = vmatmul.msk.f32.gmra.mxu1 %vm913_vm5, %v1097_v14 }
 0x119   : > { %875 = vst.msk [vmem:[#allocation3 + $0x40] sm:$0xff] %vm866_vm4, %v811_v16  ;;  %3536 = vmatmul.msk.f32.gmra.mxu2 %vm913_vm5, %v1322_v17  ;;  %v1323_v19 = vld [vmem:[#allocation3 + $0x38] sm:$0xff] }
 0x11c   : > { %v835_v37 = vpop.permute.xlu2 %834 }
 0x11f   : > { %v813_v20 = vpop.permute.xlu0 %812  ;;  %v670_v21 = vpop.permute.xlu1 %669 }
 0x120   : > { %876 = vst.msk [vmem:[#allocation3 + $0x48] sm:$0xff] %vm866_vm4, %v813_v20  ;;  %3513 = vmatmul.msk.f32.gmra.mxu1 %vm913_vm5, %v4224_v3  ;;  %v1324_v22 = vld [vmem:[#allocation3 + $0x40] sm:$0xff] }
 0x121   : > { %732 = vst.msk [vmem:[#allocation3 + $0x50] sm:$0xff] %vm721_vm2, %v670_v21  ;;  %3537 = vmatmul.msk.f32.gmra.mxu2 %vm913_vm5, %v1323_v19 }
 0x122   : > { %877 = vst.msk [vmem:[#allocation3 + $0x50] sm:$0xff] %vm866_vm4, %v815_v5 }
 0x127   : > { %v650_v23 = vpop.permute.xlu0 %649  ;;  %v795_v24 = vpop.permute.xlu1 %794  ;;  %v1325_v27 = vld [vmem:[#allocation3 + $0x48] sm:$0xff] }
 0x128   : > { %722 = vst.msk [vmem:[#allocation3] sm:$0xff] %vm721_vm2, %v650_v23  ;;  %3514 = vmatmul.msk.f32.gmra.mxu1 %vm913_vm5, %v1321_v11 }
 0x129   : > { %867 = vst.msk [vmem:[#allocation3] sm:$0xff] %vm866_vm4, %v795_v24  ;;  %3538 = vmatmul.msk.f32.gmra.mxu2 %vm913_vm5, %v1324_v22  ;;  %v4263_v31 = vld [vmem:[#allocation3 + $0x50] sm:$0xff] }
 0x12b   : > { %v694_v43 = vpop.permute.xlu2 %693 }
 0x12f   : > { %v797_v28 = vpop.permute.xlu0 %796 }
 0x130   : > { %868 = vst.msk [vmem:[#allocation3 + $0x8] sm:$0xff] %vm866_vm4, %v797_v28  ;;  %3515 = vmatmul.msk.f32.gmra.mxu1 %vm913_vm5, %v1322_v17  ;;  %v891_v30 = vld [vmem:[#allocation3] sm:$0xff] }
 0x131   : > { %3488 = vmatmul.msk.f32.vlgmr.msra.gmra.mxu0 %vm913_vm5, %v891_v30  ;;  %3539 = vmatmul.msk.f32.gmra.mxu2 %vm913_vm5, %v1325_v27 }
 0x133   : > { %v841_v51 = vpop.permute.xlu2 %840 }
 0x137   : > { %v892_v32 = vld [vmem:[#allocation3 + $0x8] sm:$0xff]  ;;  %v692_v39 = vpop.permute.xlu0 %691 }
 0x138   : > { %3516 = vmatmul.msk.f32.gmra.mxu1 %vm913_vm5, %v1323_v19 }
 0x139   : > { %3489 = vmatmul.msk.f32.gmra.mxu0 %vm913_vm5, %v892_v32  ;;  %3540 = vmatmul.msk.f32.gmra.mxu2 %vm913_vm5, %v4263_v31 }
 0x13f   : > { %v839_v46 = vpop.permute.xlu0 %838 }
 0x140   : > { %3517 = vmatmul.msk.f32.gmra.mxu1 %vm913_vm5, %v1324_v22 }
 0x141   : > { %3490 = vmatmul.msk.f32.gmra.mxu0 %vm913_vm5, %v1096_v10  ;;  %3541 = vmatmul.msk.f32.gmra.mxu2 %vm913_vm5, %v4153_v25 }
 0x148   : > { %3518 = vmatmul.msk.f32.gmra.mxu1 %vm913_vm5, %v1325_v27 }
 0x149   : > { %3491 = vmatmul.msk.f32.gmra.mxu0 %vm913_vm5, %v1097_v14  ;;  %3542 = vmatmul.msk.f32.gmra.mxu2 %vm913_vm5, %v4161_v29 }
 0x150   : > { %3519 = vmatmul.msk.f32.gmra.mxu1 %vm913_vm5, %v4263_v31 }
 0x151   : > { %3492 = vmatmul.msk.f32.gmra.mxu0 %vm913_vm5, %v4224_v3  ;;  %3543 = vmatmul.msk.f32.gmra.mxu2 %vm913_vm5, %v4174_v35 }
 0x155   : > { %v1028_v33 = vpop.f32.mrf.mxu1 }
 0x156   : > { %1066 = vst.msk [vmem:[#allocation6 + $0x58] sm:$0xff] %vm457_vm0, %v1028_v33 }
 0x158   : > { %3520 = vmatmul.msk.f32.gmra.mxu1 %vm913_vm5, %v4153_v25  ;;  %v573_v25 = vld [vmem:[#allocation2 + $0xf0] sm:$0xff] }
 0x159   : > { %3493 = vmatmul.msk.f32.gmra.mxu0 %vm913_vm5, %v1321_v11  ;;  %3544 = vmatmul.msk.f32.gmra.mxu2 %vm913_vm5, %v4185_v44  ;;  %597 = vst.msk [vmem:[#allocation3 + $0xa0] sm:$0xff] %vm457_vm0, %v573_v25 }
 0x15d   : > { %v1031_v34 = vpop.f32.mrf.mxu1 }
 0x15e   : > { %1067 = vst.msk [vmem:[#allocation6 + $0x60] sm:$0xff] %vm457_vm0, %v1031_v34 }
 0x160   : > { %3521 = vmatmul.msk.f32.gmra.mxu1 %vm913_vm5, %v4161_v29  ;;  %v690_v29 = vpop.permute.xlu1 %689 }
 0x161   : > { %3494 = vmatmul.msk.f32.gmra.mxu0 %vm913_vm5, %v1322_v17  ;;  %3545 = vmatmul.msk.f32.gmra.mxu2 %vm913_vm5, %v4198_v50  ;;  %742 = vst.msk [vmem:[#allocation3 + $0xa0] sm:$0xff] %vm721_vm2, %v690_v29 }
 0x162   : > { %887 = vst.msk [vmem:[#allocation3 + $0xa0] sm:$0xff] %vm866_vm4, %v835_v37 }
 0x165   : > { %v1034_v36 = vpop.f32.mrf.mxu1 }
 0x166   : > { %1068 = vst.msk [vmem:[#allocation6 + $0x68] sm:$0xff] %vm457_vm0, %v1034_v36 }
 0x168   : > { %3522 = vmatmul.msk.f32.gmra.mxu1 %vm913_vm5, %v4174_v35  ;;  %v574_v35 = vld [vmem:[#allocation2 + $0xf8] sm:$0xff]  ;;  %v837_v40 = vpop.permute.xlu1 %836 }
 0x169   : > { %3495 = vmatmul.msk.f32.gmra.mxu0 %vm913_vm5, %v1323_v19  ;;  %3546 = vmatmul.msk.f32.gmra.mxu2 %vm913_vm5, %v4211_v58  ;;  %598 = vst.msk [vmem:[#allocation3 + $0xa8] sm:$0xff] %vm457_vm0, %v574_v35  ;;  %v1336_v54 = vld [vmem:[#allocation3 + $0xa0] sm:$0xff] }
 0x16a   : > { %743 = vst.msk [vmem:[#allocation3 + $0xa8] sm:$0xff] %vm721_vm2, %v692_v39 }
 0x16b   : > { %888 = vst.msk [vmem:[#allocation3 + $0xa8] sm:$0xff] %vm866_vm4, %v837_v40 }
 0x16d   : > { %v1037_v38 = vpop.f32.mrf.mxu1 }
 0x16e   : > { %1069 = vst.msk [vmem:[#allocation6 + $0x70] sm:$0xff] %vm457_vm0, %v1037_v38 }
 0x170   : > { %3523 = vmatmul.msk.f32.gmra.mxu1 %vm913_vm5, %v4185_v44  ;;  %v575_v44 = vld [vmem:[#allocation2 + $0x108] sm:$0xff]  ;;  %v696_v49 = vpop.permute.xlu1 %695 }
 0x171   : > { %3496 = vmatmul.msk.f32.gmra.mxu0 %vm913_vm5, %v1324_v22  ;;  %3547 = vmatmul.msk.f32.gmra.mxu2 %vm913_vm5, %v4222_v2  ;;  %599 = vst.msk [vmem:[#allocation3 + $0xb0] sm:$0xff] %vm457_vm0, %v575_v44 }
 0x172   : > { %744 = vst.msk [vmem:[#allocation3 + $0xb0] sm:$0xff] %vm721_vm2, %v694_v43  ;;  %v1337_v57 = vld [vmem:[#allocation3 + $0xa8] sm:$0xff] }
 0x173   : > { %889 = vst.msk [vmem:[#allocation3 + $0xb0] sm:$0xff] %vm866_vm4, %v839_v46 }
 0x174   : > { %v1049_v41 = vpop.f32.mrf.mxu2 }
 0x175   : > { %v1040_v42 = vpop.f32.mrf.mxu1  ;;  %1073 = vst.msk [vmem:[#allocation6 + $0x90] sm:$0xff] %vm457_vm0, %v1049_v41 }
 0x176   : > { %1070 = vst.msk [vmem:[#allocation6 + $0x78] sm:$0xff] %vm457_vm0, %v1040_v42 }
 0x178   : > { %3524 = vmatmul.msk.f32.gmra.mxu1 %vm913_vm5, %v4198_v50  ;;  %v576_v50 = vld [vmem:[#allocation2 + $0x110] sm:$0xff] }
 0x179   : > { %3497 = vmatmul.msk.f32.gmra.mxu0 %vm913_vm5, %v1325_v27  ;;  %3548 = vmatmul.msk.f32.gmra.mxu2 %vm913_vm5, %v4190_v45  ;;  %600 = vst.msk [vmem:[#allocation3 + $0xb8] sm:$0xff] %vm457_vm0, %v576_v50 }
 0x17a   : > { %745 = vst.msk [vmem:[#allocation3 + $0xb8] sm:$0xff] %vm721_vm2, %v696_v49  ;;  %v1338_v60 = vld [vmem:[#allocation3 + $0xb0] sm:$0xff] }
 0x17b   : > { %890 = vst.msk [vmem:[#allocation3 + $0xb8] sm:$0xff] %vm866_vm4, %v841_v51 }
 0x17d   : > { %v1043_v47 = vpop.f32.mrf.mxu1  ;;  %v1052_v48 = vpop.f32.mrf.mxu2 }
 0x17e   : > { %1071 = vst.msk [vmem:[#allocation6 + $0x80] sm:$0xff] %vm457_vm0, %v1043_v47 }
 0x17f   : > { %1074 = vst.msk [vmem:[#allocation6 + $0x98] sm:$0xff] %vm457_vm0, %v1052_v48 }
 0x180   : > { %3525 = vmatmul.msk.f32.gmra.mxu1 %vm913_vm5, %v4211_v58 }
 0x181   : > { %3498 = vmatmul.msk.f32.gmra.mxu0 %vm913_vm5, %v4263_v31  ;;  %3549 = vmatmul.msk.f32.gmra.mxu2 %vm913_vm5, %v4205_v53 }
 0x182   : > { %v1339_v63 = vld [vmem:[#allocation3 + $0xb8] sm:$0xff] }
 0x185   : > { %v1046_v52 = vpop.f32.mrf.mxu1 }
 0x186   : > { %1072 = vst.msk [vmem:[#allocation6 + $0x88] sm:$0xff] %vm457_vm0, %v1046_v52 }
 0x188   : > { %3526 = vmatmul.msk.f32.gmra.mxu1 %vm913_vm5, %v4222_v2 }
 0x189   : > { %3550 = vmatmul.msk.f32.gmra.mxu2 %vm913_vm5, %v1336_v54 }
 0x18b   : > { %v1423_v55 = vpop.f32.mrf.mxu2 }
 0x18d   : > { %v1199_v56 = vpop.f32.mrf.mxu1 }
 0x190   : > { %3527 = vmatmul.msk.f32.gmra.mxu1 %vm913_vm5, %v4190_v45 }
 0x191   : > { %3551 = vmatmul.msk.f32.gmra.mxu2 %vm913_vm5, %v1337_v57 }
 0x194   : > { %v1426_v58 = vpop.f32.mrf.mxu2 }
 0x195   : > { %v1202_v59 = vpop.f32.mrf.mxu1 }
 0x198   : > { %3528 = vmatmul.msk.f32.gmra.mxu1 %vm913_vm5, %v4205_v53 }
 0x199   : > { %3552 = vmatmul.msk.f32.gmra.mxu2 %vm913_vm5, %v1338_v60 }
 0x19c   : > { %v1429_v61 = vpop.f32.mrf.mxu2 }
 0x19d   : > { %v1205_v62 = vpop.f32.mrf.mxu1 }
 0x1a0   : > { %3529 = vmatmul.msk.f32.gmra.mxu1 %vm913_vm5, %v1336_v54 }
 0x1a1   : > { %3553 = vmatmul.msk.f32.gmra.mxu2 %vm913_vm5, %v1339_v63 }
 0x1a4   : > { %v1432_v0 = vpop.f32.mrf.mxu2 }
 0x1a5   : > { %v1208_v1 = vpop.f32.mrf.mxu1 }
 0x1a8   : > { %3530 = vmatmul.msk.f32.gmra.mxu1 %vm913_vm5, %v1337_v57 }
 0x1ac   : > { %v4347_v45 = vpop.f32.mrf.mxu2 }
 0x1ad   : > { %v1211_v2 = vpop.f32.mrf.mxu1 }
 0x1ae   : > { %v995_v3 = vpop.f32.mrf.mxu0 }
 0x1af   : > { %1055 = vst.msk [vmem:[#allocation6] sm:$0xff] %vm457_vm0, %v995_v3 }
 0x1b4   : > { %v4352_v5 = vpop.f32.mrf.mxu2 }
 0x1b5   : > { %v4350_v53 = vpop.f32.mrf.mxu1 }
 0x1b6   : > { %v1075_v4 = vld [vmem:[#allocation6] sm:$0xff]  ;;  %v998_v6 = vpop.f32.mrf.mxu0 }
 0x1b7   : > { %v1259_v7 = vadd.f32 %v1199_v56, %v1075_v4  ;;  %1056 = vst.msk [vmem:[#allocation6 + $0x8] sm:$0xff] %vm457_vm0, %v998_v6 }
 0x1b9   : > { %1279 = vst.msk [vmem:[#allocation6] sm:$0xff] %vm457_vm0, %v1259_v7 }
 0x1bc   : > { %v4359_v13 = vpop.f32.mrf.mxu2 }
 0x1bd   : > { %v4356_v8 = vpop.f32.mrf.mxu1 }
 0x1be   : > { %v1076_v9 = vld [vmem:[#allocation6 + $0x8] sm:$0xff]  ;;  %v1001_v10 = vpop.f32.mrf.mxu0 }
 0x1bf   : > { %v1260_v11 = vadd.f32 %v1202_v59, %v1076_v9  ;;  %1057 = vst.msk [vmem:[#allocation6 + $0x10] sm:$0xff] %vm457_vm0, %v1001_v10 }
 0x1c0   : > { %v1299_v12 = vld [vmem:[#allocation6] sm:$0xff] }
 0x1c1   : > { %v1483_v14 = vadd.f32 %v1423_v55, %v1299_v12  ;;  %1280 = vst.msk [vmem:[#allocation6 + $0x8] sm:$0xff] %vm457_vm0, %v1260_v11 }
 0x1c3   : > { %1503 = vst.msk [vmem:[#allocation6] sm:$0xff] %vm457_vm0, %v1483_v14 }
 0x1c4   : > { %v4372_v23 = vpop.f32.mrf.mxu2 }
 0x1c5   : > { %v4363_v15 = vpop.f32.mrf.mxu1 }
 0x1c6   : > { %v1077_v16 = vld [vmem:[#allocation6 + $0x10] sm:$0xff]  ;;  %v1004_v17 = vpop.f32.mrf.mxu0 }
 0x1c7   : > { %v1261_v19 = vadd.f32 %v1205_v62, %v1077_v16  ;;  %1058 = vst.msk [vmem:[#allocation6 + $0x18] sm:$0xff] %vm457_vm0, %v1004_v17 }
 0x1c8   : > { %v1300_v20 = vld [vmem:[#allocation6 + $0x8] sm:$0xff] }
 0x1c9   : > { %v1484_v21 = vadd.f32 %v1426_v58, %v1300_v20  ;;  %1281 = vst.msk [vmem:[#allocation6 + $0x10] sm:$0xff] %vm457_vm0, %v1261_v19 }
 0x1ca   : > { %v1523_v22 = vld [vmem:[#allocation6] sm:$0xff] }
 0x1cb   : > { %v4375_v24 = vadd.f32 %v4368_v18, %v1523_v22  ;;  %1504 = vst.msk [vmem:[#allocation6 + $0x8] sm:$0xff] %vm457_vm0, %v1484_v21 }
 0x1cc   : > { %v4390_v38 = vpop.f32.mrf.mxu2 }
 0x1cd   : > { %v4379_v26 = vmul.f32 0.70710677, %v4375_v24  ;;  %v4381_v27 = vpop.f32.mrf.mxu1 }
 0x1ce   : > { %v1078_v28 = vld [vmem:[#allocation6 + $0x18] sm:$0xff]  ;;  %v1007_v30 = vpop.f32.mrf.mxu0 }
 0x1cf   : > { %v1607_v31 = vand.u32 2147483647, %v4379_v26  ;;  %v1262_v32 = vadd.f32 %v1208_v1, %v1078_v28  ;;  %1059 = vst.msk [vmem:[#allocation6 + $0x20] sm:$0xff] %vm457_vm0, %v1007_v30 }
 0x1d0   : > { %v1301_v33 = vld [vmem:[#allocation6 + $0x10] sm:$0xff] }
 0x1d1   : > { %v1627_v34 = vmul.f32 0.3275911, %v1607_v31  ;;  %v1485_v36 = vadd.f32 %v1429_v61, %v1301_v33  ;;  %1282 = vst.msk [vmem:[#allocation6 + $0x18] sm:$0xff] %vm457_vm0, %v1262_v32  ;;  %v2147_v54 = vsub.f32 0.0, %v1607_v31  ;;  %v1086_v32 = vld [vmem:[#allocation6 + $0x58] sm:$0xff]  ;;  %v4442_v33 = vmul.f32 0.5, %v4375_v24 }
 0x1d2   : > { %v1524_v25 = vld [vmem:[#allocation6 + $0x8] sm:$0xff] }
 0x1d3   : > { %v1647_v29 = vadd.f32 1.0, %v1627_v34  ;;  %v4387_v37 = vadd.f32 %v4368_v18, %v1524_v25  ;;  %1505 = vst.msk [vmem:[#allocation6 + $0x10] sm:$0xff] %vm457_vm0, %v1485_v36  ;;  %v2167_v3 = vmul.f32 %v2147_v54, %v1607_v31 }
 0x1d4   : > { %v4415_v58 = vpop.f32.mrf.mxu2 }
 0x1d5   : > { %3665 = vrcp.f32 %v1647_v29  ;;  %v4392_v35 = vpop.f32.mrf.mxu1  ;;  %v4395_v39 = vmul.f32 0.70710677, %v4387_v37  ;;  %v1678_v61 = vand.u32 2147483648, %v1647_v29  ;;  %vm1672_vm7 = vweird.f32 %v1647_v29 }
 0x1d6   : > { %v1079_v40 = vld [vmem:[#allocation6 + $0x20] sm:$0xff]  ;;  %v1010_v41 = vpop.f32.mrf.mxu0  ;;  %v2187_v17 = vmul.f32 1.442695, %v2167_v3 }
 0x1d7   : > { %v1263_v42 = vadd.f32 %v1211_v2, %v1079_v40  ;;  %1060 = vst.msk [vmem:[#allocation6 + $0x28] sm:$0xff] %vm457_vm0, %v1010_v41  ;;  %v4399_v43 = vand.u32 2147483647, %v4395_v39  ;;  %v1679_v10 = vor.u32 1.1754944e-38, %v1678_v61 }
 0x1d8   : > { %v1302_v44 = vld [vmem:[#allocation6 + $0x18] sm:$0xff] }
 0x1d9   : > { %v1486_v46 = vadd.f32 %v1432_v0, %v1302_v44  ;;  %1283 = vst.msk [vmem:[#allocation6 + $0x20] sm:$0xff] %vm457_vm0, %v1263_v42  ;;  %v1628_v47 = vmul.f32 0.3275911, %v4399_v43  ;;  %v1676_v0 = vand.u32 2147483647, %v1647_v29  ;;  %v2148_v21 = vsub.f32 0.0, %v4399_v43 }
 0x1da   : > { %v1525_v48 = vld [vmem:[#allocation6 + $0x10] sm:$0xff] }
 0x1db   : > { %v3666_v49 = vpop.eup %3665  ;;  %v4404_v50 = vadd.f32 %v4368_v18, %v1525_v48  ;;  %1506 = vst.msk [vmem:[#allocation6 + $0x18] sm:$0xff] %vm457_vm0, %v1486_v46  ;;  %v4407_v52 = vadd.f32 1.0, %v1628_v47  ;;  %vm1677_vm9 = vcmp.eq.f32.partialorder %v1676_v0, 8.507059e+37  ;;  %v2168_v24 = vmul.f32 %v2148_v21, %v4399_v43 }
 0x1dc   : > { %v1668_v51 = vmul.f32 %v3666_v49, %v1647_v29  ;;  %vm1673_vm6 = vweird.f32 %v3666_v49  ;;  %v4445_v25 = vpop.f32.mrf.mxu2 }
 0x1dd   : > { %v4410_v55 = vmul.f32 0.70710677, %v4404_v50  ;;  %v4412_v56 = vpop.f32.mrf.mxu1  ;;  %3667 = vrcp.f32 %v4407_v52  ;;  %vm1674_vm8 = vmor %vm1672_vm7, %vm1673_vm6  ;;  %v1691_v30 = vand.u32 2147483647, %v4407_v52  ;;  %v1693_v36 = vand.u32 2147483648, %v4407_v52 }
 0x1de   : > { %v1669_v57 = vsub.f32 1.0, %v1668_v51  ;;  %v1080_v59 = vld [vmem:[#allocation6 + $0x28] sm:$0xff]  ;;  %v1013_v60 = vpop.f32.mrf.mxu0  ;;  %vm1687_vm11 = vweird.f32 %v4407_v52 }
 0x1df   : > { %v4418_v62 = vand.u32 2147483647, %v4410_v55  ;;  %v1264_v2 = vadd.f32 %v4350_v53, %v1080_v59  ;;  %1061 = vst.msk [vmem:[#allocation6 + $0x30] sm:$0xff] %vm457_vm0, %v1013_v60  ;;  %vm1692_vm12 = vcmp.eq.f32.partialorder %v1691_v30, 8.507059e+37  ;;  %v1694_v60 = vor.u32 1.1754944e-38, %v1693_v36 }
 0x1e0   : > { %v1670_v63 = vmul.f32 %v3666_v49, %v1669_v57  ;;  %v1303_v1 = vld [vmem:[#allocation6 + $0x20] sm:$0xff] }
 0x1e1   : > { %v1629_v4 = vmul.f32 0.3275911, %v4418_v62  ;;  %v1487_v9 = vadd.f32 %v4347_v45, %v1303_v1  ;;  %1284 = vst.msk [vmem:[#allocation6 + $0x28] sm:$0xff] %vm457_vm0, %v1264_v2 }
 0x1e2   : > { %v1671_v6 = vadd.f32 %v3666_v49, %v1670_v63  ;;  %v1526_v7 = vld [vmem:[#allocation6 + $0x18] sm:$0xff] }
 0x1e3   : > { %v4425_v11 = vadd.f32 1.0, %v1629_v4  ;;  %v4428_v12 = vadd.f32 %v4368_v18, %v1526_v7  ;;  %v3668_v53 = vpop.eup %3667  ;;  %1507 = vst.msk [vmem:[#allocation6 + $0x20] sm:$0xff] %vm457_vm0, %v1487_v9  ;;  %v2189_v9 = vmul.f32 1.442695, %v2168_v24 }
 0x1e4   : > { %v1675_v14 = vsel %vm1674_vm8, %v3666_v49, %v1671_v6  ;;  %v1683_v19 = vmul.f32 %v3668_v53, %v4407_v52  ;;  %vm1688_vm10 = vweird.f32 %v3668_v53  ;;  %v4474_v6 = vmul.f32 0.5, %v4387_v37 }
 0x1e5   : > { %v4431_v16 = vsel %vm1677_vm9, %v1679_v10, %v1675_v14  ;;  %3669 = vrcp.f32 %v4425_v11  ;;  %v1232_v45 = vpop.f32.mrf.mxu1  ;;  %v4439_v31 = vmul.f32 0.70710677, %v4428_v12  ;;  %vm1689_vm13 = vmor %vm1687_vm11, %vm1688_vm10  ;;  %v1706_v61 = vand.u32 2147483647, %v4425_v11 }
 0x1e6   : > { %v1967_v20 = vmul.f32 1.0614054, %v4431_v16  ;;  %v1016_v22 = vpop.f32.mrf.mxu0  ;;  %v1684_v28 = vsub.f32 1.0, %v1683_v19  ;;  %v1081_v29 = vld [vmem:[#allocation6 + $0x30] sm:$0xff]  ;;  %v1270_v40 = vadd.f32 %v1232_v45, %v1086_v32  ;;  %3671 = vpow2.f32 %v2187_v17 }
 0x1e7   : > { %1062 = vst.msk [vmem:[#allocation6 + $0x38] sm:$0xff] %vm457_vm0, %v1016_v22  ;;  %v4449_v42 = vand.u32 2147483647, %v4439_v31  ;;  %v1265_v48 = vadd.f32 %v4356_v8, %v1081_v29  ;;  %v1708_v3 = vand.u32 2147483648, %v4425_v11  ;;  %vm1702_vm15 = vweird.f32 %v4425_v11 }
 0x1e8   : > { %v1987_v34 = vadd.f32 -1.4531521, %v1967_v20  ;;  %v1685_v41 = vmul.f32 %v3668_v53, %v1684_v28  ;;  %v1304_v44 = vld [vmem:[#allocation6 + $0x28] sm:$0xff]  ;;  %1290 = vst.msk [vmem:[#allocation6 + $0x58] sm:$0xff] %vm457_vm0, %v1270_v40  ;;  %vm4485_vm6 = vcmp.eq.f32.partialorder %v1706_v61, 8.507059e+37  ;;  %vm2267_vm8 = vcmp.ge.f32.partialorder %v4379_v26, 0.0 }
 0x1e9   : > { %v1488_v47 = vadd.f32 %v4352_v5, %v1304_v44  ;;  %v1630_v54 = vmul.f32 0.3275911, %v4449_v42  ;;  %v2149_v5 = vsub.f32 0.0, %v4418_v62  ;;  %1285 = vst.msk [vmem:[#allocation6 + $0x30] sm:$0xff] %vm457_vm0, %v1265_v48  ;;  %v1087_v44 = vld [vmem:[#allocation6 + $0x60] sm:$0xff] }
 0x1ea   : > { %v2007_v46 = vmul.f32 %v1987_v34, %v4431_v16  ;;  %v1686_v51 = vadd.f32 %v3668_v53, %v1685_v41  ;;  %v1527_v57 = vld [vmem:[#allocation6 + $0x20] sm:$0xff]  ;;  %v1709_v34 = vor.u32 1.1754944e-38, %v1708_v3 }
 0x1eb   : > { %v3670_v49 = vpop.eup %3669  ;;  %1508 = vst.msk [vmem:[#allocation6 + $0x28] sm:$0xff] %vm457_vm0, %v1488_v47  ;;  %v4463_v63 = vadd.f32 1.0, %v1630_v54  ;;  %v4466_v52 = vadd.f32 %v4368_v18, %v1527_v57  ;;  %v2169_v17 = vmul.f32 %v2149_v5, %v4418_v62  ;;  %v1456_v62 = vpop.f32.mrf.mxu2  ;;  %v4508_v57 = vmul.f32 0.5, %v4404_v50 }
 0x1ec   : > { %v2027_v59 = vadd.f32 1.4214138, %v2007_v46  ;;  %v1698_v43 = vmul.f32 %v3670_v49, %v4425_v11  ;;  %v1690_v8 = vsel %vm1689_vm13, %v3668_v53, %v1686_v51  ;;  %v3672_v4 = vpop.eup %3671  ;;  %vm1703_vm14 = vweird.f32 %v3670_v49 }
 0x1ed   : > { %v4470_v1 = vsel %vm1692_vm12, %v1694_v60, %v1690_v8  ;;  %3673 = vrcp.f32 %v4463_v63  ;;  %v4481_v45 = vmul.f32 0.70710677, %v4466_v52  ;;  %v1235_v21 = vpop.f32.mrf.mxu1  ;;  %vm4492_vm7 = vmor %vm1702_vm15, %vm1703_vm14  ;;  %v2191_v8 = vmul.f32 1.442695, %v2169_v17 }
 0x1ee   : > { %v2047_v0 = vmul.f32 %v2027_v59, %v4431_v16  ;;  %v1699_v2 = vsub.f32 1.0, %v1698_v43  ;;  %v1968_v7 = vmul.f32 1.0614054, %v4470_v1  ;;  %v1082_v10 = vld [vmem:[#allocation6 + $0x38] sm:$0xff]  ;;  %v1019_v22 = vpop.f32.mrf.mxu0  ;;  %v1271_v48 = vadd.f32 %v1235_v21, %v1087_v44 }
 0x1ef   : > { %v1310_v20 = vld [vmem:[#allocation6 + $0x58] sm:$0xff]  ;;  %v1266_v37 = vadd.f32 %v4363_v15, %v1082_v10  ;;  %1063 = vst.msk [vmem:[#allocation6 + $0x40] sm:$0xff] %vm457_vm0, %v1019_v22  ;;  %v2150_v15 = vsub.f32 0.0, %v4449_v42  ;;  %v4498_v29 = vand.u32 2147483647, %v4481_v45  ;;  %3675 = vpow2.f32 %v2189_v9 }
 0x1f0   : > { %v2067_v53 = vadd.f32 -0.28449672, %v2047_v0  ;;  %v1700_v14 = vmul.f32 %v3670_v49, %v1699_v2  ;;  %v1988_v19 = vadd.f32 -1.4531521, %v1968_v7  ;;  %v1494_v41 = vadd.f32 %v1456_v62, %v1310_v20  ;;  %1291 = vst.msk [vmem:[#allocation6 + $0x60] sm:$0xff] %vm457_vm0, %v1271_v48 }
 0x1f1   : > { %1286 = vst.msk [vmem:[#allocation6 + $0x38] sm:$0xff] %vm457_vm0, %v1266_v37  ;;  %v1631_v60 = vmul.f32 0.3275911, %v4498_v29  ;;  %v2170_v61 = vmul.f32 %v2150_v15, %v4449_v42  ;;  %v1721_v9 = vand.u32 2147483647, %v4463_v63  ;;  %vm1717_vm10 = vweird.f32 %v4463_v63 }
 0x1f2   : > { %v2087_v28 = vmul.f32 %v2067_v53, %v4431_v16  ;;  %v1701_v30 = vadd.f32 %v3670_v49, %v1700_v14  ;;  %v2008_v11 = vmul.f32 %v1988_v19, %v4470_v1  ;;  %v1528_v40 = vld [vmem:[#allocation6 + $0x28] sm:$0xff]  ;;  %1514 = vst.msk [vmem:[#allocation6 + $0x58] sm:$0xff] %vm457_vm0, %v1494_v41  ;;  %v1723_v53 = vand.u32 2147483648, %v4463_v63 }
 0x1f3   : > { %v4504_v47 = vadd.f32 %v4368_v18, %v1528_v40  ;;  %v3674_v51 = vpop.eup %3673  ;;  %v4522_v0 = vadd.f32 1.0, %v1631_v60  ;;  %vm2268_vm12 = vcmp.ge.f32.partialorder %v4395_v39, 0.0  ;;  %vm1722_vm13 = vcmp.eq.f32.partialorder %v1721_v9, 8.507059e+37  ;;  %v1305_v60 = vld [vmem:[#allocation6 + $0x30] sm:$0xff] }
 0x1f4   : > { %v2107_v46 = vadd.f32 0.2548296, %v2087_v28  ;;  %v1705_v24 = vsel %vm4492_vm7, %v3670_v49, %v1701_v30  ;;  %v2028_v54 = vadd.f32 1.4214138, %v2008_v11  ;;  %v1713_v5 = vmul.f32 %v3674_v51, %v4463_v63 }
 0x1f5   : > { %v4512_v59 = vsel %vm4485_vm6, %v1709_v34, %v1705_v24  ;;  %v4525_v10 = vmul.f32 0.70710677, %v4504_v47  ;;  %3677 = vrcp.f32 %v4522_v0  ;;  %vm1718_vm9 = vweird.f32 %v3674_v51  ;;  %v3676_v37 = vpop.eup %3675 }
 0x1f6   : > { %v2127_v49 = vmul.f32 %v2107_v46, %v4431_v16  ;;  %v1969_v43 = vmul.f32 1.0614054, %v4512_v59  ;;  %v2048_v50 = vmul.f32 %v2028_v54, %v4470_v1  ;;  %v1714_v7 = vsub.f32 1.0, %v1713_v5  ;;  %vm1719_vm11 = vmor %vm1717_vm10, %vm1718_vm9 }
 0x1f7   : > { %v4534_v20 = vand.u32 2147483647, %v4525_v10  ;;  %v2151_v30 = vsub.f32 0.0, %v4498_v29  ;;  %3679 = vpow2.f32 %v2191_v8  ;;  %v1724_v34 = vor.u32 1.1754944e-38, %v1723_v53 }
 0x1f8   : > { %v2227_v2 = vmul.f32 %v3672_v4, %v2127_v49  ;;  %v1989_v3 = vadd.f32 -1.4531521, %v1969_v43  ;;  %v2068_v16 = vadd.f32 -0.28449672, %v2048_v50  ;;  %v1715_v19 = vmul.f32 %v3674_v51, %v1714_v7 }
 0x1f9   : > { %v2193_v4 = vmul.f32 1.442695, %v2170_v61  ;;  %v1632_v62 = vmul.f32 0.3275911, %v4534_v20  ;;  %v2171_v54 = vmul.f32 %v2151_v30, %v4498_v29  ;;  %v1736_v43 = vand.u32 2147483647, %v4522_v0 }
 0x1fa   : > { %v2247_v14 = vsub.f32 1.0, %v2227_v2  ;;  %v2009_v17 = vmul.f32 %v1989_v3, %v4512_v59  ;;  %v2088_v42 = vmul.f32 %v2068_v16, %v4470_v1  ;;  %v1716_v28 = vadd.f32 %v3674_v51, %v1715_v19  ;;  %v1534_v8 = vld [vmem:[#allocation6 + $0x58] sm:$0xff] }
 0x1fb   : > { %v3678_v15 = vpop.eup %3677  ;;  %v4545_v46 = vadd.f32 1.0, %v1632_v62  ;;  %vm1732_vm14 = vweird.f32 %v4522_v0  ;;  %v1738_v29 = vand.u32 2147483648, %v4522_v0  ;;  %v1306_v3 = vld [vmem:[#allocation6 + $0x38] sm:$0xff]  ;;  %vm2269_vm6 = vcmp.ge.f32.partialorder %v4410_v55, 0.0 }
 0x1fc   : > { %v2287_v21 = vsub.f32 0.0, %v2247_v14  ;;  %v2029_v22 = vadd.f32 1.4214138, %v2009_v17  ;;  %v2108_v32 = vadd.f32 0.2548296, %v2088_v42  ;;  %v1720_v36 = vsel %vm1719_vm11, %v3674_v51, %v1716_v28 }
 0x1fd   : > { %v4543_v44 = vsel %vm1722_vm13, %v1724_v34, %v1720_v36  ;;  %v1728_v26 = vmul.f32 %v3678_v15, %v4522_v0  ;;  %3681 = vrcp.f32 %v4545_v46  ;;  %v3680_v61 = vpop.eup %3679  ;;  %vm1733_vm15 = vweird.f32 %v3678_v15  ;;  %v1022_v34 = vpop.f32.mrf.mxu0 }
 0x1fe   : > { %v2307_v11 = vsel %vm2267_vm8, %v2247_v14, %v2287_v21  ;;  %v2049_v63 = vmul.f32 %v2029_v22, %v4512_v59  ;;  %v2128_v41 = vmul.f32 %v2108_v32, %v4470_v1  ;;  %v1970_v48 = vmul.f32 1.0614054, %v4543_v44  ;;  %vm1734_vm8 = vmor %vm1732_vm14, %vm1733_vm15  ;;  %1064 = vst.msk [vmem:[#allocation6 + $0x48] sm:$0xff] %vm457_vm0, %v1022_v34 }
 0x1ff   : > { %v2327_v40 = vadd.f32 1.0, %v2307_v11  ;;  %3683 = vpow2.f32 %v2193_v4  ;;  %v1729_v50 = vsub.f32 1.0, %v1728_v26  ;;  %vm4560_vm7 = vcmp.eq.f32.partialorder %v1736_v43, 8.507059e+37  ;;  %v1459_v43 = vpop.f32.mrf.mxu2 }
 0x200   : > { %v2069_v24 = vadd.f32 -0.28449672, %v2049_v63  ;;  %v2228_v51 = vmul.f32 %v3676_v37, %v2128_v41  ;;  %v1990_v5 = vadd.f32 -1.4531521, %v1970_v48  ;;  %v4564_v17 = vmul.f32 1.442695, %v2171_v54 }
 0x201   : > { %v2347_v49 = vmul.f32 %v2327_v40, %v4442_v33  ;;  %v1489_v33 = vadd.f32 %v4359_v13, %v1305_v60  ;;  %v1730_v9 = vmul.f32 %v3678_v15, %v1729_v50  ;;  %v4568_v19 = vadd.f32 %v4368_v18, %v1534_v8  ;;  %v1311_v41 = vld [vmem:[#allocation6 + $0x60] sm:$0xff] }
 0x202   : > { %v2089_v1 = vmul.f32 %v2069_v24, %v4512_v59  ;;  %v2248_v2 = vsub.f32 1.0, %v2228_v51  ;;  %v2010_v16 = vmul.f32 %v1990_v5, %v4543_v44  ;;  %v1490_v37 = vadd.f32 %v4372_v23, %v1306_v3 }
 0x203   : > { %2397 = vst.msk [vmem:[#allocation4 + $0x1] sm:$0xff] %vm457_vm0, %v2347_v49  ;;  %v1731_v4 = vadd.f32 %v3678_v15, %v1730_v9  ;;  %v3682_v21 = vpop.eup %3681  ;;  %v1739_v28 = vor.u32 1.1754944e-38, %v1738_v29  ;;  %v2152_v30 = vsub.f32 0.0, %v4534_v20  ;;  %v4578_v32 = vmul.f32 0.70710677, %v4568_v19 }
 0x204   : > { %v2109_v7 = vadd.f32 0.2548296, %v2089_v1  ;;  %v2288_v53 = vsub.f32 0.0, %v2248_v2  ;;  %1509 = vst.msk [vmem:[#allocation6 + $0x30] sm:$0xff] %vm457_vm0, %v1489_v33  ;;  %v2030_v42 = vadd.f32 1.4214138, %v2010_v16  ;;  %v1743_v0 = vmul.f32 %v3682_v21, %v4545_v46 }
 0x205   : > { %v3684_v62 = vpop.eup %3683  ;;  %v1735_v23 = vsel %vm1734_vm8, %v3678_v15, %v1731_v4  ;;  %1510 = vst.msk [vmem:[#allocation6 + $0x38] sm:$0xff] %vm457_vm0, %v1490_v37  ;;  %v1751_v36 = vand.u32 2147483647, %v4545_v46  ;;  %v4589_v40 = vand.u32 2147483647, %v4578_v32  ;;  %v1753_v60 = vand.u32 2147483648, %v4545_v46 }
 0x206   : > { %v2129_v13 = vmul.f32 %v2109_v7, %v4512_v59  ;;  %v2308_v22 = vsel %vm2268_vm12, %v2248_v2, %v2288_v53  ;;  %v2050_v63 = vmul.f32 %v2030_v42, %v4543_v44  ;;  %v4584_v39 = vsel %vm4560_vm7, %v1739_v28, %v1735_v23  ;;  %v1083_v1 = vld [vmem:[#allocation6 + $0x40] sm:$0xff] }
 0x207   : > { %v2328_v59 = vadd.f32 1.0, %v2308_v22  ;;  %v1971_v26 = vmul.f32 1.0614054, %v4584_v39  ;;  %v1744_v54 = vsub.f32 1.0, %v1743_v0  ;;  %v2172_v49 = vmul.f32 %v2152_v30, %v4534_v20 }
 0x208   : > { %v2229_v11 = vmul.f32 %v3680_v61, %v2129_v13  ;;  %v2070_v15 = vadd.f32 -0.28449672, %v2050_v63  ;;  %v1638_v51 = vmul.f32 0.3275911, %v4589_v40  ;;  %v1495_v61 = vadd.f32 %v1459_v43, %v1311_v41 }
 0x209   : > { %v2348_v24 = vmul.f32 %v2328_v59, %v4474_v6  ;;  %v1991_v8 = vadd.f32 -1.4531521, %v1971_v26  ;;  %v1745_v2 = vmul.f32 %v3682_v21, %v1744_v54  ;;  %vm1748_vm9 = vweird.f32 %v3682_v21 }
 0x20a   : > { %v2249_v48 = vsub.f32 1.0, %v2229_v11  ;;  %v2090_v50 = vmul.f32 %v2070_v15, %v4543_v44  ;;  %v4602_v33 = vadd.f32 1.0, %v1638_v51  ;;  %1515 = vst.msk [vmem:[#allocation6 + $0x60] sm:$0xff] %vm457_vm0, %v1495_v61  ;;  %v1267_v16 = vadd.f32 %v4381_v27, %v1083_v1 }
 0x20b   : > { %2398 = vst.msk [vmem:[#allocation4 + $0x9] sm:$0xff] %vm457_vm0, %v2348_v24  ;;  %v1529_v6 = vld [vmem:[#allocation6 + $0x30] sm:$0xff]  ;;  %v2011_v7 = vmul.f32 %v1991_v8, %v4584_v39  ;;  %v1746_v53 = vadd.f32 %v3682_v21, %v1745_v2  ;;  %vm1747_vm10 = vweird.f32 %v4545_v46  ;;  %v1754_v55 = vor.u32 1.1754944e-38, %v1753_v60  ;;  %v1025_v60 = vpop.f32.mrf.mxu0 }
 0x20c   : > { %v2289_v5 = vsub.f32 0.0, %v2249_v48  ;;  %v4600_v29 = vadd.f32 %v4368_v18, %v1529_v6  ;;  %v2110_v3 = vadd.f32 0.2548296, %v2090_v50  ;;  %vm1749_vm11 = vmor %vm1747_vm10, %vm1748_vm9  ;;  %3685 = vrcp.f32 %v4602_v33  ;;  %1287 = vst.msk [vmem:[#allocation6 + $0x40] sm:$0xff] %vm457_vm0, %v1267_v16  ;;  %v1530_v23 = vld [vmem:[#allocation6 + $0x38] sm:$0xff]  ;;  %v1084_v6 = vld [vmem:[#allocation6 + $0x48] sm:$0xff] }
 0x20d   : > { %v2031_v42 = vadd.f32 1.4214138, %v2011_v7  ;;  %v1750_v37 = vsel %vm1749_vm11, %v3682_v21, %v1746_v53  ;;  %vm1752_vm12 = vcmp.eq.f32.partialorder %v1751_v36, 8.507059e+37  ;;  %v1570_v21 = vmul.f32 0.5, %v4428_v12  ;;  %1065 = vst.msk [vmem:[#allocation6 + $0x50] sm:$0xff] %vm457_vm0, %v1025_v60 }
 0x20e   : > { %v2309_v20 = vsel %vm2269_vm6, %v2249_v48, %v2289_v5  ;;  %v4611_v14 = vmul.f32 0.70710677, %v4600_v29  ;;  %v2130_v13 = vmul.f32 %v2110_v3, %v4543_v44  ;;  %v4621_v28 = vsel %vm1752_vm12, %v1754_v55, %v1750_v37 }
 0x20f   : > { %v2329_v9 = vadd.f32 1.0, %v2309_v20  ;;  %v2051_v22 = vmul.f32 %v2031_v42, %v4584_v39  ;;  %v2197_v44 = vmul.f32 1.442695, %v2172_v49  ;;  %v1972_v30 = vmul.f32 1.0614054, %v4621_v28 }
 0x210   : > { %v4618_v27 = vand.u32 2147483647, %v4611_v14  ;;  %v2230_v46 = vmul.f32 %v3684_v62, %v2130_v13  ;;  %3687 = vpow2.f32 %v4564_v17  ;;  %v1841_v24 = vand.u32 2147483647, %v4602_v33  ;;  %v1088_v13 = vld [vmem:[#allocation6 + $0x68] sm:$0xff] }
 0x211   : > { %v2349_v4 = vmul.f32 %v2329_v9, %v4508_v57  ;;  %v2071_v11 = vadd.f32 -0.28449672, %v2051_v22  ;;  %v1238_v57 = vpop.f32.mrf.mxu1  ;;  %v1992_v63 = vadd.f32 -1.4531521, %v1972_v30  ;;  %3689 = vpow2.f32 %v2197_v44 }
 0x212   : > { %v1633_v34 = vmul.f32 0.3275911, %v4618_v27  ;;  %v2250_v59 = vsub.f32 1.0, %v2230_v46  ;;  %v4630_v0 = vpop.eup %3685  ;;  %vm2270_vm13 = vcmp.ge.f32.partialorder %v4439_v31, 0.0  ;;  %v4636_v48 = vmul.f32 0.5, %v4466_v52  ;;  %v1535_v52 = vld [vmem:[#allocation6 + $0x60] sm:$0xff] }
 0x213   : > { %2399 = vst.msk [vmem:[#allocation4 + $0x19] sm:$0xff] %vm457_vm0, %v2349_v4  ;;  %v2091_v41 = vmul.f32 %v2071_v11, %v4584_v39  ;;  %v2012_v12 = vmul.f32 %v1992_v63, %v4621_v28  ;;  %v2158_v26 = vsub.f32 0.0, %v4589_v40  ;;  %v4642_v54 = vadd.f32 %v4368_v18, %v1530_v23  ;;  %v1307_v43 = vld [vmem:[#allocation6 + $0x40] sm:$0xff] }
 0x214   : > { %v4628_v62 = vadd.f32 1.0, %v1633_v34  ;;  %v2290_v36 = vsub.f32 0.0, %v2250_v59  ;;  %vm2271_vm14 = vcmp.ge.f32.partialorder %v4481_v45, 0.0  ;;  %v1833_v31 = vmul.f32 %v4630_v0, %v4602_v33 }
 0x215   : > { %v2111_v15 = vadd.f32 0.2548296, %v2091_v41  ;;  %v2032_v51 = vadd.f32 1.4214138, %v2012_v12  ;;  %vm1837_vm15 = vweird.f32 %v4602_v33  ;;  %v2153_v5 = vsub.f32 0.0, %v4618_v27 }
 0x216   : > { %3691 = vrcp.f32 %v4628_v62  ;;  %v2310_v17 = vsel %vm2270_vm13, %v2250_v59, %v2290_v36  ;;  %vm4651_vm6 = vcmp.eq.f32.partialorder %v1841_v24, 8.507059e+37  ;;  %v1843_v8 = vand.u32 2147483648, %v4602_v33  ;;  %v3688_v61 = vpop.eup %3687  ;;  %v1089_v36 = vld [vmem:[#allocation6 + $0x70] sm:$0xff] }
 0x217   : > { %v2330_v49 = vadd.f32 1.0, %v2310_v17  ;;  %v2131_v1 = vmul.f32 %v2111_v15, %v4584_v39  ;;  %v2052_v20 = vmul.f32 %v2032_v51, %v4621_v28  ;;  %v1834_v3 = vsub.f32 1.0, %v1833_v31  ;;  %v3690_v7 = vpop.eup %3689 }
 0x218   : > { %vm1838_vm7 = vweird.f32 %v4630_v0  ;;  %v4659_v39 = vmul.f32 0.70710677, %v4642_v54  ;;  %v4662_v9 = vadd.f32 %v4368_v18, %v1535_v52  ;;  %v1491_v53 = vadd.f32 %v4390_v38, %v1307_v43 }
 0x219   : > { %v2350_v2 = vmul.f32 %v2330_v49, %v1570_v21  ;;  %v2231_v16 = vmul.f32 %v3688_v61, %v2131_v1  ;;  %v2072_v55 = vadd.f32 -0.28449672, %v2052_v20  ;;  %v1835_v4 = vmul.f32 %v4630_v0, %v1834_v3  ;;  %v1241_v38 = vpop.f32.mrf.mxu1  ;;  %vm1839_vm9 = vmor %vm1837_vm15, %vm1838_vm7 }
 0x21a   : > { %v1272_v37 = vadd.f32 %v1238_v57, %v1088_v13  ;;  %v1268_v46 = vadd.f32 %v4392_v35, %v1084_v6  ;;  %v1844_v30 = vor.u32 1.1754944e-38, %v1843_v8  ;;  %v4670_v34 = vand.u32 2147483647, %v4659_v39  ;;  %1511 = vst.msk [vmem:[#allocation6 + $0x40] sm:$0xff] %vm457_vm0, %v1491_v53  ;;  %v1462_v6 = vpop.f32.mrf.mxu2 }
 0x21b   : > { %2400 = vst.msk [vmem:[#allocation4 + $0x21] sm:$0xff] %vm457_vm0, %v2350_v2  ;;  %v2251_v22 = vsub.f32 1.0, %v2231_v16  ;;  %v2092_v59 = vmul.f32 %v2072_v55, %v4621_v28  ;;  %v1766_v11 = vand.u32 2147483647, %v4628_v62  ;;  %v1768_v21 = vand.u32 2147483648, %v4628_v62 }
 0x21c   : > { %v3692_v42 = vpop.eup %3691  ;;  %v1836_v57 = vadd.f32 %v4630_v0, %v1835_v4  ;;  %1292 = vst.msk [vmem:[#allocation6 + $0x68] sm:$0xff] %vm457_vm0, %v1272_v37  ;;  %v1634_v23 = vmul.f32 0.3275911, %v4670_v34  ;;  %v4686_v12 = vmul.f32 0.70710677, %v4662_v9  ;;  %v1273_v17 = vadd.f32 %v1241_v38, %v1089_v36 }
 0x21d   : > { %v1758_v44 = vmul.f32 %v3692_v42, %v4628_v62  ;;  %v2291_v35 = vsub.f32 0.0, %v2251_v22  ;;  %vm1763_vm8 = vweird.f32 %v3692_v42  ;;  %1288 = vst.msk [vmem:[#allocation6 + $0x48] sm:$0xff] %vm457_vm0, %v1268_v46  ;;  %v2112_v41 = vadd.f32 0.2548296, %v2092_v59 }
 0x21e   : > { %v1840_v24 = vsel %vm1839_vm9, %v4630_v0, %v1836_v57  ;;  %v4694_v49 = vadd.f32 1.0, %v1634_v23  ;;  %v2173_v52 = vmul.f32 %v2153_v5, %v4618_v27  ;;  %1293 = vst.msk [vmem:[#allocation6 + $0x70] sm:$0xff] %vm457_vm0, %v1273_v17  ;;  %vm1762_vm10 = vweird.f32 %v4628_v62 }
 0x21f   : > { %v1759_v63 = vsub.f32 1.0, %v1758_v44  ;;  %v2311_v15 = vsel %vm2271_vm14, %v2251_v22, %v2291_v35  ;;  %v4692_v33 = vsel %vm4651_vm6, %v1844_v30, %v1840_v24  ;;  %v2132_v31 = vmul.f32 %v2112_v41, %v4621_v28  ;;  %vm1764_vm11 = vmor %vm1762_vm10, %vm1763_vm8  ;;  %v1085_v24 = vld [vmem:[#allocation6 + $0x50] sm:$0xff] }
 0x220   : > { %v2331_v51 = vadd.f32 1.0, %v2311_v15  ;;  %v1978_v0 = vmul.f32 1.0614054, %v4692_v33  ;;  %v2178_v45 = vmul.f32 %v2158_v26, %v4589_v40  ;;  %3693 = vrcp.f32 %v4694_v49 }
 0x221   : > { %v1760_v60 = vmul.f32 %v3692_v42, %v1759_v63  ;;  %v2232_v50 = vmul.f32 %v3690_v7, %v2132_v31  ;;  %v1769_v28 = vor.u32 1.1754944e-38, %v1768_v21  ;;  %vm1767_vm12 = vcmp.eq.f32.partialorder %v1766_v11, 8.507059e+37  ;;  %v1531_v13 = vld [vmem:[#allocation6 + $0x40] sm:$0xff] }
 0x222   : > { %v2351_v1 = vmul.f32 %v2331_v51, %v4636_v48  ;;  %v1998_v27 = vadd.f32 -1.4531521, %v1978_v0  ;;  %v4708_v8 = vand.u32 2147483647, %v4686_v12  ;;  %v2199_v40 = vmul.f32 1.442695, %v2173_v52  ;;  %v1465_v52 = vpop.f32.mrf.mxu2 }
 0x223   : > { %v1761_v43 = vadd.f32 %v3692_v42, %v1760_v60  ;;  %v2252_v62 = vsub.f32 1.0, %v2232_v50  ;;  %v1312_v48 = vld [vmem:[#allocation6 + $0x68] sm:$0xff]  ;;  %v1572_v2 = vmul.f32 0.5, %v4504_v47  ;;  %vm2272_vm13 = vcmp.ge.f32.partialorder %v4525_v10, 0.0 }
 0x224   : > { %2401 = vst.msk [vmem:[#allocation4 + $0x31] sm:$0xff] %vm457_vm0, %v2351_v1  ;;  %v2018_v26 = vmul.f32 %v1998_v27, %v4692_v33  ;;  %v1639_v3 = vmul.f32 0.3275911, %v4708_v8  ;;  %v2209_v53 = vmul.f32 1.442695, %v2178_v45  ;;  %v2154_v4 = vsub.f32 0.0, %v4670_v34 }
 0x225   : > { %v1765_v5 = vsel %vm1764_vm11, %v3692_v42, %v1761_v43  ;;  %v2292_v7 = vsub.f32 0.0, %v2252_v62  ;;  %v1496_v46 = vadd.f32 %v1462_v6, %v1312_v48  ;;  %3695 = vpow2.f32 %v2199_v40  ;;  %v1308_v57 = vld [vmem:[#allocation6 + $0x48] sm:$0xff]  ;;  %v1313_v41 = vld [vmem:[#allocation6 + $0x70] sm:$0xff] }
 0x226   : > { %v4711_v61 = vsel %vm1767_vm12, %v1769_v28, %v1765_v5  ;;  %v2038_v16 = vadd.f32 1.4214138, %v2018_v26  ;;  %v3694_v42 = vpop.eup %3693  ;;  %v4719_v37 = vadd.f32 1.0, %v1639_v3  ;;  %v4726_v38 = vadd.f32 %v4368_v18, %v1531_v13  ;;  %v1090_v28 = vld [vmem:[#allocation6 + $0x78] sm:$0xff] }
 0x227   : > { %v1973_v20 = vmul.f32 1.0614054, %v4711_v61  ;;  %v2312_v22 = vsel %vm2272_vm13, %v2252_v62, %v2292_v7  ;;  %v1773_v10 = vmul.f32 %v3694_v42, %v4694_v49  ;;  %1516 = vst.msk [vmem:[#allocation6 + $0x68] sm:$0xff] %vm457_vm0, %v1496_v46  ;;  %v4730_v59 = vmul.f32 0.5, %v4568_v19  ;;  %v1244_v19 = vpop.f32.mrf.mxu1 }
 0x228   : > { %v2058_v47 = vmul.f32 %v2038_v16, %v4692_v33  ;;  %v2332_v44 = vadd.f32 1.0, %v2312_v22  ;;  %3697 = vrcp.f32 %v4719_v37  ;;  %v1783_v23 = vand.u32 2147483648, %v4694_v49 }
 0x229   : > { %v1993_v55 = vadd.f32 -1.4531521, %v1973_v20  ;;  %3699 = vpow2.f32 %v2209_v53  ;;  %v1774_v21 = vsub.f32 1.0, %v1773_v10  ;;  %v2174_v36 = vmul.f32 %v2154_v4, %v4670_v34 }
 0x22a   : > { %v2078_v11 = vadd.f32 -0.28449672, %v2058_v47  ;;  %v2352_v35 = vmul.f32 %v2332_v44, %v1572_v2  ;;  %vm1778_vm14 = vweird.f32 %v3694_v42  ;;  %v1781_v60 = vand.u32 2147483647, %v4694_v49 }
 0x22b   : > { %v2013_v30 = vmul.f32 %v1993_v55, %v4711_v61  ;;  %v1775_v15 = vmul.f32 %v3694_v42, %v1774_v21  ;;  %vm1777_vm15 = vweird.f32 %v4694_v49  ;;  %v4740_v31 = vmul.f32 0.70710677, %v4726_v38  ;;  %v3696_v0 = vpop.eup %3695 }
 0x22c   : > { %v2098_v17 = vmul.f32 %v2078_v11, %v4692_v33  ;;  %2402 = vst.msk [vmem:[#allocation4 + $0x39] sm:$0xff] %vm457_vm0, %v2352_v35  ;;  %v1492_v34 = vadd.f32 %v4415_v58, %v1308_v57  ;;  %v1497_v1 = vadd.f32 %v1465_v52, %v1313_v41  ;;  %v1269_v50 = vadd.f32 %v4412_v56, %v1085_v24  ;;  %vm1779_vm6 = vmor %vm1777_vm15, %vm1778_vm14 }
 0x22d   : > { %v2033_v63 = vadd.f32 1.4214138, %v2013_v30  ;;  %v1776_v45 = vadd.f32 %v3694_v42, %v1775_v15  ;;  %v1784_v6 = vor.u32 1.1754944e-38, %v1783_v23  ;;  %v4746_v49 = vand.u32 2147483647, %v4740_v31 }
 0x22e   : > { %v2118_v43 = vadd.f32 0.2548296, %v2098_v17  ;;  %v3698_v27 = vpop.eup %3697  ;;  %1512 = vst.msk [vmem:[#allocation6 + $0x48] sm:$0xff] %vm457_vm0, %v1492_v34  ;;  %v1274_v62 = vadd.f32 %v1244_v19, %v1090_v28  ;;  %vm1782_vm7 = vcmp.eq.f32.partialorder %v1781_v60, 8.507059e+37  ;;  %v1536_v56 = vld [vmem:[#allocation6 + $0x68] sm:$0xff]  ;;  %v2159_v3 = vsub.f32 0.0, %v4708_v8  ;;  %v4797_v28 = vpop.f32.mrf.mxu2 }
 0x22f   : > { %v2053_v51 = vmul.f32 %v2033_v63, %v4711_v61  ;;  %v3700_v58 = vpop.eup %3699  ;;  %v1780_v26 = vsel %vm1779_vm6, %v3694_v42, %v1776_v45  ;;  %v1848_v48 = vmul.f32 %v3698_v27, %v4719_v37  ;;  %1517 = vst.msk [vmem:[#allocation6 + $0x70] sm:$0xff] %vm457_vm0, %v1497_v1  ;;  %v1635_v7 = vmul.f32 0.3275911, %v4746_v49  ;;  %v4772_v35 = vpop.f32.mrf.mxu1 }
 0x230   : > { %v2138_v40 = vmul.f32 %v2118_v43, %v4692_v33  ;;  %v4753_v20 = vsel %vm1782_vm7, %v1784_v6, %v1780_v26  ;;  %1289 = vst.msk [vmem:[#allocation6 + $0x50] sm:$0xff] %vm457_vm0, %v1269_v50  ;;  %v1856_v13 = vand.u32 2147483647, %v4719_v37  ;;  %v1858_v55 = vand.u32 2147483648, %v4719_v37 }
 0x231   : > { %v2073_v5 = vadd.f32 -0.28449672, %v2053_v51  ;;  %v1974_v33 = vmul.f32 1.0614054, %v4753_v20  ;;  %v1849_v53 = vsub.f32 1.0, %v1848_v48  ;;  %1294 = vst.msk [vmem:[#allocation6 + $0x78] sm:$0xff] %vm457_vm0, %v1274_v62  ;;  %v4765_v46 = vadd.f32 %v4368_v18, %v1536_v56 }
 0x232   : > { %v2238_v16 = vmul.f32 %v3700_v58, %v2138_v40  ;;  %v4762_v4 = vadd.f32 1.0, %v1635_v7  ;;  %vm1853_vm8 = vweird.f32 %v3698_v27  ;;  %vm2278_vm9 = vcmp.ge.f32.partialorder %v4578_v32, 0.0 }
 0x233   : > { %v2093_v2 = vmul.f32 %v2073_v5, %v4711_v61  ;;  %v1994_v47 = vadd.f32 -1.4531521, %v1974_v33  ;;  %v1850_v10 = vmul.f32 %v3698_v27, %v1849_v53  ;;  %v2201_v30 = vmul.f32 1.442695, %v2174_v36 }
 0x234   : > { %v2258_v22 = vsub.f32 1.0, %v2238_v16  ;;  %3701 = vrcp.f32 %v4762_v4  ;;  %vm1852_vm10 = vweird.f32 %v4719_v37  ;;  %v1859_v63 = vor.u32 1.1754944e-38, %v1858_v55 }
 0x235   : > { %v2113_v42 = vadd.f32 0.2548296, %v2093_v2  ;;  %v2014_v21 = vmul.f32 %v1994_v47, %v4753_v20  ;;  %v1851_v57 = vadd.f32 %v3698_v27, %v1850_v10  ;;  %vm1854_vm11 = vmor %vm1852_vm10, %vm1853_vm8  ;;  %v2179_v23 = vmul.f32 %v2159_v3, %v4708_v8  ;;  %v1532_v24 = vld [vmem:[#allocation6 + $0x48] sm:$0xff] }
 0x236   : > { %v2298_v11 = vsub.f32 0.0, %v2258_v22  ;;  %vm1857_vm12 = vcmp.eq.f32.partialorder %v1856_v13, 8.507059e+37  ;;  %v1573_v17 = vmul.f32 0.5, %v4600_v29  ;;  %vm2273_vm13 = vcmp.ge.f32.partialorder %v4611_v14, 0.0  ;;  %v4791_v29 = vld [vmem:[%s5492_s4] ss:$0 sm:$0xff] }
 0x237   : > { %v2133_v44 = vmul.f32 %v2113_v42, %v4711_v61  ;;  %v4776_v61 = vmul.f32 0.70710677, %v4765_v46  ;;  %v2034_v36 = vadd.f32 1.4214138, %v2014_v21  ;;  %v1855_v41 = vsel %vm1854_vm11, %v3698_v27, %v1851_v57  ;;  %v1537_v48 = vld [vmem:[#allocation6 + $0x70] sm:$0xff]  ;;  %v4811_v13 = vpop.f32.mrf.mxu1 }
 0x238   : > { %v2318_v32 = vsel %vm2278_vm9, %v2258_v22, %v2298_v11  ;;  %v4779_v37 = vsel %vm1857_vm12, %v1859_v63, %v1855_v41  ;;  %3703 = vpow2.f32 %v2201_v30  ;;  %v4794_v43 = vadd.f32 %v4791_v29, %v1532_v24  ;;  %v1309_v21 = vld [vmem:[#allocation6 + $0x50] sm:$0xff] }
 0x239   : > { %v2233_v18 = vmul.f32 %v3696_v0, %v2133_v44  ;;  %v2338_v60 = vadd.f32 1.0, %v2318_v32  ;;  %v2054_v19 = vmul.f32 %v2034_v36, %v4753_v20  ;;  %v1979_v8 = vmul.f32 1.0614054, %v4779_v37 }
 0x23a   : > { %v4785_v51 = vand.u32 2147483647, %v4776_v61  ;;  %v3702_v34 = vpop.eup %3701  ;;  %v2211_v1 = vmul.f32 1.442695, %v2179_v23  ;;  %v2155_v5 = vsub.f32 0.0, %v4746_v49  ;;  %v1798_v56 = vand.u32 2147483648, %v4762_v4 }
 0x23b   : > { %v2253_v15 = vsub.f32 1.0, %v2233_v18  ;;  %v2358_v0 = vmul.f32 %v2338_v60, %v4730_v59  ;;  %v2074_v14 = vadd.f32 -0.28449672, %v2054_v19  ;;  %v1999_v45 = vadd.f32 -1.4531521, %v1979_v8 }
 0x23c   : > { %v1788_v50 = vmul.f32 %v3702_v34, %v4762_v4  ;;  %v1796_v59 = vand.u32 2147483647, %v4762_v4  ;;  %v1640_v6 = vmul.f32 0.3275911, %v4785_v51  ;;  %vm1793_vm14 = vweird.f32 %v3702_v34 }
 0x23d   : > { %v2293_v52 = vsub.f32 0.0, %v2253_v15  ;;  %2408 = vst.msk [vmem:[#allocation4 + $0x81] sm:$0xff] %vm457_vm0, %v2358_v0  ;;  %v2094_v58 = vmul.f32 %v2074_v14, %v4753_v20  ;;  %v2019_v40 = vmul.f32 %v1999_v45, %v4779_v37  ;;  %v4809_v3 = vmul.f32 0.70710677, %v4794_v43 }
 0x23e   : > { %v1789_v26 = vsub.f32 1.0, %v1788_v50  ;;  %v4806_v2 = vadd.f32 1.0, %v1640_v6  ;;  %v3704_v42 = vpop.eup %3703  ;;  %v1574_v55 = vmul.f32 0.5, %v4642_v54  ;;  %v4816_v22 = vadd.f32 %v4791_v29, %v1537_v48  ;;  %v1314_v48 = vld [vmem:[#allocation6 + $0x78] sm:$0xff] }
 0x23f   : > { %v2313_v27 = vsel %vm2273_vm13, %v2253_v15, %v2293_v52  ;;  %v2114_v16 = vadd.f32 0.2548296, %v2094_v58  ;;  %v2039_v33 = vadd.f32 1.4214138, %v2019_v40  ;;  %vm1792_vm15 = vweird.f32 %v4762_v4 }
 0x240   : > { %v2333_v62 = vadd.f32 1.0, %v2313_v27  ;;  %v1790_v53 = vmul.f32 %v3702_v34, %v1789_v26  ;;  %3705 = vrcp.f32 %v4806_v2  ;;  %vm1794_vm6 = vmor %vm1792_vm15, %vm1793_vm14  ;;  %v1799_v30 = vor.u32 1.1754944e-38, %v1798_v56 }
 0x241   : > { %v2134_v47 = vmul.f32 %v2114_v16, %v4753_v20  ;;  %v2059_v10 = vmul.f32 %v2039_v33, %v4779_v37  ;;  %3707 = vpow2.f32 %v2211_v1  ;;  %v2175_v54 = vmul.f32 %v2155_v5, %v4746_v49  ;;  %v4827_v20 = vpop.f32.mrf.mxu2  ;;  %v4853_v5 = vpop.f32.mrf.mxu1 }
 0x242   : > { %v2353_v7 = vmul.f32 %v2333_v62, %v1573_v17  ;;  %v1791_v44 = vadd.f32 %v3702_v34, %v1790_v53  ;;  %v4825_v11 = vand.u32 2147483647, %v4809_v3  ;;  %vm1797_vm7 = vcmp.eq.f32.partialorder %v1796_v59, 8.507059e+37 }
 0x243   : > { %v2234_v57 = vmul.f32 %v3704_v42, %v2134_v47  ;;  %v2079_v18 = vadd.f32 -0.28449672, %v2059_v10  ;;  %v2160_v4 = vsub.f32 0.0, %v4785_v51  ;;  %v4834_v36 = vmul.f32 0.70710677, %v4816_v22  ;;  %v1091_v47 = vld [vmem:[#allocation6 + $0x80] sm:$0xff] }
 0x244   : > { %2403 = vst.msk [vmem:[#allocation4 + $0x49] sm:$0xff] %vm457_vm0, %v2353_v7  ;;  %v1795_v63 = vsel %vm1794_vm6, %v3702_v34, %v1791_v44  ;;  %v1636_v32 = vmul.f32 0.3275911, %v4825_v11  ;;  %v1493_v17 = vadd.f32 %v4445_v25, %v1309_v21  ;;  %vm2274_vm8 = vcmp.ge.f32.partialorder %v4659_v39, 0.0  ;;  %v1092_v10 = vld [vmem:[#allocation6 + $0x88] sm:$0xff] }
 0x245   : > { %v4829_v23 = vsel %vm1797_vm7, %v1799_v30, %v1795_v63  ;;  %v2254_v49 = vsub.f32 1.0, %v2234_v57  ;;  %v2099_v41 = vmul.f32 %v2079_v18, %v4779_v37  ;;  %v2203_v60 = vmul.f32 1.442695, %v2175_v54 }
 0x246   : > { %v1975_v24 = vmul.f32 1.0614054, %v4829_v23  ;;  %v3706_v15 = vpop.eup %3705  ;;  %v4840_v19 = vadd.f32 1.0, %v1636_v32  ;;  %v4843_v8 = vand.u32 2147483647, %v4834_v36  ;;  %1513 = vst.msk [vmem:[#allocation6 + $0x50] sm:$0xff] %vm457_vm0, %v1493_v17  ;;  %v2180_v39 = vmul.f32 %v2160_v4, %v4785_v51 }
 0x247   : > { %v2294_v34 = vsub.f32 0.0, %v2254_v49  ;;  %v2119_v52 = vadd.f32 0.2548296, %v2099_v41  ;;  %v1863_v14 = vmul.f32 %v3706_v15, %v4806_v2  ;;  %v3708_v45 = vpop.eup %3707  ;;  %vm2279_vm9 = vcmp.ge.f32.partialorder %v4686_v12, 0.0 }
 0x248   : > { %v1995_v0 = vadd.f32 -1.4531521, %v1975_v24  ;;  %v1871_v25 = vand.u32 2147483647, %v4806_v2  ;;  %3709 = vrcp.f32 %v4840_v19  ;;  %vm1868_vm10 = vweird.f32 %v3706_v15 }
 0x249   : > { %v2314_v1 = vsel %vm2274_vm8, %v2254_v49, %v2294_v34  ;;  %v2139_v50 = vmul.f32 %v2119_v52, %v4779_v37  ;;  %v1864_v59 = vsub.f32 1.0, %v1863_v14  ;;  %3711 = vpow2.f32 %v2203_v60  ;;  %v4865_v44 = vpop.f32.mrf.mxu2 }
 0x24a   : > { %v2015_v27 = vmul.f32 %v1995_v0, %v4829_v23  ;;  %v2334_v6 = vadd.f32 1.0, %v2314_v1  ;;  %v1873_v62 = vand.u32 2147483648, %v4806_v2  ;;  %v1641_v51 = vmul.f32 0.3275911, %v4843_v8 }
 0x24b   : > { %v2239_v58 = vmul.f32 %v3708_v45, %v2139_v50  ;;  %v1865_v26 = vmul.f32 %v3706_v15, %v1864_v59  ;;  %vm1867_vm11 = vweird.f32 %v4806_v2  ;;  %vm4858_vm12 = vcmp.eq.f32.partialorder %v1871_v25, 8.507059e+37  ;;  %v1256_v25 = vpop.f32.mrf.mxu1  ;;  %v1093_v59 = vld [vmem:[#allocation6 + $0x90] sm:$0xff] }
 0x24c   : > { %v2035_v40 = vadd.f32 1.4214138, %v2015_v27  ;;  %v2354_v56 = vmul.f32 %v2334_v6, %v1574_v55  ;;  %v2213_v7 = vmul.f32 1.442695, %v2180_v39  ;;  %v4863_v42 = vadd.f32 1.0, %v1641_v51  ;;  %vm1869_vm13 = vmor %vm1867_vm11, %vm1868_vm10  ;;  %v1094_v6 = vld [vmem:[#allocation6 + $0x98] sm:$0xff] }
 0x24d   : > { %v2259_v16 = vsub.f32 1.0, %v2239_v58  ;;  %v1866_v53 = vadd.f32 %v3706_v15, %v1865_v26  ;;  %v1874_v2 = vor.u32 1.1754944e-38, %v1873_v62  ;;  %v1498_v55 = vadd.f32 %v4797_v28, %v1314_v48  ;;  %v1533_v28 = vld [vmem:[#allocation6 + $0x50] sm:$0xff] }
 0x24e   : > { %v2055_v33 = vmul.f32 %v2035_v40, %v4829_v23  ;;  %v3710_v30 = vpop.eup %3709  ;;  %2404 = vst.msk [vmem:[#allocation4 + $0x51] sm:$0xff] %vm457_vm0, %v2354_v56  ;;  %v1275_v54 = vadd.f32 %v4772_v35, %v1091_v47  ;;  %v1276_v21 = vadd.f32 %v4811_v13, %v1092_v10  ;;  %v1811_v41 = vand.u32 2147483647, %v4840_v19 }
 0x24f   : > { %v2299_v57 = vsub.f32 0.0, %v2259_v16  ;;  %v1870_v63 = vsel %vm1869_vm13, %v3706_v15, %v1866_v53  ;;  %v1803_v4 = vmul.f32 %v3710_v30, %v4840_v19  ;;  %v3712_v32 = vpop.eup %3711  ;;  %v1813_v24 = vand.u32 2147483648, %v4840_v19  ;;  %1518 = vst.msk [vmem:[#allocation6 + $0x78] sm:$0xff] %vm457_vm0, %v1498_v55 }
 0x250   : > { %v2075_v18 = vadd.f32 -0.28449672, %v2055_v33  ;;  %v4875_v49 = vsel %vm4858_vm12, %v1874_v2, %v1870_v63  ;;  %3713 = vrcp.f32 %v4863_v42  ;;  %1295 = vst.msk [vmem:[#allocation6 + $0x80] sm:$0xff] %vm457_vm0, %v1275_v54  ;;  %v1579_v60 = vmul.f32 0.5, %v4662_v9 }
 0x251   : > { %v2319_v35 = vsel %vm2279_vm9, %v2259_v16, %v2299_v57  ;;  %v1980_v17 = vmul.f32 1.0614054, %v4875_v49  ;;  %v1804_v15 = vsub.f32 1.0, %v1803_v4  ;;  %v4888_v52 = vmul.f32 0.5, %v4726_v38  ;;  %1296 = vst.msk [vmem:[#allocation6 + $0x88] sm:$0xff] %vm457_vm0, %v1276_v21 }
 0x252   : > { %v2095_v13 = vmul.f32 %v2075_v18, %v4829_v23  ;;  %v2339_v34 = vadd.f32 1.0, %v2319_v35  ;;  %vm1808_vm14 = vweird.f32 %v3710_v30  ;;  %v4891_v12 = vadd.f32 %v4791_v29, %v1533_v28 }
 0x253   : > { %v2000_v14 = vadd.f32 -1.4531521, %v1980_v17  ;;  %v1805_v45 = vmul.f32 %v3710_v30, %v1804_v15  ;;  %vm2275_vm15 = vcmp.ge.f32.partialorder %v4740_v31, 0.0  ;;  %3715 = vpow2.f32 %v2213_v7  ;;  %v1477_v7 = vpop.f32.mrf.mxu2 }
 0x254   : > { %v2115_v0 = vadd.f32 0.2548296, %v2095_v13  ;;  %v2359_v39 = vmul.f32 %v2339_v34, %v1579_v60  ;;  %vm1807_vm6 = vweird.f32 %v4840_v19  ;;  %vm4896_vm7 = vcmp.eq.f32.partialorder %v1811_v41, 8.507059e+37 }
 0x255   : > { %v2020_v1 = vmul.f32 %v2000_v14, %v4875_v49  ;;  %v1806_v50 = vadd.f32 %v3710_v30, %v1805_v45  ;;  %v1814_v27 = vor.u32 1.1754944e-38, %v1813_v24  ;;  %vm1809_vm8 = vmor %vm1807_vm6, %vm1808_vm14  ;;  %v1886_v58 = vand.u32 2147483647, %v4863_v42 }
 0x256   : > { %v2135_v38 = vmul.f32 %v2115_v0, %v4829_v23  ;;  %v3714_v62 = vpop.eup %3713  ;;  %2409 = vst.msk [vmem:[#allocation4 + $0x91] sm:$0xff] %vm457_vm0, %v2359_v39  ;;  %v4906_v19 = vmul.f32 0.70710677, %v4891_v12  ;;  %v1277_v40 = vadd.f32 %v4853_v5, %v1093_v59  ;;  %v1278_v26 = vadd.f32 %v1256_v25, %v1094_v6  ;;  %v1538_v37 = vld [vmem:[#allocation6 + $0x78] sm:$0xff] }
 0x257   : > { %v2040_v51 = vadd.f32 1.4214138, %v2020_v1  ;;  %v1810_v48 = vsel %vm1809_vm8, %v3710_v30, %v1806_v50  ;;  %v1878_v56 = vmul.f32 %v3714_v62, %v4863_v42  ;;  %v2156_v33 = vsub.f32 0.0, %v4825_v11  ;;  %v1315_v5 = vld [vmem:[#allocation6 + $0x80] sm:$0xff] }
 0x258   : > { %v2235_v23 = vmul.f32 %v3712_v32, %v2135_v38  ;;  %v4912_v16 = vsel %vm4896_vm7, %v1814_v27, %v1810_v48  ;;  %v1888_v53 = vand.u32 2147483648, %v4863_v42  ;;  %v4917_v47 = vand.u32 2147483647, %v4906_v19  ;;  %1297 = vst.msk [vmem:[#allocation6 + $0x90] sm:$0xff] %vm457_vm0, %v1277_v40  ;;  %v1316_v31 = vld [vmem:[#allocation6 + $0x88] sm:$0xff] }
 0x259   : > { %v2060_v30 = vmul.f32 %v2040_v51, %v4875_v49  ;;  %v1976_v2 = vmul.f32 1.0614054, %v4912_v16  ;;  %v1879_v55 = vsub.f32 1.0, %v1878_v56  ;;  %1298 = vst.msk [vmem:[#allocation6 + $0x98] sm:$0xff] %vm457_vm0, %v1278_v26  ;;  %v3716_v54 = vpop.eup %3715  ;;  %vm1883_vm9 = vweird.f32 %v3714_v62 }
 0x25a   : > { %v2255_v10 = vsub.f32 1.0, %v2235_v23  ;;  %v1637_v21 = vmul.f32 0.3275911, %v4917_v47  ;;  %v4925_v57 = vadd.f32 %v4791_v29, %v1538_v37  ;;  %v1499_v18 = vadd.f32 %v4827_v20, %v1315_v5 }
 0x25b   : > { %v2080_v4 = vadd.f32 -0.28449672, %v2060_v30  ;;  %v1996_v32 = vadd.f32 -1.4531521, %v1976_v2  ;;  %v1880_v41 = vmul.f32 %v3714_v62, %v1879_v55  ;;  %v2176_v24 = vmul.f32 %v2156_v33, %v4825_v11  ;;  %v1480_v59 = vpop.f32.mrf.mxu2 }
 0x25c   : > { %v2295_v63 = vsub.f32 0.0, %v2255_v10  ;;  %vm1882_vm10 = vweird.f32 %v4863_v42  ;;  %v2161_v28 = vsub.f32 0.0, %v4843_v8  ;;  %v4931_v35 = vadd.f32 1.0, %v1637_v21  ;;  %1519 = vst.msk [vmem:[#allocation6 + $0x80] sm:$0xff] %vm457_vm0, %v1499_v18 }
 0x25d   : > { %v2100_v17 = vmul.f32 %v2080_v4, %v4875_v49  ;;  %v2016_v20 = vmul.f32 %v1996_v32, %v4912_v16  ;;  %v1881_v15 = vadd.f32 %v3714_v62, %v1880_v41  ;;  %vm1884_vm11 = vmor %vm1882_vm10, %vm1883_vm9  ;;  %v1889_v11 = vor.u32 1.1754944e-38, %v1888_v53 }
 0x25e   : > { %v2315_v13 = vsel %vm2275_vm15, %v2255_v10, %v2295_v63  ;;  %3717 = vrcp.f32 %v4931_v35  ;;  %v4941_v42 = vmul.f32 0.70710677, %v4925_v57  ;;  %vm1887_vm12 = vcmp.eq.f32.partialorder %v1886_v58, 8.507059e+37 }
 0x25f   : > { %v2335_v60 = vadd.f32 1.0, %v2315_v13  ;;  %v2120_v34 = vadd.f32 0.2548296, %v2100_v17  ;;  %v2036_v0 = vadd.f32 1.4214138, %v2016_v20  ;;  %v1885_v14 = vsel %vm1884_vm11, %v3714_v62, %v1881_v15  ;;  %v1317_v9 = vld [vmem:[#allocation6 + $0x90] sm:$0xff] }
 0x260   : > { %v2205_v25 = vmul.f32 1.442695, %v2176_v24  ;;  %v4944_v39 = vsel %vm1887_vm12, %v1889_v11, %v1885_v14  ;;  %v1318_v27 = vld [vmem:[#allocation6 + $0x98] sm:$0xff]  ;;  %v1580_v6 = vmul.f32 0.5, %v4765_v46  ;;  %v2181_v62 = vmul.f32 %v2161_v28, %v4843_v8 }
 0x261   : > { %v2355_v45 = vmul.f32 %v2335_v60, %v4888_v52  ;;  %v2140_v38 = vmul.f32 %v2120_v34, %v4875_v49  ;;  %v2056_v1 = vmul.f32 %v2036_v0, %v4912_v16  ;;  %v1981_v50 = vmul.f32 1.0614054, %v4944_v39 }
 0x262   : > { %v4953_v52 = vand.u32 2147483647, %v4941_v42  ;;  %v1500_v58 = vadd.f32 %v4865_v44, %v1316_v31  ;;  %v1501_v51 = vadd.f32 %v1477_v7, %v1317_v9  ;;  %vm2280_vm13 = vcmp.ge.f32.partialorder %v4776_v61, 0.0 }
 0x263   : > { %2405 = vst.msk [vmem:[#allocation4 + $0x61] sm:$0xff] %vm457_vm0, %v2355_v45  ;;  %v2240_v40 = vmul.f32 %v3716_v54, %v2140_v38  ;;  %v2076_v26 = vadd.f32 -0.28449672, %v2056_v1  ;;  %v2001_v49 = vadd.f32 -1.4531521, %v1981_v50  ;;  %v1539_v23 = vld [vmem:[#allocation6 + $0x80] sm:$0xff]  ;;  %3719 = vpow2.f32 %v2205_v25 }
 0x264   : > { %v3718_v48 = vpop.eup %3717  ;;  %v1642_v56 = vmul.f32 0.3275911, %v4953_v52  ;;  %1520 = vst.msk [vmem:[#allocation6 + $0x88] sm:$0xff] %vm457_vm0, %v1500_v58  ;;  %v1502_v46 = vadd.f32 %v1480_v59, %v1318_v27  ;;  %v4964_v7 = vmul.f32 0.5, %v4794_v43  ;;  %v2215_v53 = vmul.f32 1.442695, %v2181_v62 }
 0x265   : > { %v2260_v8 = vsub.f32 1.0, %v2240_v40  ;;  %v2096_v37 = vmul.f32 %v2076_v26, %v4912_v16  ;;  %v2021_v33 = vmul.f32 %v2001_v49, %v4944_v39  ;;  %v1818_v44 = vmul.f32 %v3718_v48, %v4931_v35  ;;  %1521 = vst.msk [vmem:[#allocation6 + $0x90] sm:$0xff] %vm457_vm0, %v1501_v51 }
 0x266   : > { %v4966_v5 = vadd.f32 1.0, %v1642_v56  ;;  %v4969_v10 = vadd.f32 %v4791_v29, %v1539_v23  ;;  %1522 = vst.msk [vmem:[#allocation6 + $0x98] sm:$0xff] %vm457_vm0, %v1502_v46  ;;  %vm1823_vm14 = vweird.f32 %v3718_v48  ;;  %v1826_v21 = vand.u32 2147483647, %v4931_v35 }
 0x267   : > { %v2300_v30 = vsub.f32 0.0, %v2260_v8  ;;  %v2116_v2 = vadd.f32 0.2548296, %v2096_v37  ;;  %v2041_v55 = vadd.f32 1.4214138, %v2021_v33  ;;  %v1819_v54 = vsub.f32 1.0, %v1818_v44 }
 0x268   : > { %v1828_v18 = vand.u32 2147483648, %v4931_v35  ;;  %3721 = vrcp.f32 %v4966_v5  ;;  %vm1822_vm15 = vweird.f32 %v4931_v35  ;;  %v2157_v28 = vsub.f32 0.0, %v4917_v47 }
 0x269   : > { %v2320_v43 = vsel %vm2280_vm13, %v2260_v8, %v2300_v30  ;;  %v2136_v63 = vmul.f32 %v2116_v2, %v4912_v16  ;;  %v2061_v4 = vmul.f32 %v2041_v55, %v4944_v39  ;;  %v1820_v32 = vmul.f32 %v3718_v48, %v1819_v54  ;;  %v3720_v41 = vpop.eup %3719  ;;  %vm1824_vm6 = vmor %vm1822_vm15, %vm1823_vm14 }
 0x26a   : > { %v2340_v24 = vadd.f32 1.0, %v2320_v43  ;;  %3723 = vpow2.f32 %v2215_v53  ;;  %v4982_v15 = vmul.f32 0.70710677, %v4969_v10  ;;  %vm1827_vm7 = vcmp.eq.f32.partialorder %v1826_v21, 8.507059e+37 }
 0x26b   : > { %v2236_v13 = vmul.f32 %v3720_v41, %v2136_v63  ;;  %v2081_v17 = vadd.f32 -0.28449672, %v2061_v4  ;;  %v1821_v20 = vadd.f32 %v3718_v48, %v1820_v32  ;;  %v1540_v61 = vld [vmem:[#allocation6 + $0x88] sm:$0xff]  ;;  %v1829_v16 = vor.u32 1.1754944e-38, %v1828_v18 }
 0x26c   : > { %v2360_v60 = vmul.f32 %v2340_v24, %v1580_v6  ;;  %v4986_v11 = vadd.f32 %v4791_v29, %v1540_v61  ;;  %v4990_v14 = vand.u32 2147483647, %v4982_v15  ;;  %vm2276_vm8 = vcmp.ge.f32.partialorder %v4809_v3, 0.0 }
 0x26d   : > { %v2256_v34 = vsub.f32 1.0, %v2236_v13  ;;  %v2101_v35 = vmul.f32 %v2081_v17, %v4944_v39  ;;  %v1825_v0 = vsel %vm1824_vm6, %v3718_v48, %v1821_v20  ;;  %v2162_v25 = vsub.f32 0.0, %v4953_v52  ;;  %v1541_v13 = vld [vmem:[#allocation6 + $0x90] sm:$0xff] }
 0x26e   : > { %v3722_v31 = vpop.eup %3721  ;;  %2410 = vst.msk [vmem:[#allocation4 + $0x99] sm:$0xff] %vm457_vm0, %v2360_v60  ;;  %v4994_v45 = vsel %vm1827_vm7, %v1829_v16, %v1825_v0  ;;  %v4998_v9 = vmul.f32 0.70710677, %v4986_v11  ;;  %v2177_v6 = vmul.f32 %v2157_v28, %v4917_v47  ;;  %v1901_v62 = vand.u32 2147483647, %v4966_v5  ;;  %v1542_v60 = vld [vmem:[#allocation6 + $0x98] sm:$0xff] }
 0x26f   : > { %v2296_v38 = vsub.f32 0.0, %v2256_v34  ;;  %v2121_v1 = vadd.f32 0.2548296, %v2101_v35  ;;  %v1977_v50 = vmul.f32 1.0614054, %v4994_v45  ;;  %v1893_v27 = vmul.f32 %v3722_v31, %v4966_v5 }
 0x270   : > { %v3724_v59 = vpop.eup %3723  ;;  %v1643_v3 = vmul.f32 0.3275911, %v4990_v14  ;;  %v5006_v58 = vand.u32 2147483647, %v4998_v9  ;;  %v1903_v48 = vand.u32 2147483648, %v4966_v5  ;;  %vm1898_vm9 = vweird.f32 %v3722_v31 }
 0x271   : > { %v2316_v40 = vsel %vm2276_vm8, %v2256_v34, %v2296_v38  ;;  %v2141_v26 = vmul.f32 %v2121_v1, %v4944_v39  ;;  %v1997_v49 = vadd.f32 -1.4531521, %v1977_v50  ;;  %v1894_v23 = vsub.f32 1.0, %v1893_v27 }
 0x272   : > { %v2336_v51 = vadd.f32 1.0, %v2316_v40  ;;  %v5010_v56 = vadd.f32 1.0, %v1643_v3  ;;  %v1644_v46 = vmul.f32 0.3275911, %v5006_v58  ;;  %v2182_v44 = vmul.f32 %v2162_v25, %v4953_v52 }
 0x273   : > { %v2241_v47 = vmul.f32 %v3724_v59, %v2141_v26  ;;  %v2017_v8 = vmul.f32 %v1997_v49, %v4994_v45  ;;  %v1895_v37 = vmul.f32 %v3722_v31, %v1894_v23  ;;  %vm1897_vm10 = vweird.f32 %v4966_v5 }
 0x274   : > { %v2356_v33 = vmul.f32 %v2336_v51, %v4964_v7  ;;  %3725 = vrcp.f32 %v5010_v56  ;;  %v2207_v2 = vmul.f32 1.442695, %v2177_v6  ;;  %vm1899_vm11 = vmor %vm1897_vm10, %vm1898_vm9  ;;  %v1904_v55 = vor.u32 1.1754944e-38, %v1903_v48 }
 0x275   : > { %v2261_v39 = vsub.f32 1.0, %v2241_v47  ;;  %v2037_v53 = vadd.f32 1.4214138, %v2017_v8  ;;  %v1896_v30 = vadd.f32 %v3722_v31, %v1895_v37  ;;  %v5019_v54 = vadd.f32 1.0, %v1644_v46 }
 0x276   : > { %2406 = vst.msk [vmem:[#allocation4 + $0x69] sm:$0xff] %vm457_vm0, %v2356_v33  ;;  %vm1902_vm12 = vcmp.eq.f32.partialorder %v1901_v62, 8.507059e+37  ;;  %vm2281_vm13 = vcmp.ge.f32.partialorder %v4834_v36, 0.0  ;;  %v2217_v43 = vmul.f32 1.442695, %v2182_v44  ;;  %v1581_v41 = vmul.f32 0.5, %v4816_v22 }
 0x277   : > { %v2301_v21 = vsub.f32 0.0, %v2261_v39  ;;  %v2057_v18 = vmul.f32 %v2037_v53, %v4994_v45  ;;  %v1900_v7 = vsel %vm1899_vm11, %v3722_v31, %v1896_v30  ;;  %3727 = vrcp.f32 %v5019_v54 }
 0x278   : > { %v5023_v52 = vsel %vm1902_vm12, %v1904_v55, %v1900_v7  ;;  %3729 = vpow2.f32 %v2207_v2  ;;  %v2163_v28 = vsub.f32 0.0, %v4990_v14  ;;  %v5030_v17 = vmul.f32 0.5, %v4891_v12 }
 0x279   : > { %v2321_v63 = vsel %vm2281_vm13, %v2261_v39, %v2301_v21  ;;  %v2077_v4 = vadd.f32 -0.28449672, %v2057_v18  ;;  %v1982_v5 = vmul.f32 1.0614054, %v5023_v52  ;;  %3731 = vpow2.f32 %v2217_v43 }
 0x27a   : > { %v3726_v32 = vpop.eup %3725  ;;  %v2341_v24 = vadd.f32 1.0, %v2321_v63  ;;  %v1916_v34 = vand.u32 2147483647, %v5010_v56  ;;  %v1918_v22 = vand.u32 2147483648, %v5010_v56  ;;  %v5038_v25 = vadd.f32 %v4791_v29, %v1541_v13 }
 0x27b   : > { %v2097_v36 = vmul.f32 %v2077_v4, %v4994_v45  ;;  %v2002_v20 = vadd.f32 -1.4531521, %v1982_v5  ;;  %v1908_v61 = vmul.f32 %v3726_v32, %v5010_v56  ;;  %vm2277_vm14 = vcmp.ge.f32.partialorder %v4906_v19, 0.0 }
 0x27c   : > { %v2361_v16 = vmul.f32 %v2341_v24, %v1581_v41  ;;  %vm1912_vm15 = vweird.f32 %v5010_v56  ;;  %v2183_v12 = vmul.f32 %v2163_v28, %v4990_v14  ;;  %v2164_v38 = vsub.f32 0.0, %v5006_v58 }
 0x27d   : > { %v2117_v35 = vadd.f32 0.2548296, %v2097_v36  ;;  %v2022_v0 = vmul.f32 %v2002_v20, %v5023_v52  ;;  %v1909_v31 = vsub.f32 1.0, %v1908_v61  ;;  %v5046_v1 = vadd.f32 %v4791_v29, %v1542_v60  ;;  %v3728_v50 = vpop.eup %3727 }
 0x27e   : > { %2411 = vst.msk [vmem:[#allocation4 + $0xa9] sm:$0xff] %vm457_vm0, %v2361_v16  ;;  %vm1913_vm6 = vweird.f32 %v3726_v32  ;;  %v3730_v62 = vpop.eup %3729  ;;  %vm5049_vm7 = vcmp.eq.f32.partialorder %v1916_v34, 8.507059e+37  ;;  %v1919_v40 = vor.u32 1.1754944e-38, %v1918_v22  ;;  %v1923_v26 = vmul.f32 %v3728_v50, %v5019_v54 }
 0x27f   : > { %v2137_v27 = vmul.f32 %v2117_v35, %v4994_v45  ;;  %v2042_v59 = vadd.f32 1.4214138, %v2022_v0  ;;  %v1910_v6 = vmul.f32 %v3726_v32, %v1909_v31  ;;  %v5055_v14 = vmul.f32 0.70710677, %v5038_v25  ;;  %v3732_v51 = vpop.eup %3731  ;;  %vm1914_vm8 = vmor %vm1912_vm15, %vm1913_vm6 }
 0x280   : > { %v5059_v45 = vmul.f32 0.70710677, %v5046_v1  ;;  %v1924_v48 = vsub.f32 1.0, %v1923_v26  ;;  %v1931_v46 = vand.u32 2147483647, %v5019_v54  ;;  %v1933_v47 = vand.u32 2147483648, %v5019_v54 }
 0x281   : > { %v2237_v49 = vmul.f32 %v3730_v62, %v2137_v27  ;;  %v2062_v29 = vmul.f32 %v2042_v59, %v5023_v52  ;;  %v1911_v23 = vadd.f32 %v3726_v32, %v1910_v6  ;;  %v5066_v8 = vand.u32 2147483647, %v5055_v14 }
 0x282   : > { %v5069_v39 = vand.u32 2147483647, %v5059_v45  ;;  %v1925_v30 = vmul.f32 %v3728_v50, %v1924_v48  ;;  %vm1928_vm9 = vweird.f32 %v3728_v50  ;;  %vm1927_vm10 = vweird.f32 %v5019_v54 }
 0x283   : > { %v2257_v37 = vsub.f32 1.0, %v2237_v49  ;;  %v2082_v33 = vadd.f32 -0.28449672, %v2062_v29  ;;  %v1915_v44 = vsel %vm1914_vm8, %v3726_v32, %v1911_v23  ;;  %v1645_v56 = vmul.f32 0.3275911, %v5066_v8  ;;  %vm1929_vm11 = vmor %vm1927_vm10, %vm1928_vm9 }
 0x284   : > { %v1920_v53 = vsel %vm5049_vm7, %v1919_v40, %v1915_v44  ;;  %v1646_v18 = vmul.f32 0.3275911, %v5069_v39  ;;  %v1926_v7 = vadd.f32 %v3728_v50, %v1925_v30  ;;  %v1934_v43 = vor.u32 1.1754944e-38, %v1933_v47 }
 0x285   : > { %v2297_v2 = vsub.f32 0.0, %v2257_v37  ;;  %v2102_v55 = vmul.f32 %v2082_v33, %v5023_v52  ;;  %v1983_v21 = vmul.f32 1.0614054, %v1920_v53  ;;  %v5077_v63 = vadd.f32 1.0, %v1645_v56 }
 0x286   : > { %v5081_v41 = vadd.f32 1.0, %v1646_v18  ;;  %v1930_v28 = vsel %vm1929_vm11, %v3728_v50, %v1926_v7  ;;  %vm1932_vm12 = vcmp.eq.f32.partialorder %v1931_v46, 8.507059e+37  ;;  %v2184_v61 = vmul.f32 %v2164_v38, %v5006_v58 }
 0x287   : > { %v2317_v4 = vsel %vm2277_vm14, %v2257_v37, %v2297_v2  ;;  %v2122_v5 = vadd.f32 0.2548296, %v2102_v55  ;;  %v2003_v32 = vadd.f32 -1.4531521, %v1983_v21  ;;  %3733 = vrcp.f32 %v5077_v63 }
 0x288   : > { %v2337_v24 = vadd.f32 1.0, %v2317_v4  ;;  %v5085_v54 = vsel %vm1932_vm12, %v1934_v43, %v1930_v28  ;;  %3735 = vrcp.f32 %v5081_v41  ;;  %v2219_v34 = vmul.f32 1.442695, %v2183_v12 }
 0x289   : > { %v2142_v13 = vmul.f32 %v2122_v5, %v5023_v52  ;;  %v2023_v36 = vmul.f32 %v2003_v32, %v1920_v53  ;;  %v1984_v19 = vmul.f32 1.0614054, %v5085_v54  ;;  %v2221_v50 = vmul.f32 1.442695, %v2184_v61 }
 0x28a   : > { %v2357_v20 = vmul.f32 %v2337_v24, %v5030_v17  ;;  %v1582_v58 = vmul.f32 0.5, %v4925_v57  ;;  %vm2282_vm13 = vcmp.ge.f32.partialorder %v4941_v42, 0.0  ;;  %3737 = vpow2.f32 %v2219_v34 }
 0x28b   : > { %v2242_v60 = vmul.f32 %v3732_v51, %v2142_v13  ;;  %v2043_v16 = vadd.f32 1.4214138, %v2023_v36  ;;  %v2004_v22 = vadd.f32 -1.4531521, %v1984_v19  ;;  %v1948_v40 = vand.u32 2147483648, %v5077_v63 }
 0x28c   : > { %2407 = vst.msk [vmem:[#allocation4 + $0x79] sm:$0xff] %vm457_vm0, %v2357_v20  ;;  %3739 = vpow2.f32 %v2221_v50  ;;  %v1946_v57 = vand.u32 2147483647, %v5077_v63  ;;  %vm1942_vm15 = vweird.f32 %v5077_v63  ;;  %v1963_v44 = vand.u32 2147483648, %v5081_v41 }
 0x28d   : > { %v2262_v35 = vsub.f32 1.0, %v2242_v60  ;;  %v2063_v0 = vmul.f32 %v2043_v16, %v1920_v53  ;;  %v3734_v52 = vpop.eup %3733  ;;  %v2024_v31 = vmul.f32 %v2004_v22, %v5085_v54  ;;  %v1949_v33 = vor.u32 1.1754944e-38, %v1948_v40 }
 0x28e   : > { %v1938_v59 = vmul.f32 %v3734_v52, %v5077_v63  ;;  %v3736_v6 = vpop.eup %3735  ;;  %vm1943_vm14 = vweird.f32 %v3734_v52  ;;  %v1961_v55 = vand.u32 2147483647, %v5081_v41  ;;  %vm1947_vm8 = vcmp.eq.f32.partialorder %v1946_v57, 8.507059e+37 }
 0x28f   : > { %v2302_v27 = vsub.f32 0.0, %v2262_v35  ;;  %v2083_v17 = vadd.f32 -0.28449672, %v2063_v0  ;;  %v2044_v38 = vadd.f32 1.4214138, %v2024_v31  ;;  %v1953_v29 = vmul.f32 %v3736_v6, %v5081_v41  ;;  %vm1944_vm6 = vmor %vm1942_vm15, %vm1943_vm14 }
 0x290   : > { %v1939_v3 = vsub.f32 1.0, %v1938_v59  ;;  %v3738_v30 = vpop.eup %3737  ;;  %vm1958_vm7 = vweird.f32 %v3736_v6  ;;  %v2165_v7 = vsub.f32 0.0, %v5066_v8  ;;  %vm1957_vm9 = vweird.f32 %v5081_v41 }
 0x291   : > { %v2322_v62 = vsel %vm2282_vm13, %v2262_v35, %v2302_v27  ;;  %v2103_v12 = vmul.f32 %v2083_v17, %v1920_v53  ;;  %v2064_v49 = vmul.f32 %v2044_v38, %v5085_v54  ;;  %v1954_v46 = vsub.f32 1.0, %v1953_v29  ;;  %vm1959_vm10 = vmor %vm1957_vm9, %vm1958_vm7 }
 0x292   : > { %v2342_v26 = vadd.f32 1.0, %v2322_v62  ;;  %v1940_v51 = vmul.f32 %v3734_v52, %v1939_v3  ;;  %v1964_v24 = vor.u32 1.1754944e-38, %v1963_v44  ;;  %vm1962_vm11 = vcmp.eq.f32.partialorder %v1961_v55, 8.507059e+37 }
 0x293   : > { %v2123_v23 = vadd.f32 0.2548296, %v2103_v12  ;;  %v2084_v48 = vadd.f32 -0.28449672, %v2064_v49  ;;  %v1955_v2 = vmul.f32 %v3736_v6, %v1954_v46  ;;  %v2166_v61 = vsub.f32 0.0, %v5069_v39 }
 0x294   : > { %v2362_v42 = vmul.f32 %v2342_v26, %v1582_v58  ;;  %v1941_v37 = vadd.f32 %v3734_v52, %v1940_v51  ;;  %vm2283_vm12 = vcmp.ge.f32.partialorder %v4982_v15, 0.0  ;;  %v2185_v16 = vmul.f32 %v2165_v7, %v5066_v8 }
 0x295   : > { %v2143_v47 = vmul.f32 %v2123_v23, %v1920_v53  ;;  %v2104_v56 = vmul.f32 %v2084_v48, %v5085_v54  ;;  %v3740_v53 = vpop.eup %3739  ;;  %v1956_v4 = vadd.f32 %v3736_v6, %v1955_v2  ;;  %v1583_v35 = vmul.f32 0.5, %v4969_v10 }
 0x296   : > { %2412 = vst.msk [vmem:[#allocation4 + $0xb1] sm:$0xff] %vm457_vm0, %v2362_v42  ;;  %v1945_v18 = vsel %vm1944_vm6, %v3734_v52, %v1941_v37  ;;  %v2186_v50 = vmul.f32 %v2166_v61, %v5069_v39  ;;  %v2223_v59 = vmul.f32 1.442695, %v2185_v16  ;;  %vm2284_vm13 = vcmp.ge.f32.partialorder %v4998_v9, 0.0 }
 0x297   : > { %v2243_v21 = vmul.f32 %v3738_v30, %v2143_v47  ;;  %v2124_v43 = vadd.f32 0.2548296, %v2104_v56  ;;  %v1950_v63 = vsel %vm1947_vm8, %v1949_v33, %v1945_v18  ;;  %v1960_v13 = vsel %vm1959_vm10, %v3736_v6, %v1956_v4 }
 0x298   : > { %v1985_v32 = vmul.f32 1.0614054, %v1950_v63  ;;  %v1965_v19 = vsel %vm1962_vm11, %v1964_v24, %v1960_v13  ;;  %v1584_v6 = vmul.f32 0.5, %v4986_v11  ;;  %v2225_v12 = vmul.f32 1.442695, %v2186_v50 }
 0x299   : > { %v2263_v5 = vsub.f32 1.0, %v2243_v21  ;;  %v2144_v28 = vmul.f32 %v2124_v43, %v5085_v54  ;;  %v1986_v34 = vmul.f32 1.0614054, %v1965_v19  ;;  %3741 = vpow2.f32 %v2223_v59 }
 0x29a   : > { %v2005_v20 = vadd.f32 -1.4531521, %v1985_v32  ;;  %3743 = vpow2.f32 %v2225_v12  ;;  %vm2285_vm14 = vcmp.ge.f32.partialorder %v5055_v14, 0.0  ;;  %v1585_v44 = vmul.f32 0.5, %v5038_v25 }
 0x29b   : > { %v2303_v36 = vsub.f32 0.0, %v2263_v5  ;;  %v2244_v60 = vmul.f32 %v3740_v53, %v2144_v28  ;;  %v2006_v54 = vadd.f32 -1.4531521, %v1986_v34  ;;  %vm2286_vm15 = vcmp.ge.f32.partialorder %v5059_v45, 0.0 }
 0x29c   : > { %v2025_v22 = vmul.f32 %v2005_v20, %v1950_v63  ;;  %v1586_v21 = vmul.f32 0.5, %v5046_v1 }
 0x29d   : > { %v2323_v41 = vsel %vm2283_vm12, %v2263_v5, %v2303_v36  ;;  %v2264_v52 = vsub.f32 1.0, %v2244_v60  ;;  %v2026_v58 = vmul.f32 %v2006_v54, %v1965_v19 }
 0x29e   : > { %v2343_v0 = vadd.f32 1.0, %v2323_v41  ;;  %v2045_v31 = vadd.f32 1.4214138, %v2025_v22 }
 0x29f   : > { %v2304_v17 = vsub.f32 0.0, %v2264_v52  ;;  %v2046_v38 = vadd.f32 1.4214138, %v2026_v58  ;;  %v3742_v23 = vpop.eup %3741 }
 0x2a0   : > { %v2363_v27 = vmul.f32 %v2343_v0, %v1583_v35  ;;  %v2065_v15 = vmul.f32 %v2045_v31, %v1950_v63  ;;  %v3744_v48 = vpop.eup %3743 }
 0x2a1   : > { %v2324_v8 = vsel %vm2284_vm13, %v2264_v52, %v2304_v17  ;;  %v2066_v3 = vmul.f32 %v2046_v38, %v1965_v19 }
 0x2a2   : > { %2413 = vst.msk [vmem:[#allocation4 + $0xc1] sm:$0xff] %vm457_vm0, %v2363_v27  ;;  %v2344_v10 = vadd.f32 1.0, %v2324_v8  ;;  %v2085_v62 = vadd.f32 -0.28449672, %v2065_v15 }
 0x2a3   : > { %v2086_v26 = vadd.f32 -0.28449672, %v2066_v3 }
 0x2a4   : > { %v2364_v40 = vmul.f32 %v2344_v10, %v1584_v6  ;;  %v2105_v39 = vmul.f32 %v2085_v62, %v1950_v63 }
 0x2a5   : > { %v2106_v9 = vmul.f32 %v2086_v26, %v1965_v19 }
 0x2a6   : > { %2414 = vst.msk [vmem:[#allocation4 + $0xc9] sm:$0xff] %vm457_vm0, %v2364_v40  ;;  %v2125_v49 = vadd.f32 0.2548296, %v2105_v39 }
 0x2a7   : > { %v2126_v51 = vadd.f32 0.2548296, %v2106_v9 }
 0x2a8   : > { %v2145_v29 = vmul.f32 %v2125_v49, %v1950_v63 }
 0x2a9   : > { %v2146_v42 = vmul.f32 %v2126_v51, %v1965_v19 }
 0x2aa   : > { %v2245_v57 = vmul.f32 %v3742_v23, %v2145_v29 }
 0x2ab   : > { %v2246_v46 = vmul.f32 %v3744_v48, %v2146_v42 }
 0x2ac   : > { %v2265_v11 = vsub.f32 1.0, %v2245_v57 }
 0x2ad   : > { %v2266_v37 = vsub.f32 1.0, %v2246_v46 }
 0x2ae   : > { %v2305_v47 = vsub.f32 0.0, %v2265_v11 }
 0x2af   : > { %v2306_v56 = vsub.f32 0.0, %v2266_v37 }
 0x2b0   : > { %v2325_v33 = vsel %vm2285_vm14, %v2265_v11, %v2305_v47 }
 0x2b1   : > { %v2345_v30 = vadd.f32 1.0, %v2325_v33  ;;  %v2326_v55 = vsel %vm2286_vm15, %v2266_v37, %v2306_v56 }
 0x2b2   : > { %v2346_v18 = vadd.f32 1.0, %v2326_v55  ;;  %2420 = sbr.rel (%p3554_p13) target bundleno = 699 (0x2bb), region = 60 }
 0x2b3   : > { %v2365_v2 = vmul.f32 %v2345_v30, %v1585_v44 }
 0x2b4   : > { %v2366_v7 = vmul.f32 %v2346_v18, %v1586_v21 }
 0x2b5   : > { %2415 = vst.msk [vmem:[#allocation4 + $0xd9] sm:$0xff] %vm457_vm0, %v2365_v2 }
 0x2b6   : > { %2416 = vst.msk [vmem:[#allocation4 + $0xe1] sm:$0xff] %vm457_vm0, %v2366_v7 }
 0x2b7   : > { %v3790_v14 = vmov 0.0  }
 0x2b8   : > { %2421 = vst.msk [vmem:[#allocation4] sm:$0xff] %vm457_vm0, %v3790_v14 }
 0x2b9   : > { %2422 = vst.msk [vmem:[#allocation4 + $0x8] sm:$0xff] %vm457_vm0, %v3790_v14 }
 0x2ba   : > { %2423 = vst.msk [vmem:[#allocation4 + $0x10] sm:$0x3] %vm460_vm1, %v3790_v14 }
 0x2bb PF: > { %p3555_p0 = scmp.ne.s32.totalorder %s3769_s24, 1 }
 0x2bd   : > { %2427 = sbr.rel (%p3555_p0) target bundleno = 710 (0x2c6), region = 64 }
 0x2c2   : > { %v3791_v25 = vmov 0.0  }
 0x2c3   : > { %2429 = vst.msk [vmem:[#allocation4 + $0xd8] sm:$0xff] %vm457_vm0, %v3791_v25 }
 0x2c4   : > { %2430 = vst.msk [vmem:[#allocation4 + $0xe0] sm:$0xff] %vm457_vm0, %v3791_v25 }
 0x2c5   : > { %2431 = vst.msk [vmem:[#allocation4 + $0xe8] sm:$0x3] %vm460_vm1, %v3791_v25 }
 0x2c6 PF: > { %v2477_v1 = vld [vmem:[#allocation4 + $0x39] sm:$0xff]  ;;  %v2478_v45 = vld [vmem:[#allocation4 + $0x49] sm:$0xff]  ;;  %v2479_v53 = vld [vmem:[#allocation4 + $0x51] sm:$0xff] }
 0x2c7   : > { %2522 = vrot.lane.b32.xlu0 %v2477_v1, %s3788_s16  ;;  %2524 = vrot.lane.b32.xlu1 %v2478_v45, %s3788_s16  ;;  %v2597_v43 = vld [vmem:[#allocation4 + $0x3a] sm:$0xff]  ;;  %v2598_v63 = vld [vmem:[#allocation4 + $0x4a] sm:$0xff]  ;;  %v2599_v4 = vld [vmem:[#allocation4 + $0x52] sm:$0xff] }
 0x2c8   : > { %2526 = vrot.lane.b32.xlu2 %v2479_v53, %s3788_s16  ;;  %v2480_v5 = vld [vmem:[#allocation4 + $0x61] sm:$0xff]  ;;  %v2481_v24 = vld [vmem:[#allocation4 + $0x69] sm:$0xff]  ;;  %v2482_v13 = vld [vmem:[#allocation4 + $0x79] sm:$0xff] }
 0x2c9   : > { %v2600_v32 = vld [vmem:[#allocation4 + $0x62] sm:$0xff]  ;;  %v2601_v28 = vld [vmem:[#allocation4 + $0x6a] sm:$0xff]  ;;  %v2602_v36 = vld [vmem:[#allocation4 + $0x7a] sm:$0xff] }
 0x2ca   : > { %v2483_v20 = vld [vmem:[#allocation4 + $0x81] sm:$0xff]  ;;  %v2484_v61 = vld [vmem:[#allocation4 + $0x91] sm:$0xff]  ;;  %v2485_v16 = vld [vmem:[#allocation4 + $0x99] sm:$0xff] }
 0x2cb   : > { %v2603_v19 = vld [vmem:[#allocation4 + $0x82] sm:$0xff]  ;;  %v2604_v60 = vld [vmem:[#allocation4 + $0x92] sm:$0xff]  ;;  %v2605_v34 = vld [vmem:[#allocation4 + $0x9a] sm:$0xff] }
 0x2cc   : > { %v2486_v41 = vld [vmem:[#allocation4 + $0xa9] sm:$0xff]  ;;  %v2487_v35 = vld [vmem:[#allocation4 + $0xb1] sm:$0xff]  ;;  %v2474_v52 = vld [vmem:[#allocation4 + $0x19] sm:$0xff] }
 0x2cd   : > { %v2606_v22 = vld [vmem:[#allocation4 + $0xaa] sm:$0xff]  ;;  %v2607_v0 = vld [vmem:[#allocation4 + $0xb2] sm:$0xff]  ;;  %v2594_v54 = vld [vmem:[#allocation4 + $0x1a] sm:$0xff] }
 0x2ce   : > { %v2475_v31 = vld [vmem:[#allocation4 + $0x21] sm:$0xff]  ;;  %v2476_v27 = vld [vmem:[#allocation4 + $0x31] sm:$0xff]  ;;  %v2473_v15 = vld [vmem:[#allocation4 + $0x9] sm:$0xff] }
 0x2cf   : > { %2642 = vrot.lane.b32.xlu0 %v2597_v43, %s3789_s19  ;;  %2644 = vrot.lane.b32.xlu1 %v2598_v63, %s3789_s19  ;;  %v2595_v50 = vld [vmem:[#allocation4 + $0x22] sm:$0xff]  ;;  %v2596_v17 = vld [vmem:[#allocation4 + $0x32] sm:$0xff]  ;;  %v2593_v8 = vld [vmem:[#allocation4 + $0xa] sm:$0xff] }
 0x2d0   : > { %2646 = vrot.lane.b32.xlu2 %v2599_v4, %s3789_s19  ;;  %v2472_v59 = vld [vmem:[#allocation4 + $0x1] sm:$0xff]  ;;  %v2437_v38 = vld [vmem:[#allocation4 + $0x38] sm:$0xff]  ;;  %v2439_v6 = vld [vmem:[#allocation4 + $0x50] sm:$0xff] }
 0x2d1   : > { %v2592_v58 = vld [vmem:[#allocation4 + $0x2] sm:$0xff]  ;;  %2457 = vst.msk [vmem:[#allocation5 + $0x28] sm:$0xff] %vm457_vm0, %v2437_v38  ;;  %v3574_v39 = vld [vmem:[%s5493_s5 + $0x18] sm:$0xf]  ;;  %v2444_v42 = vld [vmem:[#allocation4 + $0x90] sm:$0xff] }
 0x2d2   : > { %v2438_v10 = vld [vmem:[#allocation4 + $0x48] sm:$0xff]  ;;  %2459 = vst.msk [vmem:[#allocation5 + $0x38] sm:$0xff] %vm457_vm0, %v2439_v6  ;;  %v2728_v3 = vld [vmem:[%s5493_s5] sm:$0xff]  ;;  %v2442_v9 = vld [vmem:[#allocation4 + $0x78] sm:$0xff] }
 0x2d3   : > { %2458 = vst.msk [vmem:[#allocation5 + $0x30] sm:$0xff] %vm457_vm0, %v2438_v10  ;;  %v2729_v62 = vld [vmem:[%s5493_s5 + $0x8] sm:$0xf]  ;;  %v2440_v40 = vld [vmem:[#allocation4 + $0x60] sm:$0xff]  ;;  %v2445_v47 = vld [vmem:[#allocation4 + $0x98] sm:$0xff] }
 0x2d4   : > { %3617 = vmatpush.msk.msra.mxu3 %vm974_vm3, %v2729_v62  ;;  %3556 = vmatpush.msk.msra.mxu2 %vm974_vm3, %v2729_v62  ;;  %2460 = vst.msk [vmem:[#allocation5 + $0x40] sm:$0xff] %vm457_vm0, %v2440_v40  ;;  %v2441_v26 = vld [vmem:[#allocation4 + $0x68] sm:$0xff]  ;;  %v2443_v57 = vld [vmem:[#allocation4 + $0x80] sm:$0xff]  ;;  %v2447_v2 = vld [vmem:[#allocation4 + $0xb0] sm:$0xff] }
 0x2d5   : > { %2461 = vst.msk [vmem:[#allocation5 + $0x48] sm:$0xff] %vm457_vm0, %v2441_v26  ;;  %v2446_v56 = vld [vmem:[#allocation4 + $0xa8] sm:$0xff]  ;;  %v3573_v14 = vld [vmem:[%s5493_s5 + $0x10] sm:$0xff]  ;;  %v2434_v1 = vld [vmem:[#allocation4 + $0x18] sm:$0xff] }
 0x2d6   : > { %3618 = vmatpush.msra.mxu3 %v2728_v3  ;;  %2796 = vmatpush.msra.mxu2 %v2728_v3  ;;  %2462 = vst.msk [vmem:[#allocation5 + $0x50] sm:$0xff] %vm457_vm0, %v2442_v9  ;;  %v2435_v63 = vld [vmem:[#allocation4 + $0x20] sm:$0xff]  ;;  %v2436_v4 = vld [vmem:[#allocation4 + $0x30] sm:$0xff] }
 0x2d7   : > { %2528 = vrot.lane.b32.xlu0 %v2480_v5, %s3788_s16  ;;  %2648 = vrot.lane.b32.xlu1 %v2600_v32, %s3789_s19  ;;  %2463 = vst.msk [vmem:[#allocation5 + $0x58] sm:$0xff] %vm457_vm0, %v2443_v57  ;;  %v2611_v3 = vld [vmem:[#allocation4 + $0xe2] sm:$0xff] }
 0x2d8   : > { %2530 = vrot.lane.b32.xlu2 %v2481_v24, %s3788_s16  ;;  %3575 = vmatpush.msk.msrb.mxu3 %vm974_vm3, %v3574_v39  ;;  %2464 = vst.msk [vmem:[#allocation5 + $0x60] sm:$0xff] %vm457_vm0, %v2444_v42 }
 0x2d9   : > { %2465 = vst.msk [vmem:[#allocation5 + $0x68] sm:$0xff] %vm457_vm0, %v2445_v47  ;;  %v2448_v47 = vld [vmem:[#allocation4 + $0xc0] sm:$0xff] }
 0x2da   : > { %2466 = vst.msk [vmem:[#allocation5 + $0x70] sm:$0xff] %vm457_vm0, %v2446_v56  ;;  %2964 = vmatpush.msrb.mxu3 %v3573_v14 }
 0x2db   : > { %2467 = vst.msk [vmem:[#allocation5 + $0x78] sm:$0xff] %vm457_vm0, %v2447_v2 }
 0x2dc   : > { %2454 = vst.msk [vmem:[#allocation5 + $0x10] sm:$0xff] %vm457_vm0, %v2434_v1 }
 0x2dd   : > { %2455 = vst.msk [vmem:[#allocation5 + $0x18] sm:$0xff] %vm457_vm0, %v2435_v63 }
 0x2de   : > { %2456 = vst.msk [vmem:[#allocation5 + $0x20] sm:$0xff] %vm457_vm0, %v2436_v4 }
 0x2df   : > { %2650 = vrot.lane.b32.xlu0 %v2601_v28, %s3789_s19  ;;  %2532 = vrot.lane.b32.xlu1 %v2482_v13, %s3788_s16  ;;  %v3593_v13 = vld [vmem:[%s5493_s5 + $0x28] sm:$0xf]  ;;  %2468 = vst.msk [vmem:[#allocation5 + $0x80] sm:$0xff] %vm457_vm0, %v2448_v47 }
 0x2e0   : > { %2652 = vrot.lane.b32.xlu2 %v2602_v36, %s3789_s19  ;;  %3594 = vmatpush.msk.msrb.mxu0 %vm974_vm3, %v3593_v13 }
 0x2e7   : > { %2534 = vrot.lane.b32.xlu0 %v2483_v20, %s3788_s16  ;;  %2654 = vrot.lane.b32.xlu1 %v2603_v19, %s3789_s19  ;;  %v2432_v20 = vld [vmem:[#allocation4] sm:$0xff] }
 0x2e8   : > { %2536 = vrot.lane.b32.xlu2 %v2484_v61, %s3788_s16  ;;  %v3592_v19 = vld [vmem:[%s5493_s5 + $0x20] sm:$0xff]  ;;  %2452 = vst.msk [vmem:[#allocation5] sm:$0xff] %vm457_vm0, %v2432_v20 }
 0x2e9   : > { %3148 = vmatpush.msrb.mxu0 %v3592_v19 }
 0x2ef   : > { %2656 = vrot.lane.b32.xlu0 %v2604_v60, %s3789_s19  ;;  %2538 = vrot.lane.b32.xlu1 %v2485_v16, %s3788_s16 }
 0x2f0   : > { %2658 = vrot.lane.b32.xlu2 %v2605_v34, %s3789_s19  ;;  %v2433_v34 = vld [vmem:[#allocation4 + $0x8] sm:$0xff] }
 0x2f1   : > { %2453 = vst.msk [vmem:[#allocation5 + $0x8] sm:$0xff] %vm457_vm0, %v2433_v34 }
 0x2f7   : > { %2540 = vrot.lane.b32.xlu0 %v2486_v41, %s3788_s16  ;;  %2660 = vrot.lane.b32.xlu1 %v2606_v22, %s3789_s19 }
 0x2f8   : > { %2542 = vrot.lane.b32.xlu2 %v2487_v35, %s3788_s16 }
 0x2ff   : > { %2662 = vrot.lane.b32.xlu0 %v2607_v0, %s3789_s19  ;;  %2516 = vrot.lane.b32.xlu1 %v2474_v52, %s3788_s16  ;;  %v2608_v0 = vld [vmem:[#allocation4 + $0xc2] sm:$0xff] }
 0x300   : > { %2636 = vrot.lane.b32.xlu2 %v2594_v54, %s3789_s19 }
 0x307   : > { %2518 = vrot.lane.b32.xlu0 %v2475_v31, %s3788_s16  ;;  %2638 = vrot.lane.b32.xlu1 %v2595_v50, %s3789_s19  ;;  %v2489_v50 = vld [vmem:[#allocation4 + $0xc9] sm:$0xff] }
 0x308   : > { %2520 = vrot.lane.b32.xlu2 %v2476_v27, %s3788_s16 }
 0x30f   : > { %2640 = vrot.lane.b32.xlu0 %v2596_v17, %s3789_s19  ;;  %2512 = vrot.lane.b32.xlu1 %v2472_v59, %s3788_s16 }
 0x310   : > { %2632 = vrot.lane.b32.xlu2 %v2592_v58, %s3789_s19 }
 0x317   : > { %2514 = vrot.lane.b32.xlu0 %v2473_v15, %s3788_s16  ;;  %2634 = vrot.lane.b32.xlu1 %v2593_v8, %s3789_s19  ;;  %v2490_v15 = vld [vmem:[#allocation4 + $0xd9] sm:$0xff] }
 0x318   : > { %v2610_v8 = vld [vmem:[#allocation4 + $0xda] sm:$0xff] }
 0x31f   : > { %2664 = vrot.lane.b32.xlu0 %v2608_v0, %s3789_s19  ;;  %2546 = vrot.lane.b32.xlu1 %v2489_v50, %s3788_s16 }
 0x322   : > { %v2527_v12 = vpop.permute.xlu2 %2526 }
 0x323   : > { %2579 = vst.msk [vmem:[#allocation5 + $0x38] sm:$0xff] %vm721_vm2, %v2527_v12  ;;  %v2488_v12 = vld [vmem:[#allocation4 + $0xc1] sm:$0xff] }
 0x324   : > { %2544 = vrot.lane.b32.xlu2 %v2488_v12, %s3788_s16 }
 0x327   : > { %2548 = vrot.lane.b32.xlu0 %v2490_v15, %s3788_s16  ;;  %2668 = vrot.lane.b32.xlu1 %v2610_v8, %s3789_s19 }
 0x32a   : > { %v2647_v49 = vpop.permute.xlu2 %2646 }
 0x32b   : > { %2699 = vst.msk [vmem:[#allocation5 + $0x38] sm:$0xff] %vm866_vm4, %v2647_v49  ;;  %v2609_v49 = vld [vmem:[#allocation4 + $0xca] sm:$0xff] }
 0x32c   : > { %2666 = vrot.lane.b32.xlu2 %v2609_v49, %s3789_s19 }
 0x32f   : > { %2670 = vrot.lane.b32.xlu0 %v2611_v3, %s3789_s19 }
 0x332   : > { %v2531_v29 = vpop.permute.xlu2 %2530  ;;  %v5212_v45 = vld [vmem:[#allocation5 + $0x38] sm:$0xff] }
 0x333   : > { %2581 = vst.msk [vmem:[#allocation5 + $0x48] sm:$0xff] %vm721_vm2, %v2531_v29 }
 0x339   : > { %v2523_v23 = vpop.permute.xlu0 %2522  ;;  %v2525_v51 = vpop.permute.xlu1 %2524 }
 0x33a   : > { %2577 = vst.msk [vmem:[#allocation5 + $0x28] sm:$0xff] %vm721_vm2, %v2523_v23  ;;  %v2653_v48 = vpop.permute.xlu2 %2652 }
 0x33b   : > { %2578 = vst.msk [vmem:[#allocation5 + $0x30] sm:$0xff] %vm721_vm2, %v2525_v51  ;;  %v2491_v51 = vld [vmem:[#allocation4 + $0xe1] sm:$0xff] }
 0x33c   : > { %2550 = vrot.lane.b32.xlu2 %v2491_v51, %s3788_s16 }
 0x341   : > { %v2643_v11 = vpop.permute.xlu0 %2642  ;;  %v2645_v46 = vpop.permute.xlu1 %2644 }
 0x342   : > { %2697 = vst.msk [vmem:[#allocation5 + $0x28] sm:$0xff] %vm866_vm4, %v2643_v11  ;;  %v2537_v37 = vpop.permute.xlu2 %2536 }
 0x343   : > { %2698 = vst.msk [vmem:[#allocation5 + $0x30] sm:$0xff] %vm866_vm4, %v2645_v46 }
 0x344   : > { %2584 = vst.msk [vmem:[#allocation5 + $0x60] sm:$0xff] %vm721_vm2, %v2537_v37 }
 0x349   : > { %v2529_v33 = vpop.permute.xlu0 %2528  ;;  %v5192_v44 = vld [vmem:[#allocation5 + $0x28] sm:$0xff]  ;;  %v2649_v30 = vpop.permute.xlu1 %2648 }
 0x34a   : > { %2580 = vst.msk [vmem:[#allocation5 + $0x40] sm:$0xff] %vm721_vm2, %v2529_v33  ;;  %3562 = vmatmul.msk.f32.vlgmr.msra.gmra.mxu3 %vm913_vm5, %v5192_v44  ;;  %v2659_v55 = vpop.permute.xlu2 %2658  ;;  %v5200_v21 = vld [vmem:[#allocation5 + $0x30] sm:$0xff] }
 0x34b   : > { %2700 = vst.msk [vmem:[#allocation5 + $0x40] sm:$0xff] %vm866_vm4, %v2649_v30  ;;  %v2449_v30 = vld [vmem:[#allocation4 + $0xc8] sm:$0xff] }
 0x34c   : > { %2469 = vst.msk [vmem:[#allocation5 + $0x88] sm:$0xff] %vm457_vm0, %v2449_v30 }
 0x351   : > { %v2651_v18 = vpop.permute.xlu0 %2650  ;;  %v2533_v7 = vpop.permute.xlu1 %2532 }
 0x352   : > { %2701 = vst.msk [vmem:[#allocation5 + $0x48] sm:$0xff] %vm866_vm4, %v2651_v18  ;;  %3563 = vmatmul.msk.f32.gmra.mxu3 %vm913_vm5, %v5200_v21  ;;  %v2543_v25 = vpop.permute.xlu2 %2542  ;;  %v5220_v32 = vld [vmem:[#allocation5 + $0x40] sm:$0xff]  ;;  %v2450_v18 = vld [vmem:[#allocation4 + $0xd8] sm:$0xff] }
 0x353   : > { %2582 = vst.msk [vmem:[#allocation5 + $0x50] sm:$0xff] %vm721_vm2, %v2533_v7 }
 0x354   : > { %2702 = vst.msk [vmem:[#allocation5 + $0x50] sm:$0xff] %vm866_vm4, %v2653_v48 }
 0x355   : > { %2587 = vst.msk [vmem:[#allocation5 + $0x78] sm:$0xff] %vm721_vm2, %v2543_v25 }
 0x356   : > { %2470 = vst.msk [vmem:[#allocation5 + $0x90] sm:$0xff] %vm457_vm0, %v2450_v18 }
 0x359   : > { %v2535_v53 = vpop.permute.xlu0 %2534  ;;  %v2655_v43 = vpop.permute.xlu1 %2654  ;;  %v5236_v61 = vld [vmem:[#allocation5 + $0x48] sm:$0xff] }
 0x35a   : > { %2583 = vst.msk [vmem:[#allocation5 + $0x58] sm:$0xff] %vm721_vm2, %v2535_v53  ;;  %3564 = vmatmul.msk.f32.gmra.mxu3 %vm913_vm5, %v5212_v45  ;;  %v2637_v5 = vpop.permute.xlu2 %2636 }
 0x35b   : > { %2703 = vst.msk [vmem:[#allocation5 + $0x58] sm:$0xff] %vm866_vm4, %v2655_v43  ;;  %v5243_v41 = vld [vmem:[#allocation5 + $0x50] sm:$0xff] }
 0x361   : > { %v2657_v24 = vpop.permute.xlu0 %2656  ;;  %v2539_v28 = vpop.permute.xlu1 %2538 }
 0x362   : > { %2704 = vst.msk [vmem:[#allocation5 + $0x60] sm:$0xff] %vm866_vm4, %v2657_v24  ;;  %3565 = vmatmul.msk.f32.gmra.mxu3 %vm913_vm5, %v5220_v32  ;;  %v2521_v36 = vpop.permute.xlu2 %2520  ;;  %v5251_v52 = vld [vmem:[#allocation5 + $0x58] sm:$0xff] }
 0x363   : > { %2585 = vst.msk [vmem:[#allocation5 + $0x68] sm:$0xff] %vm721_vm2, %v2539_v28 }
 0x364   : > { %2705 = vst.msk [vmem:[#allocation5 + $0x68] sm:$0xff] %vm866_vm4, %v2659_v55 }
 0x365   : > { %2576 = vst.msk [vmem:[#allocation5 + $0x20] sm:$0xff] %vm721_vm2, %v2521_v36 }
 0x369   : > { %v2541_v60 = vpop.permute.xlu0 %2540  ;;  %v2661_v16 = vpop.permute.xlu1 %2660  ;;  %v5258_v27 = vld [vmem:[#allocation5 + $0x60] sm:$0xff] }
 0x36a   : > { %2586 = vst.msk [vmem:[#allocation5 + $0x70] sm:$0xff] %vm721_vm2, %v2541_v60  ;;  %3566 = vmatmul.msk.f32.gmra.mxu3 %vm913_vm5, %v5236_v61  ;;  %v2633_v17 = vpop.permute.xlu2 %2632 }
 0x36b   : > { %2706 = vst.msk [vmem:[#allocation5 + $0x70] sm:$0xff] %vm866_vm4, %v2661_v16  ;;  %v5267_v38 = vld [vmem:[#allocation5 + $0x68] sm:$0xff] }
 0x371   : > { %v2663_v22 = vpop.permute.xlu0 %2662  ;;  %v2517_v35 = vpop.permute.xlu1 %2516 }
 0x372   : > { %2707 = vst.msk [vmem:[#allocation5 + $0x78] sm:$0xff] %vm866_vm4, %v2663_v22  ;;  %3567 = vmatmul.msk.f32.gmra.mxu3 %vm913_vm5, %v5243_v41  ;;  %v5277_v39 = vld [vmem:[#allocation5 + $0x70] sm:$0xff] }
 0x373   : > { %2574 = vst.msk [vmem:[#allocation5 + $0x10] sm:$0xff] %vm721_vm2, %v2517_v35 }
 0x374   : > { %2694 = vst.msk [vmem:[#allocation5 + $0x10] sm:$0xff] %vm866_vm4, %v2637_v5 }
 0x379   : > { %v2519_v54 = vpop.permute.xlu0 %2518  ;;  %v2639_v31 = vpop.permute.xlu1 %2638  ;;  %v5285_v9 = vld [vmem:[#allocation5 + $0x78] sm:$0xff] }
 0x37a   : > { %2575 = vst.msk [vmem:[#allocation5 + $0x18] sm:$0xff] %vm721_vm2, %v2519_v54  ;;  %3568 = vmatmul.msk.f32.gmra.mxu3 %vm913_vm5, %v5251_v52 }
 0x37b   : > { %2695 = vst.msk [vmem:[#allocation5 + $0x18] sm:$0xff] %vm866_vm4, %v2639_v31  ;;  %v2714_v29 = vld [vmem:[#allocation5 + $0x10] sm:$0xff] }
 0x37e   : > { %v2545_v46 = vpop.permute.xlu2 %2544 }
 0x37f   : > { %2588 = vst.msk [vmem:[#allocation5 + $0x80] sm:$0xff] %vm721_vm2, %v2545_v46 }
 0x381   : > { %v2641_v59 = vpop.permute.xlu0 %2640  ;;  %v2513_v58 = vpop.permute.xlu1 %2512 }
 0x382   : > { %2696 = vst.msk [vmem:[#allocation5 + $0x20] sm:$0xff] %vm866_vm4, %v2641_v59  ;;  %3569 = vmatmul.msk.f32.gmra.mxu3 %vm913_vm5, %v5258_v27  ;;  %v2715_v23 = vld [vmem:[#allocation5 + $0x18] sm:$0xff]  ;;  %v5378_v59 = vld [vmem:[%s5494_s6] ss:$0 sm:$0xff] }
 0x383   : > { %2572 = vst.msk [vmem:[#allocation5] sm:$0xff] %vm721_vm2, %v2513_v58 }
 0x384   : > { %2692 = vst.msk [vmem:[#allocation5] sm:$0xff] %vm866_vm4, %v2633_v17 }
 0x386   : > { %v2667_v56 = vpop.permute.xlu2 %2666 }
 0x389   : > { %v3063_v6 = vld [vmem:[#allocation5 + $0x20] sm:$0xff]  ;;  %v2515_v10 = vpop.permute.xlu0 %2514  ;;  %v2635_v62 = vpop.permute.xlu1 %2634 }
 0x38a   : > { %3570 = vmatmul.msk.f32.gmra.mxu3 %vm913_vm5, %v5267_v38  ;;  %3595 = vmatmul.msk.f32.vlgmr.msrb.gmra.mxu0 %vm913_vm5, %v3063_v6  ;;  %2573 = vst.msk [vmem:[#allocation5 + $0x8] sm:$0xff] %vm721_vm2, %v2515_v10 }
 0x38b   : > { %2693 = vst.msk [vmem:[#allocation5 + $0x8] sm:$0xff] %vm866_vm4, %v2635_v62  ;;  %v2712_v40 = vld [vmem:[#allocation5] sm:$0xff] }
 0x38c   : > { %3557 = vmatmul.msk.f32.vlgmr.msra.gmra.mxu2 %vm913_vm5, %v2712_v40 }
 0x391   : > { %v2665_v37 = vpop.permute.xlu0 %2664 }
 0x392   : > { %3571 = vmatmul.msk.f32.gmra.mxu3 %vm913_vm5, %v5277_v39  ;;  %3596 = vmatmul.msk.f32.gmra.mxu0 %vm913_vm5, %v5192_v44  ;;  %v2713_v26 = vld [vmem:[#allocation5 + $0x8] sm:$0xff]  ;;  %2708 = vst.msk [vmem:[#allocation5 + $0x80] sm:$0xff] %vm866_vm4, %v2665_v37 }
 0x394   : > { %3558 = vmatmul.msk.f32.gmra.mxu2 %vm913_vm5, %v2713_v26 }
 0x396   : > { %v2551_v1 = vpop.permute.xlu2 %2550 }
 0x399   : > { %v2893_v2 = vld [vmem:[#allocation5 + $0x80] sm:$0xff] }
 0x39a   : > { %3572 = vmatmul.msk.f32.gmra.mxu3 %vm913_vm5, %v5285_v9  ;;  %3597 = vmatmul.msk.f32.gmra.mxu0 %vm913_vm5, %v5200_v21 }
 0x39c   : > { %3559 = vmatmul.msk.f32.gmra.mxu2 %vm913_vm5, %v2714_v29 }
 0x3a2   : > { %3576 = vmatmul.msk.f32.vlgmr.msrb.gmra.mxu3 %vm913_vm5, %v2714_v29  ;;  %3598 = vmatmul.msk.f32.gmra.mxu0 %vm913_vm5, %v5212_v45  ;;  %v3267_v29 = vld [vmem:[%s3958_s20 + $0x8] sm:$0xff] }
 0x3a4   : > { %3560 = vmatmul.msk.f32.gmra.mxu2 %vm913_vm5, %v2715_v23 }
 0x3aa   : > { %3577 = vmatmul.msk.f32.gmra.mxu3 %vm913_vm5, %v2715_v23  ;;  %3599 = vmatmul.msk.f32.gmra.mxu0 %vm913_vm5, %v5220_v32 }
 0x3ac   : > { %3561 = vmatmul.msk.f32.gmra.mxu2 %vm913_vm5, %v3063_v6 }
 0x3b2   : > { %3578 = vmatmul.msk.f32.gmra.mxu3 %vm913_vm5, %v3063_v6  ;;  %3600 = vmatmul.msk.f32.gmra.mxu0 %vm913_vm5, %v5236_v61  ;;  %v3266_v6 = vld [vmem:[%s3958_s20] sm:$0xff] }
 0x3ba   : > { %3579 = vmatmul.msk.f32.gmra.mxu3 %vm913_vm5, %v5192_v44  ;;  %3601 = vmatmul.msk.f32.gmra.mxu0 %vm913_vm5, %v5243_v41  ;;  %v2547_v44 = vpop.permute.xlu1 %2546 }
 0x3bb   : > { %2589 = vst.msk [vmem:[#allocation5 + $0x88] sm:$0xff] %vm721_vm2, %v2547_v44 }
 0x3bc   : > { %2709 = vst.msk [vmem:[#allocation5 + $0x88] sm:$0xff] %vm866_vm4, %v2667_v56 }
 0x3c2   : > { %3580 = vmatmul.msk.f32.gmra.mxu3 %vm913_vm5, %v5200_v21  ;;  %3602 = vmatmul.msk.f32.gmra.mxu0 %vm913_vm5, %v5251_v52  ;;  %v2549_v21 = vpop.permute.xlu0 %2548  ;;  %v2669_v7 = vpop.permute.xlu1 %2668 }
 0x3c3   : > { %2590 = vst.msk [vmem:[#allocation5 + $0x90] sm:$0xff] %vm721_vm2, %v2549_v21  ;;  %v2894_v14 = vld [vmem:[#allocation5 + $0x88] sm:$0xff] }
 0x3c4   : > { %2710 = vst.msk [vmem:[#allocation5 + $0x90] sm:$0xff] %vm866_vm4, %v2669_v7 }
 0x3ca   : > { %3581 = vmatmul.msk.f32.gmra.mxu3 %vm913_vm5, %v5212_v45  ;;  %3603 = vmatmul.msk.f32.gmra.mxu0 %vm913_vm5, %v5258_v27  ;;  %v2451_v45 = vld [vmem:[#allocation4 + $0xe0] sm:$0xff]  ;;  %v2671_v53 = vpop.permute.xlu0 %2670 }
 0x3cb   : > { %2471 = vst.msk [vmem:[#allocation5 + $0x98] sm:$0xff] %vm457_vm0, %v2451_v45  ;;  %v3077_v43 = vld [vmem:[#allocation5 + $0x90] sm:$0xff] }
 0x3cc   : > { %2591 = vst.msk [vmem:[#allocation5 + $0x98] sm:$0xff] %vm721_vm2, %v2551_v1 }
 0x3cd   : > { %v2813_v57 = vpop.f32.mrf.mxu3  ;;  %2711 = vst.msk [vmem:[#allocation5 + $0x98] sm:$0xff] %vm866_vm4, %v2671_v53 }
 0x3ce   : > { %2851 = vst.msk [vmem:[#allocation6 + $0x28] sm:$0xff] %vm457_vm0, %v2813_v57 }
 0x3d2   : > { %3582 = vmatmul.msk.f32.gmra.mxu3 %vm913_vm5, %v5220_v32  ;;  %3604 = vmatmul.msk.f32.gmra.mxu0 %vm913_vm5, %v5267_v38 }
 0x3d4   : > { %v3078_v4 = vld [vmem:[#allocation5 + $0x98] sm:$0xff] }
 0x3d5   : > { %v2816_v42 = vpop.f32.mrf.mxu3 }
 0x3d6   : > { %2852 = vst.msk [vmem:[#allocation6 + $0x30] sm:$0xff] %vm457_vm0, %v2816_v42 }
 0x3da   : > { %3583 = vmatmul.msk.f32.gmra.mxu3 %vm913_vm5, %v5236_v61  ;;  %3605 = vmatmul.msk.f32.gmra.mxu0 %vm913_vm5, %v5277_v39 }
 0x3dd   : > { %v2819_v48 = vpop.f32.mrf.mxu3  ;;  %v2868_v53 = vld [vmem:[#allocation6 + $0x30] sm:$0xff] }
 0x3de   : > { %2853 = vst.msk [vmem:[#allocation6 + $0x38] sm:$0xff] %vm457_vm0, %v2819_v48 }
 0x3e2   : > { %3584 = vmatmul.msk.f32.gmra.mxu3 %vm913_vm5, %v5243_v41  ;;  %3606 = vmatmul.msk.f32.gmra.mxu0 %vm913_vm5, %v5285_v9 }
 0x3e5   : > { %v2822_v11 = vpop.f32.mrf.mxu3 }
 0x3e6   : > { %2854 = vst.msk [vmem:[#allocation6 + $0x40] sm:$0xff] %vm457_vm0, %v2822_v11 }
 0x3ea   : > { %3585 = vmatmul.msk.f32.gmra.mxu3 %vm913_vm5, %v5251_v52  ;;  %3607 = vmatmul.msk.f32.gmra.mxu0 %vm913_vm5, %v2893_v2 }
 0x3ed   : > { %v2825_v33 = vpop.f32.mrf.mxu3 }
 0x3ee   : > { %2855 = vst.msk [vmem:[#allocation6 + $0x48] sm:$0xff] %vm457_vm0, %v2825_v33  ;;  %v3268_v33 = vld [vmem:[%s3958_s20 + $0x10] sm:$0xff] }
 0x3f2   : > { %3586 = vmatmul.msk.f32.gmra.mxu3 %vm913_vm5, %v5258_v27  ;;  %3608 = vmatmul.msk.f32.gmra.mxu0 %vm913_vm5, %v2894_v14 }
 0x3f5   : > { %v2828_v55 = vpop.f32.mrf.mxu3 }
 0x3f6   : > { %2856 = vst.msk [vmem:[#allocation6 + $0x50] sm:$0xff] %vm457_vm0, %v2828_v55 }
 0x3fa   : > { %3587 = vmatmul.msk.f32.gmra.mxu3 %vm913_vm5, %v5267_v38  ;;  %3609 = vmatmul.msk.f32.gmra.mxu0 %vm913_vm5, %v3077_v43 }
 0x3fd   : > { %v2831_v25 = vpop.f32.mrf.mxu3 }
 0x3fe   : > { %2857 = vst.msk [vmem:[#allocation6 + $0x58] sm:$0xff] %vm457_vm0, %v2831_v25  ;;  %v3269_v25 = vld [vmem:[%s3958_s20 + $0x18] sm:$0xff] }
 0x402   : > { %3588 = vmatmul.msk.f32.gmra.mxu3 %vm913_vm5, %v5277_v39  ;;  %3610 = vmatmul.msk.f32.gmra.mxu0 %vm913_vm5, %v3078_v4 }
 0x405   : > { %v2834_v63 = vpop.f32.mrf.mxu3 }
 0x406   : > { %2858 = vst.msk [vmem:[#allocation6 + $0x60] sm:$0xff] %vm457_vm0, %v2834_v63 }
 0x407   : > { %v3150_v24 = vpop.f32.mrf.mxu0 }
 0x40a   : > { %3589 = vmatmul.msk.f32.gmra.mxu3 %vm913_vm5, %v5285_v9 }
 0x40d   : > { %v2837_v5 = vpop.f32.mrf.mxu3 }
 0x40e   : > { %2859 = vst.msk [vmem:[#allocation6 + $0x68] sm:$0xff] %vm457_vm0, %v2837_v5 }
 0x40f   : > { %v2798_v32 = vpop.f32.mrf.mxu2  ;;  %v3153_v36 = vpop.f32.mrf.mxu0 }
 0x410   : > { %2846 = vst.msk [vmem:[#allocation6] sm:$0xff] %vm457_vm0, %v2798_v32 }
 0x412   : > { %3590 = vmatmul.msk.f32.gmra.mxu3 %vm913_vm5, %v2893_v2  ;;  %v2867_v2 = vld [vmem:[#allocation6 + $0x28] sm:$0xff] }
 0x415   : > { %v2840_v28 = vpop.f32.mrf.mxu3 }
 0x416   : > { %2860 = vst.msk [vmem:[#allocation6 + $0x70] sm:$0xff] %vm457_vm0, %v2840_v28  ;;  %v3270_v28 = vld [vmem:[%s3958_s20 + $0x20] sm:$0xff] }
 0x417   : > { %v2801_v13 = vpop.f32.mrf.mxu2  ;;  %v2862_v61 = vld [vmem:[#allocation6] sm:$0xff]  ;;  %v3156_v60 = vpop.f32.mrf.mxu0 }
 0x418   : > { %2847 = vst.msk [vmem:[#allocation6 + $0x8] sm:$0xff] %vm457_vm0, %v2801_v13 }
 0x41a   : > { %3591 = vmatmul.msk.f32.gmra.mxu3 %vm913_vm5, %v2894_v14 }
 0x41d   : > { %v2843_v20 = vpop.f32.mrf.mxu3 }
 0x41e   : > { %2861 = vst.msk [vmem:[#allocation6 + $0x78] sm:$0xff] %vm457_vm0, %v2843_v20  ;;  %v2869_v20 = vld [vmem:[#allocation6 + $0x38] sm:$0xff] }
 0x41f   : > { %v2804_v19 = vpop.f32.mrf.mxu2  ;;  %v2863_v22 = vld [vmem:[#allocation6 + $0x8] sm:$0xff]  ;;  %v3159_v52 = vpop.f32.mrf.mxu0 }
 0x420   : > { %2848 = vst.msk [vmem:[#allocation6 + $0x10] sm:$0xff] %vm457_vm0, %v2804_v19 }
 0x425   : > { %v2966_v16 = vpop.f32.mrf.mxu3 }
 0x426   : > { %v3014_v34 = vadd.f32 %v2966_v16, %v2862_v61 }
 0x427   : > { %v2807_v41 = vpop.f32.mrf.mxu2  ;;  %v2864_v27 = vld [vmem:[#allocation6 + $0x10] sm:$0xff]  ;;  %v3162_v10 = vpop.f32.mrf.mxu0 }
 0x428   : > { %3030 = vst.msk [vmem:[#allocation6] sm:$0xff] %vm457_vm0, %v3014_v34 }
 0x429   : > { %2849 = vst.msk [vmem:[#allocation6 + $0x18] sm:$0xff] %vm457_vm0, %v2807_v41 }
 0x42d   : > { %v2969_v35 = vpop.f32.mrf.mxu3 }
 0x42e   : > { %v3015_v0 = vadd.f32 %v2969_v35, %v2863_v22  ;;  %v3271_v22 = vld [vmem:[%s3958_s20 + $0x28] sm:$0xff] }
 0x42f   : > { %v3046_v54 = vld [vmem:[#allocation6] sm:$0xff]  ;;  %v2810_v31 = vpop.f32.mrf.mxu2  ;;  %v3165_v51 = vpop.f32.mrf.mxu0 }
 0x430   : > { %v3198_v50 = vadd.f32 %v3150_v24, %v3046_v54  ;;  %3031 = vst.msk [vmem:[#allocation6 + $0x8] sm:$0xff] %vm457_vm0, %v3015_v0  ;;  %v2865_v3 = vld [vmem:[#allocation6 + $0x18] sm:$0xff] }
 0x431   : > { %2850 = vst.msk [vmem:[#allocation6 + $0x20] sm:$0xff] %vm457_vm0, %v2810_v31 }
 0x432   : > { %3214 = vst.msk [vmem:[#allocation6] sm:$0xff] %vm457_vm0, %v3198_v50 }
 0x435   : > { %v2972_v17 = vpop.f32.mrf.mxu3 }
 0x436   : > { %v3016_v58 = vadd.f32 %v2972_v17, %v2864_v27 }
 0x437   : > { %v3047_v15 = vld [vmem:[#allocation6 + $0x8] sm:$0xff]  ;;  %v3168_v56 = vpop.f32.mrf.mxu0 }
 0x438   : > { %v3199_v8 = vadd.f32 %v3153_v36, %v3047_v15  ;;  %3032 = vst.msk [vmem:[#allocation6 + $0x10] sm:$0xff] %vm457_vm0, %v3016_v58  ;;  %v2866_v42 = vld [vmem:[#allocation6 + $0x20] sm:$0xff] }
 0x439   : > { %v3230_v38 = vld [vmem:[#allocation6] sm:$0xff] }
 0x43a   : > { %v3250_v62 = vadd.f32 %v5378_v59, %v3230_v38  ;;  %3215 = vst.msk [vmem:[#allocation6 + $0x8] sm:$0xff] %vm457_vm0, %v3199_v8  ;;  %v3272_v58 = vld [vmem:[%s3958_s20 + $0x30] sm:$0xff] }
 0x43c   : > { %v3282_v12 = vadd.f32 %v3266_v6, %v3250_v62  ;;  %v2871_v6 = vld [vmem:[#allocation6 + $0x48] sm:$0xff] }
 0x43d   : > { %v2975_v40 = vpop.f32.mrf.mxu3 }
 0x43e   : > { %3298 = vst.msk [vmem:[%s3911_s8] sm:$0xff] %vm457_vm0, %v3282_v12  ;;  %v3017_v39 = vadd.f32 %v2975_v40, %v2865_v3 }
 0x43f   : > { %v3048_v26 = vld [vmem:[#allocation6 + $0x10] sm:$0xff]  ;;  %v3171_v4 = vpop.f32.mrf.mxu0 }
 0x440   : > { %v3200_v49 = vadd.f32 %v3156_v60, %v3048_v26  ;;  %3033 = vst.msk [vmem:[#allocation6 + $0x18] sm:$0xff] %vm457_vm0, %v3017_v39  ;;  %v3273_v39 = vld [vmem:[%s3958_s20 + $0x38] sm:$0xff] }
 0x441   : > { %v3231_v9 = vld [vmem:[#allocation6 + $0x8] sm:$0xff] }
 0x442   : > { %v3251_v23 = vadd.f32 %v5378_v59, %v3231_v9  ;;  %3216 = vst.msk [vmem:[#allocation6 + $0x10] sm:$0xff] %vm457_vm0, %v3200_v49 }
 0x444   : > { %v3283_v57 = vadd.f32 %v3267_v29, %v3251_v23  ;;  %v2872_v29 = vld [vmem:[#allocation6 + $0x50] sm:$0xff] }
 0x445   : > { %v2978_v48 = vpop.f32.mrf.mxu3 }
 0x446   : > { %3299 = vst.msk [vmem:[%s3911_s8 + $0x8] sm:$0xff] %vm457_vm0, %v3283_v57  ;;  %v3018_v11 = vadd.f32 %v2978_v48, %v2866_v42 }
 0x447   : > { %v3049_v46 = vld [vmem:[#allocation6 + $0x18] sm:$0xff]  ;;  %v3174_v34 = vpop.f32.mrf.mxu0 }
 0x448   : > { %v3201_v47 = vadd.f32 %v3159_v52, %v3049_v46  ;;  %3034 = vst.msk [vmem:[#allocation6 + $0x20] sm:$0xff] %vm457_vm0, %v3018_v11  ;;  %v2870_v52 = vld [vmem:[#allocation6 + $0x40] sm:$0xff]  ;;  %v3274_v11 = vld [vmem:[%s3958_s20 + $0x40] sm:$0xff] }
 0x449   : > { %v3232_v37 = vld [vmem:[#allocation6 + $0x10] sm:$0xff] }
 0x44a   : > { %v3252_v44 = vadd.f32 %v5378_v59, %v3232_v37  ;;  %3217 = vst.msk [vmem:[#allocation6 + $0x18] sm:$0xff] %vm457_vm0, %v3201_v47  ;;  %v2873_v37 = vld [vmem:[#allocation6 + $0x58] sm:$0xff] }
 0x44c   : > { %v3284_v30 = vadd.f32 %v3268_v33, %v3252_v44 }
 0x44d   : > { %v2981_v55 = vpop.f32.mrf.mxu3 }
 0x44e   : > { %3300 = vst.msk [vmem:[%s3911_s8 + $0x10] sm:$0xff] %vm457_vm0, %v3284_v30  ;;  %v3019_v21 = vadd.f32 %v2981_v55, %v2867_v2 }
 0x44f   : > { %v3050_v18 = vld [vmem:[#allocation6 + $0x20] sm:$0xff]  ;;  %v3177_v8 = vpop.f32.mrf.mxu0 }
 0x450   : > { %v3202_v7 = vadd.f32 %v3162_v10, %v3050_v18  ;;  %3035 = vst.msk [vmem:[#allocation6 + $0x28] sm:$0xff] %vm457_vm0, %v3019_v21  ;;  %v3275_v21 = vld [vmem:[%s3958_s20 + $0x48] sm:$0xff] }
 0x451   : > { %v3233_v14 = vld [vmem:[#allocation6 + $0x18] sm:$0xff] }
 0x452   : > { %v3253_v1 = vadd.f32 %v5378_v59, %v3233_v14  ;;  %3218 = vst.msk [vmem:[#allocation6 + $0x20] sm:$0xff] %vm457_vm0, %v3202_v7  ;;  %v2874_v14 = vld [vmem:[#allocation6 + $0x60] sm:$0xff] }
 0x454   : > { %v3285_v45 = vadd.f32 %v3269_v25, %v3253_v1 }
 0x455   : > { %v2984_v43 = vpop.f32.mrf.mxu3 }
 0x456   : > { %3301 = vst.msk [vmem:[%s3911_s8 + $0x18] sm:$0xff] %vm457_vm0, %v3285_v45  ;;  %v3020_v63 = vadd.f32 %v2984_v43, %v2868_v53 }
 0x457   : > { %v3051_v5 = vld [vmem:[#allocation6 + $0x28] sm:$0xff]  ;;  %v3180_v9 = vpop.f32.mrf.mxu0 }
 0x458   : > { %v3203_v32 = vadd.f32 %v3165_v51, %v3051_v5  ;;  %3036 = vst.msk [vmem:[#allocation6 + $0x30] sm:$0xff] %vm457_vm0, %v3020_v63 }
 0x459   : > { %v3234_v24 = vld [vmem:[#allocation6 + $0x20] sm:$0xff] }
 0x45a   : > { %v3254_v13 = vadd.f32 %v5378_v59, %v3234_v24  ;;  %3219 = vst.msk [vmem:[#allocation6 + $0x28] sm:$0xff] %vm457_vm0, %v3203_v32  ;;  %v2875_v24 = vld [vmem:[#allocation6 + $0x68] sm:$0xff] }
 0x45c   : > { %v3286_v36 = vadd.f32 %v3270_v28, %v3254_v13 }
 0x45d   : > { %v2987_v19 = vpop.f32.mrf.mxu3 }
 0x45e   : > { %3302 = vst.msk [vmem:[%s3911_s8 + $0x20] sm:$0xff] %vm457_vm0, %v3286_v36  ;;  %v3021_v61 = vadd.f32 %v2987_v19, %v2869_v20 }
 0x45f   : > { %v3052_v60 = vld [vmem:[#allocation6 + $0x30] sm:$0xff]  ;;  %v3183_v30 = vpop.f32.mrf.mxu0 }
 0x460   : > { %v3204_v16 = vadd.f32 %v3168_v56, %v3052_v60  ;;  %3037 = vst.msk [vmem:[#allocation6 + $0x38] sm:$0xff] %vm457_vm0, %v3021_v61  ;;  %v3277_v61 = vld [vmem:[%s3958_s20 + $0x58] sm:$0xff] }
 0x461   : > { %v3235_v41 = vld [vmem:[#allocation6 + $0x28] sm:$0xff] }
 0x462   : > { %v3255_v35 = vadd.f32 %v5378_v59, %v3235_v41  ;;  %3220 = vst.msk [vmem:[#allocation6 + $0x30] sm:$0xff] %vm457_vm0, %v3204_v16  ;;  %v2876_v41 = vld [vmem:[#allocation6 + $0x70] sm:$0xff] }
 0x464   : > { %v3287_v0 = vadd.f32 %v3271_v22, %v3255_v35 }
 0x465   : > { %v2990_v54 = vpop.f32.mrf.mxu3 }
 0x466   : > { %3303 = vst.msk [vmem:[%s3911_s8 + $0x28] sm:$0xff] %vm457_vm0, %v3287_v0  ;;  %v3022_v31 = vadd.f32 %v2990_v54, %v2870_v52 }
 0x467   : > { %v3053_v50 = vld [vmem:[#allocation6 + $0x38] sm:$0xff]  ;;  %v3186_v53 = vpop.f32.mrf.mxu0 }
 0x468   : > { %v3205_v27 = vadd.f32 %v3171_v4, %v3053_v50  ;;  %3038 = vst.msk [vmem:[#allocation6 + $0x40] sm:$0xff] %vm457_vm0, %v3022_v31  ;;  %v3276_v4 = vld [vmem:[%s3958_s20 + $0x50] sm:$0xff]  ;;  %v3278_v31 = vld [vmem:[%s3958_s20 + $0x60] sm:$0xff] }
 0x469   : > { %v3236_v17 = vld [vmem:[#allocation6 + $0x30] sm:$0xff] }
 0x46a   : > { %v3256_v15 = vadd.f32 %v5378_v59, %v3236_v17  ;;  %3221 = vst.msk [vmem:[#allocation6 + $0x38] sm:$0xff] %vm457_vm0, %v3205_v27 }
 0x46c   : > { %v3288_v38 = vadd.f32 %v3272_v58, %v3256_v15  ;;  %v2877_v58 = vld [vmem:[#allocation6 + $0x78] sm:$0xff] }
 0x46d   : > { %v2993_v10 = vpop.f32.mrf.mxu3 }
 0x46e   : > { %3304 = vst.msk [vmem:[%s3911_s8 + $0x30] sm:$0xff] %vm457_vm0, %v3288_v38  ;;  %v3023_v62 = vadd.f32 %v2993_v10, %v2871_v6 }
 0x46f   : > { %v3054_v12 = vld [vmem:[#allocation6 + $0x40] sm:$0xff]  ;;  %v3189_v60 = vpop.f32.mrf.mxu0 }
 0x470   : > { %v3206_v3 = vadd.f32 %v3174_v34, %v3054_v12  ;;  %3039 = vst.msk [vmem:[#allocation6 + $0x48] sm:$0xff] %vm457_vm0, %v3023_v62  ;;  %v3279_v62 = vld [vmem:[%s3958_s20 + $0x68] sm:$0xff] }
 0x471   : > { %v3237_v40 = vld [vmem:[#allocation6 + $0x38] sm:$0xff] }
 0x472   : > { %v3257_v26 = vadd.f32 %v5378_v59, %v3237_v40  ;;  %3222 = vst.msk [vmem:[#allocation6 + $0x40] sm:$0xff] %vm457_vm0, %v3206_v3 }
 0x474   : > { %v3289_v49 = vadd.f32 %v3273_v39, %v3257_v26 }
 0x475   : > { %v2996_v23 = vpop.f32.mrf.mxu3 }
 0x476   : > { %3305 = vst.msk [vmem:[%s3911_s8 + $0x38] sm:$0xff] %vm457_vm0, %v3289_v49  ;;  %v3024_v51 = vadd.f32 %v2996_v23, %v2872_v29 }
 0x477   : > { %v3055_v57 = vld [vmem:[#allocation6 + $0x48] sm:$0xff]  ;;  %v3192_v27 = vpop.f32.mrf.mxu0 }
 0x478   : > { %v3207_v42 = vadd.f32 %v3177_v8, %v3055_v57  ;;  %3040 = vst.msk [vmem:[#allocation6 + $0x50] sm:$0xff] %vm457_vm0, %v3024_v51  ;;  %v3281_v57 = vld [vmem:[%s3958_s20 + $0x78] sm:$0xff] }
 0x479   : > { %v3238_v48 = vld [vmem:[#allocation6 + $0x40] sm:$0xff] }
 0x47a   : > { %v3258_v46 = vadd.f32 %v5378_v59, %v3238_v48  ;;  %3223 = vst.msk [vmem:[#allocation6 + $0x48] sm:$0xff] %vm457_vm0, %v3207_v42 }
 0x47c   : > { %v3290_v47 = vadd.f32 %v3274_v11, %v3258_v46 }
 0x47d   : > { %v2999_v33 = vpop.f32.mrf.mxu3 }
 0x47e   : > { %3306 = vst.msk [vmem:[%s3911_s8 + $0x40] sm:$0xff] %vm457_vm0, %v3290_v47  ;;  %v3025_v44 = vadd.f32 %v2999_v33, %v2873_v37 }
 0x47f   : > { %v3056_v56 = vld [vmem:[#allocation6 + $0x50] sm:$0xff]  ;;  %v3195_v40 = vpop.f32.mrf.mxu0 }
 0x480   : > { %v3208_v2 = vadd.f32 %v3180_v9, %v3056_v56  ;;  %3041 = vst.msk [vmem:[#allocation6 + $0x58] sm:$0xff] %vm457_vm0, %v3025_v44  ;;  %v3280_v9 = vld [vmem:[%s3958_s20 + $0x70] sm:$0xff] }
 0x481   : > { %v3239_v55 = vld [vmem:[#allocation6 + $0x48] sm:$0xff] }
 0x482   : > { %v3259_v18 = vadd.f32 %v5378_v59, %v3239_v55  ;;  %3224 = vst.msk [vmem:[#allocation6 + $0x50] sm:$0xff] %vm457_vm0, %v3208_v2 }
 0x484   : > { %v3291_v7 = vadd.f32 %v3275_v21, %v3259_v18 }
 0x485   : > { %v3002_v25 = vpop.f32.mrf.mxu3 }
 0x486   : > { %3307 = vst.msk [vmem:[%s3911_s8 + $0x48] sm:$0xff] %vm457_vm0, %v3291_v7  ;;  %v3026_v1 = vadd.f32 %v3002_v25, %v2874_v14 }
 0x487   : > { %v3057_v45 = vld [vmem:[#allocation6 + $0x58] sm:$0xff] }
 0x488   : > { %v3209_v43 = vadd.f32 %v3183_v30, %v3057_v45  ;;  %3042 = vst.msk [vmem:[#allocation6 + $0x60] sm:$0xff] %vm457_vm0, %v3026_v1 }
 0x489   : > { %v3240_v63 = vld [vmem:[#allocation6 + $0x50] sm:$0xff] }
 0x48a   : > { %v3260_v5 = vadd.f32 %v5378_v59, %v3240_v63  ;;  %3225 = vst.msk [vmem:[#allocation6 + $0x58] sm:$0xff] %vm457_vm0, %v3209_v43 }
 0x48c   : > { %v3292_v32 = vadd.f32 %v3276_v4, %v3260_v5 }
 0x48d   : > { %v3005_v28 = vpop.f32.mrf.mxu3 }
 0x48e   : > { %3308 = vst.msk [vmem:[%s3911_s8 + $0x50] sm:$0xff] %vm457_vm0, %v3292_v32  ;;  %v3027_v13 = vadd.f32 %v3005_v28, %v2875_v24 }
 0x48f   : > { %v3058_v36 = vld [vmem:[#allocation6 + $0x60] sm:$0xff] }
 0x490   : > { %3043 = vst.msk [vmem:[#allocation6 + $0x68] sm:$0xff] %vm457_vm0, %v3027_v13  ;;  %v3210_v20 = vadd.f32 %v3186_v53, %v3058_v36 }
 0x491   : > { %v3241_v19 = vld [vmem:[#allocation6 + $0x58] sm:$0xff] }
 0x492   : > { %v3261_v16 = vadd.f32 %v5378_v59, %v3241_v19  ;;  %3226 = vst.msk [vmem:[#allocation6 + $0x60] sm:$0xff] %vm457_vm0, %v3210_v20 }
 0x494   : > { %v3293_v34 = vadd.f32 %v3277_v61, %v3261_v16 }
 0x495   : > { %v3008_v22 = vpop.f32.mrf.mxu3 }
 0x496   : > { %3309 = vst.msk [vmem:[%s3911_s8 + $0x58] sm:$0xff] %vm457_vm0, %v3293_v34  ;;  %v3028_v35 = vadd.f32 %v3008_v22, %v2876_v41 }
 0x497   : > { %v3059_v0 = vld [vmem:[#allocation6 + $0x68] sm:$0xff] }
 0x498   : > { %3044 = vst.msk [vmem:[#allocation6 + $0x70] sm:$0xff] %vm457_vm0, %v3028_v35  ;;  %v3211_v52 = vadd.f32 %v3189_v60, %v3059_v0 }
 0x499   : > { %v3242_v54 = vld [vmem:[#allocation6 + $0x60] sm:$0xff] }
 0x49a   : > { %v3262_v50 = vadd.f32 %v5378_v59, %v3242_v54  ;;  %3227 = vst.msk [vmem:[#allocation6 + $0x68] sm:$0xff] %vm457_vm0, %v3211_v52 }
 0x49c   : > { %v3294_v17 = vadd.f32 %v3278_v31, %v3262_v50 }
 0x49d   : > { %v3011_v15 = vpop.f32.mrf.mxu3 }
 0x49e   : > { %3310 = vst.msk [vmem:[%s3911_s8 + $0x60] sm:$0xff] %vm457_vm0, %v3294_v17  ;;  %v3029_v8 = vadd.f32 %v3011_v15, %v2877_v58 }
 0x49f   : > { %v3060_v38 = vld [vmem:[#allocation6 + $0x70] sm:$0xff] }
 0x4a0   : > { %3045 = vst.msk [vmem:[#allocation6 + $0x78] sm:$0xff] %vm457_vm0, %v3029_v8  ;;  %v3212_v6 = vadd.f32 %v3192_v27, %v3060_v38 }
 0x4a1   : > { %v3243_v10 = vld [vmem:[#allocation6 + $0x68] sm:$0xff] }
 0x4a2   : > { %v3263_v12 = vadd.f32 %v5378_v59, %v3243_v10  ;;  %3228 = vst.msk [vmem:[#allocation6 + $0x70] sm:$0xff] %vm457_vm0, %v3212_v6 }
 0x4a4   : > { %v3295_v3 = vadd.f32 %v3279_v62, %v3263_v12 }
 0x4a6   : > { %3311 = vst.msk [vmem:[%s3911_s8 + $0x68] sm:$0xff] %vm457_vm0, %v3295_v3 }
 0x4a7   : > { %v3061_v39 = vld [vmem:[#allocation6 + $0x78] sm:$0xff] }
 0x4a8   : > { %v3213_v26 = vadd.f32 %v3195_v40, %v3061_v39 }
 0x4a9   : > { %v3244_v49 = vld [vmem:[#allocation6 + $0x70] sm:$0xff] }
 0x4aa   : > { %v3264_v29 = vadd.f32 %v5378_v59, %v3244_v49  ;;  %3229 = vst.msk [vmem:[#allocation6 + $0x78] sm:$0xff] %vm457_vm0, %v3213_v26 }
 0x4ac   : > { %v3296_v23 = vadd.f32 %v3280_v9, %v3264_v29 }
 0x4ae   : > { %3312 = vst.msk [vmem:[%s3911_s8 + $0x70] sm:$0xff] %vm457_vm0, %v3296_v23 }
 0x4b1   : > { %v3245_v51 = vld [vmem:[#allocation6 + $0x78] sm:$0xff] }
 0x4b2   : > { %v3265_v42 = vadd.f32 %v5378_v59, %v3245_v51 }
 0x4b4   : > { %v3297_v48 = vadd.f32 %v3281_v57, %v3265_v42 }
 0x4b6   : > { %3313 = vst.msk [vmem:[%s3911_s8 + $0x78] sm:$0xff] %vm457_vm0, %v3297_v48 }
 0x4b7 PF: > { %s17_s28 = sadd.s32 1, %s3785_s28   ;;  %s5510_s24 = smov %s3777_s26 }
 0x4b8   : > { %p14_p1 = scmp.ge.s32.totalorder %s17_s28, 6   ;;  %s5511_s25 = smov %s3781_s27 }
 0x4b9   : > { %s5512_s26 = smov %s5515_s29  ;;  %s5513_s27 = smov %s5519_s30 }
 0x4ba   :  { %16 = sbr.rel (!%p14_p1) target bundleno = 3 (0x3), region = 111 }

</bundles_post_ra>
